<compile_context>
chip_gen: v7x
topology: tpu7x:2x2x1
jax: 0.10.0
libtpu: 0.0.40
codegen_flags: <defaults>
</compile_context>

<pallas_src>
import functools
import math

import jax
import jax.numpy as jnp
from jax.experimental import pallas as pl
from jax.experimental.pallas import tpu as pltpu

EPS = 1.1920928955078125e-07  # torch.finfo(float32).eps (nn.RMSNorm default eps=None)


def _rms(x):
    # RMSNorm without gain (the gain is folded into the following projection weights).
    return x * jax.lax.rsqrt(jnp.mean(x * x, axis=-1, keepdims=True) + EPS)


def transformer_block_kernel(
    x_ref, wqkv_ref, wo_ref, w1_ref, w2_ref, w3_ref, cos_ref, sin_ref,
    o_ref,
    x1_ref, yn_ref, acc_ref,
    *, n_head, exact_softmax,
):
    f = pl.program_id(1)
    nf = pl.num_programs(1)

    D = wo_ref.shape[0]
    H = n_head
    hd = D // H
    half = hd // 2
    bf16 = jnp.bfloat16

    # -------- attention branch + FFN setup: once per batch element (first FFN tile) --------
    @pl.when(f == 0)
    def _attention():
        x = x_ref[0]                                          # (S, D) f32
        xn = _rms(x).astype(bf16)                             # g1 folded into wqkv rows

        # Fused QKV projection: one wide bf16 MXU matmul, f32 accumulation.  q/k columns are
        # pre-permuted (evens-first, rotate-half form) and q is pre-scaled by 1/sqrt(head_dim).
        qkv = jnp.dot(xn, wqkv_ref[...], preferred_element_type=jnp.float32)   # (S, 3D)

        cos = cos_ref[...]                                    # (S, hd)
        sin = sin_ref[...]                                    # (S, hd) = [-sin | +sin]

        def rope(t):                                          # (S, hd), rotate-half form
            return t * cos + pltpu.roll(t, half, axis=1) * sin

        # Statically-unrolled head loop of 2-D matmuls on lane slices (no stack relayout).
        ctx_heads = []
        for h in range(H):
            q_h = rope(qkv[:, h * hd:(h + 1) * hd]).astype(bf16)
            k_h = rope(qkv[:, D + h * hd:D + (h + 1) * hd]).astype(bf16)
            v_h = qkv[:, 2 * D + h * hd:2 * D + (h + 1) * hd].astype(bf16)

            # scores: contract head_dim of q against head_dim of k (scale already folded)
            s = jax.lax.dot_general(q_h, k_h, (((1,), (1,)), ((), ())),
                                    preferred_element_type=jnp.float32)        # (S, S)
            s = s - jnp.max(s, axis=-1, keepdims=True)
            e = jnp.exp(s)
            denom = jnp.sum(e, axis=-1, keepdims=True)
            if exact_softmax:
                p = e / denom
            else:
                p = e * pl.reciprocal(denom, approx=True)     # EUP slot, ~1e-3 rel err
            ctx_heads.append(
                jnp.dot(p.astype(bf16), v_h,
                        preferred_element_type=jnp.float32).astype(bf16))      # (S, hd)

        # Head merge on the lane axis -> single output projection with K = H*hd = D
        # (fills the 256-deep MXU); ls1 is folded into the wo columns.
        ctx = ctx_heads[0] if H == 1 else jnp.concatenate(ctx_heads, axis=-1)  # (S, D)
        attn = jnp.dot(ctx, wo_ref[...], preferred_element_type=jnp.float32)   # (S, D)

        x1 = x + attn                                         # residual (dropout = identity, eval)
        x1_ref[...] = x1
        yn_ref[...] = _rms(x1).astype(bf16)                   # g2 folded into w1/w2 rows
        acc_ref[...] = jnp.zeros_like(acc_ref)

    # -------- SwiGLU FFN: accumulated over hidden-dim tiles (reduction grid axis) --------
    yn = yn_ref[...]                                           # (S, D) bf16
    h1 = jnp.dot(yn, w1_ref[...], preferred_element_type=jnp.float32)   # (S, tf)
    h2 = jnp.dot(yn, w2_ref[...], preferred_element_type=jnp.float32)   # (S, tf)
    hidden = (h1 * jax.nn.sigmoid(h1) * h2).astype(bf16)       # SiLU(w1 x) * (w2 x), one EUP op
    acc_ref[...] += jnp.dot(hidden, w3_ref[...], preferred_element_type=jnp.float32)

    @pl.when(f == nf - 1)
    def _finalize():
        # ls2 is folded into the w3 columns.
        o_ref[0] = (x1_ref[...] + acc_ref[...]).astype(o_ref.dtype)


def _tpu_vmem_capacity_bytes():
    """Per-core VMEM capacity; conservative 128 MiB default if the query is unavailable."""
    try:
        return int(pltpu.get_tpu_info().vmem_capacity_bytes)
    except Exception:   # perf-tuning query only: any failure -> v5e/v6e default
        return 128 * 1024 * 1024


def transformer_block(x, p, *, n_head, ffn_tile=256, exact_softmax=False):
    B, S, D = x.shape
    assert D % n_head == 0
    hd = D // n_head
    F = p["w3_f"].shape[0]
    tf = min(ffn_tile, F)
    assert F % tf == 0 and tf % 128 == 0
    nf = F // tf

    # Per-generation VMEM budget: ~40 MiB scoped limit + single-buffered big weights on
    # 64 MiB/TC parts (v7x); ~100 MiB + default double buffering on 128 MiB parts (v5e/v6e).
    # Residency at the test shapes: wqkv+wo bf16 ~0.5 MiB, 2x double-buffered FFN tiles
    # ~0.8 MiB, 2x (1,S,D) I/O blocks ~0.5 MiB, 3 (S,D) scratch ~0.3 MiB, live (S,3D)/(S,S)
    # intermediates ~0.5 MiB -> well under both limits.
    vmem_cap = _tpu_vmem_capacity_bytes()
    small_vmem = vmem_cap <= 80 * 1024 * 1024
    vmem_limit = (40 << 20) if small_vmem else (100 << 20)
    big_weight_kw = dict(pipeline_mode=pl.Buffered(1)) if small_vmem else {}

    kernel = functools.partial(transformer_block_kernel, n_head=n_head,
                               exact_softmax=exact_softmax)

    grid_spec = pltpu.PrefetchScalarGridSpec(
        num_scalar_prefetch=0,
        grid=(B, nf),                                   # FFN-hidden reduction axis last
        in_specs=[
            pl.BlockSpec((1, S, D), lambda b, f: (b, 0, 0)),                   # x
            pl.BlockSpec((D, 3 * D), lambda b, f: (0, 0), **big_weight_kw),    # fused q|k|v
            pl.BlockSpec((D, D), lambda b, f: (0, 0), **big_weight_kw),        # out proj (ls1 folded)
            pl.BlockSpec((D, tf), lambda b, f: (0, f)),                        # w1 tile (g2 folded)
            pl.BlockSpec((D, tf), lambda b, f: (0, f)),                        # w2 tile (g2 folded)
            pl.BlockSpec((tf, D), lambda b, f: (f, 0)),                        # w3 tile (ls2 folded)
            pl.BlockSpec((S, hd), lambda b, f: (0, 0)),                        # cos
            pl.BlockSpec((S, hd), lambda b, f: (0, 0)),                        # signed sin
        ],
        out_specs=pl.BlockSpec((1, S, D), lambda b, f: (b, 0, 0)),
        scratch_shapes=[
            pltpu.VMEM((S, D), jnp.float32),    # x1: attention-branch residual
            pltpu.VMEM((S, D), jnp.bfloat16),   # rmsnorm(x1), reused by every FFN tile
            pltpu.VMEM((S, D), jnp.float32),    # FFN accumulator
        ],
    )
    return pl.pallas_call(
        kernel,
        out_shape=jax.ShapeDtypeStruct((B, S, D), x.dtype),
        grid_spec=grid_spec,
        compiler_params=pltpu.CompilerParams(
            # TODO(synk): on v7x consider pltpu.CORE_PARALLEL on the batch axis (per-chip B a
            # multiple of 2) to shard explicitly across the two TensorCores.
            dimension_semantics=("parallel", "arbitrary"),
            vmem_limit_bytes=vmem_limit,
        ),
    )(x, p["wqkv"], p["wo_f"], p["w1_f"], p["w2_f"], p["w3_f"], p["cos_hd"], p["sin_hd"])


# ------------------------ pure-JAX reference (PyTorch semantics, f32) ------------------------
def reference_block(x, p, *, n_head, theta=10000.0):
    B, S, D = x.shape
    hd = D // n_head

    def rope(t):  # t: (B, S, H, hd), interleaved even/odd RoPE as in the PyTorch module
        pos = jnp.arange(S, dtype=jnp.float32)
        freqs = 1.0 / theta ** (jnp.arange(0, hd, 2, dtype=jnp.float32) / hd)
        ang = jnp.outer(pos, freqs)
        cos = jnp.cos(ang)[None, :, None, :]
        sin = jnp.sin(ang)[None, :, None, :]
        te, to = t[..., ::2], t[..., 1::2]
        rot = jnp.stack([te * cos - to * sin, to * cos + te * sin], axis=-1)
        return rot.reshape(t.shape)

    def rms(v, g):
        return v * jax.lax.rsqrt(jnp.mean(v * v, axis=-1, keepdims=True) + EPS) * g

    with jax.default_matmul_precision("highest"):
        xn = rms(x, p["g1"][0])
        q = (xn @ p["wq"]).reshape(B, S, n_head, hd)
        k = (xn @ p["wk"]).reshape(B, S, n_head, hd)
        v = (xn @ p["wv"]).reshape(B, S, n_head, hd)
        q, k = rope(q), rope(k)
        q, k, v = (jnp.swapaxes(t, 1, 2) for t in (q, k, v))     # (B, H, S, hd)
        s = jnp.einsum("bhqd,bhkd->bhqk", q, k) / jnp.sqrt(float(hd))
        pr = jax.nn.softmax(s, axis=-1)
        o = jnp.einsum("bhqk,bhkd->bhqd", pr, v)
        o = jnp.swapaxes(o, 1, 2).reshape(B, S, D) @ p["wo"]
        x1 = x + o * p["ls1"][0]
        yn = rms(x1, p["g2"][0])
        hid = jax.nn.silu(yn @ p["w1"]) * (yn @ p["w2"])
        return x1 + (hid @ p["w3"]) * p["ls2"][0]


def make_params(key, *, d_model, n_head, dim_feedforward, theta=10000.0, seq_len=128):
    hd = d_model // n_head
    keys = jax.random.split(key, 11)
    std = 0.02
    wq = jax.random.normal(keys[0], (d_model, d_model), jnp.float32) * std
    wk = jax.random.normal(keys[1], (d_model, d_model), jnp.float32) * std
    wv = jax.random.normal(keys[2], (d_model, d_model), jnp.float32) * std
    wo = jax.random.normal(keys[3], (d_model, d_model), jnp.float32) * std
    w1 = jax.random.normal(keys[4], (d_model, dim_feedforward), jnp.float32) * std
    w2 = jax.random.normal(keys[5], (d_model, dim_feedforward), jnp.float32) * std
    w3 = jax.random.normal(keys[6], (dim_feedforward, d_model), jnp.float32) * std
    # LayerScale init is 1e-5 in the module; use O(1) "trained" gammas (and non-trivial
    # RMSNorm gains) so the correctness check is sensitive to every branch and every fold.
    ls1 = 1.0 + 0.1 * jax.random.normal(keys[7], (1, d_model), jnp.float32)
    ls2 = 1.0 + 0.1 * jax.random.normal(keys[8], (1, d_model), jnp.float32)
    g1 = 1.0 + 0.1 * jax.random.normal(keys[9], (1, d_model), jnp.float32)
    g2 = 1.0 + 0.1 * jax.random.normal(keys[10], (1, d_model), jnp.float32)

    # Per-head "evens first, odds second" column permutation of the q/k projections
    # (turns the module's interleaved RoPE into rotate-half form inside the kernel).
    perm = jnp.concatenate(
        [jnp.concatenate([jnp.arange(0, hd, 2), jnp.arange(1, hd, 2)]) + h * hd
         for h in range(n_head)]
    )
    scale = 1.0 / math.sqrt(hd)

    # Kernel-layout weights: g1/g2 folded into rows, ls1/ls2 folded into columns, RoPE
    # permutation + 1/sqrt(head_dim) folded into q/k; stored bf16 (MXU operands), f32 accum.
    wqkv = (g1[0][:, None]
            * jnp.concatenate([wq[:, perm] * scale, wk[:, perm], wv], axis=1)
            ).astype(jnp.bfloat16)                                     # (D, 3D)
    wo_f = (wo * ls1).astype(jnp.bfloat16)                             # (D, D)
    w1_f = (g2[0][:, None] * w1).astype(jnp.bfloat16)                  # (D, F)
    w2_f = (g2[0][:, None] * w2).astype(jnp.bfloat16)                  # (D, F)
    w3_f = (w3 * ls2).astype(jnp.bfloat16)                             # (F, D)

    pos = jnp.arange(seq_len, dtype=jnp.float32)
    freqs = 1.0 / theta ** (jnp.arange(0, hd, 2, dtype=jnp.float32) / hd)
    ang = jnp.outer(pos, freqs)                                        # (S, hd//2)
    cos_hd = jnp.concatenate([jnp.cos(ang), jnp.cos(ang)], axis=1)     # (S, hd)
    sin_hd = jnp.concatenate([-jnp.sin(ang), jnp.sin(ang)], axis=1)    # (S, hd), signed

    return {
        # raw f32 weights for the reference
        "wq": wq, "wk": wk, "wv": wv, "wo": wo, "w1": w1, "w2": w2, "w3": w3,
        "g1": g1, "g2": g2, "ls1": ls1, "ls2": ls2,
        # kernel-layout bf16 weights / f32 RoPE tables
        "wqkv": wqkv, "wo_f": wo_f, "w1_f": w1_f, "w2_f": w2_f, "w3_f": w3_f,
        "cos_hd": cos_hd, "sin_hd": sin_hd,
    }


if __name__ == "__main__":
    B, S = 2, 128
    d_model, n_head, dim_ff = 256, 2, 512      # head_dim = 128 -> (8,128)-aligned layouts

    key = jax.random.PRNGKey(0)
    kx, kp = jax.random.split(key)
    x = jax.random.normal(kx, (B, S, d_model), jnp.float32)
    params = make_params(kp, d_model=d_model, n_head=n_head,
                         dim_feedforward=dim_ff, seq_len=S)

    out = jax.block_until_ready(transformer_block(x, params, n_head=n_head))
    ref = jax.block_until_ready(reference_block(x, params, n_head=n_head))

    # Error measured relative to the magnitude of the block's contribution (out - x).
    # bf16 matmul operands + approx reciprocal give ~1e-2 quantization error vs the f32
    # reference; 4e-2 still catches any structural mistake (those are O(1) here).
    denom = jnp.max(jnp.abs(ref - x)) + 1e-12
    err = float(jnp.max(jnp.abs(out - ref)) / denom)

    assert out.shape == (B, S, d_model), out.shape
    assert err < 4e-2, err
    print("KERNEL_OK")
</pallas_src>

<mosaic_0001>
module attributes {stable_mosaic.version = 11 : i64} {
  func.func @transformer_block_kernel(%arg0: i32, %arg1: i32, %arg2: memref<1x128x256xf32, #tpu.memory_space<vmem>>, %arg3: memref<256x768xbf16, #tpu.memory_space<vmem>>, %arg4: memref<256x256xbf16, #tpu.memory_space<vmem>>, %arg5: memref<256x256xbf16, #tpu.memory_space<vmem>>, %arg6: memref<256x256xbf16, #tpu.memory_space<vmem>>, %arg7: memref<256x256xbf16, #tpu.memory_space<vmem>>, %arg8: memref<128x128xf32, #tpu.memory_space<vmem>>, %arg9: memref<128x128xf32, #tpu.memory_space<vmem>>, %arg10: memref<1x128x256xf32, #tpu.memory_space<vmem>>, %arg11: memref<128x256xf32, #tpu.memory_space<vmem>>, %arg12: memref<128x256xbf16, #tpu.memory_space<vmem>>, %arg13: memref<128x256xf32, #tpu.memory_space<vmem>>) attributes {dimension_semantics = [#tpu.dimension_semantics<parallel>, #tpu.dimension_semantics<arbitrary>], iteration_bounds = array<i64: 2, 2>, scalar_prefetch = 0 : i64, scratch_operands = 3 : i64, tpu.core_type = #tpu.core_type<tc>, window_params = [{transform_indices = @transform_0, window_bounds = array<i64: 1, 128, 256>}, {pipeline_mode = #tpu.pipeline_mode<synchronous>, transform_indices = @transform_1, window_bounds = array<i64: 256, 768>}, {pipeline_mode = #tpu.pipeline_mode<synchronous>, transform_indices = @transform_2, window_bounds = array<i64: 256, 256>}, {transform_indices = @transform_3, window_bounds = array<i64: 256, 256>}, {transform_indices = @transform_4, window_bounds = array<i64: 256, 256>}, {transform_indices = @transform_5, window_bounds = array<i64: 256, 256>}, {pipeline_mode = #tpu.pipeline_mode<synchronous>, transform_indices = @transform_6, window_bounds = array<i64: 128, 128>}, {pipeline_mode = #tpu.pipeline_mode<synchronous>, transform_indices = @transform_7, window_bounds = array<i64: 128, 128>}, {transform_indices = @transform_8, window_bounds = array<i64: 1, 128, 256>}]} {
    %c0_i32 = arith.constant 0 : i32
    %0 = arith.cmpi eq, %arg1, %c0_i32 : i32
    %1 = arith.extui %0 : i1 to i32
    %c0_i32_0 = arith.constant 0 : i32
    %2 = arith.cmpi ne, %1, %c0_i32_0 : i32
    scf.if %2 {
      %c0_16 = arith.constant 0 : index
      %c0_17 = arith.constant 0 : index
      %c0_18 = arith.constant 0 : index
      %24 = vector.load %arg2[%c0_16, %c0_17, %c0_18] : memref<1x128x256xf32, #tpu.memory_space<vmem>>, vector<1x128x256xf32>
      %25 = vector.shape_cast %24 : vector<1x128x256xf32> to vector<128x256xf32>
      %26 = arith.mulf %25, %25 : vector<128x256xf32>
      %cst_19 = arith.constant dense<0.000000e+00> : vector<128xf32>
      %27 = vector.multi_reduction <add>, %26, %cst_19 [1] : vector<128x256xf32> to vector<128xf32>
      %28 = vector.shape_cast %27 : vector<128xf32> to vector<128x1xf32>
      %cst_20 = arith.constant 2.560000e+02 : f32
      %29 = vector.broadcast %cst_20 : f32 to vector<128x1xf32>
      %30 = arith.divf %28, %29 : vector<128x1xf32>
      %cst_21 = arith.constant 1.1920929E-7 : f32
      %31 = vector.broadcast %cst_21 : f32 to vector<128x1xf32>
      %32 = arith.addf %30, %31 : vector<128x1xf32>
      %33 = math.rsqrt %32 : vector<128x1xf32>
      %34 = vector.broadcast %33 : vector<128x1xf32> to vector<128x256xf32>
      %35 = arith.mulf %25, %34 : vector<128x256xf32>
      %36 = arith.truncf %35 : vector<128x256xf32> to vector<128x256xbf16>
      %c0_22 = arith.constant 0 : index
      %c0_23 = arith.constant 0 : index
      %37 = vector.load %arg3[%c0_22, %c0_23] : memref<256x768xbf16, #tpu.memory_space<vmem>>, vector<256x768xbf16>
      %cst_24 = arith.constant dense<0.000000e+00> : vector<128x768xf32>
      %38 = tpu.matmul %36, %37, %cst_24 {dimension_numbers = #tpu.dot_dimension_numbers<[1], [0], [0], [1], [0, 0, 1, 1], [], []>} : vector<128x256xbf16>, vector<256x768xbf16>, vector<128x768xf32> -> vector<128x768xf32>
      %c0_25 = arith.constant 0 : index
      %c0_26 = arith.constant 0 : index
      %39 = vector.load %arg8[%c0_25, %c0_26] : memref<128x128xf32, #tpu.memory_space<vmem>>, vector<128x128xf32>
      %c0_27 = arith.constant 0 : index
      %c0_28 = arith.constant 0 : index
      %40 = vector.load %arg9[%c0_27, %c0_28] : memref<128x128xf32, #tpu.memory_space<vmem>>, vector<128x128xf32>
      %41 = vector.extract_strided_slice %38 {offsets = [0, 0], sizes = [128, 128], strides = [1, 1]} : vector<128x768xf32> to vector<128x128xf32>
      %42 = arith.mulf %41, %39 : vector<128x128xf32>
      %c64_i32 = arith.constant 64 : i32
      %43 = tpu.dynamic_rotate %41 by %c64_i32 dim 1 : vector<128x128xf32>, i32 -> vector<128x128xf32>
      %44 = arith.mulf %43, %40 : vector<128x128xf32>
      %45 = arith.addf %42, %44 : vector<128x128xf32>
      %46 = arith.truncf %45 : vector<128x128xf32> to vector<128x128xbf16>
      %47 = vector.extract_strided_slice %38 {offsets = [0, 256], sizes = [128, 128], strides = [1, 1]} : vector<128x768xf32> to vector<128x128xf32>
      %48 = arith.mulf %47, %39 : vector<128x128xf32>
      %c64_i32_29 = arith.constant 64 : i32
      %49 = tpu.dynamic_rotate %47 by %c64_i32_29 dim 1 : vector<128x128xf32>, i32 -> vector<128x128xf32>
      %50 = arith.mulf %49, %40 : vector<128x128xf32>
      %51 = arith.addf %48, %50 : vector<128x128xf32>
      %52 = arith.truncf %51 : vector<128x128xf32> to vector<128x128xbf16>
      %53 = vector.extract_strided_slice %38 {offsets = [0, 512], sizes = [128, 128], strides = [1, 1]} : vector<128x768xf32> to vector<128x128xf32>
      %54 = arith.truncf %53 : vector<128x128xf32> to vector<128x128xbf16>
      %cst_30 = arith.constant dense<0.000000e+00> : vector<128x128xf32>
      %55 = tpu.matmul %46, %52, %cst_30 {dimension_numbers = #tpu.dot_dimension_numbers<[1], [1], [0], [0], [0, 0, 1, 0], [], []>} : vector<128x128xbf16>, vector<128x128xbf16>, vector<128x128xf32> -> vector<128x128xf32>
      %cst_31 = arith.constant dense<0xFF800000> : vector<128xf32>
      %56 = vector.multi_reduction <maximumf>, %55, %cst_31 [1] : vector<128x128xf32> to vector<128xf32>
      %57 = vector.shape_cast %56 : vector<128xf32> to vector<128x1xf32>
      %58 = vector.broadcast %57 : vector<128x1xf32> to vector<128x128xf32>
      %59 = arith.subf %55, %58 : vector<128x128xf32>
      %60 = math.exp %59 : vector<128x128xf32>
      %cst_32 = arith.constant dense<0.000000e+00> : vector<128xf32>
      %61 = vector.multi_reduction <add>, %60, %cst_32 [1] : vector<128x128xf32> to vector<128xf32>
      %62 = vector.shape_cast %61 : vector<128xf32> to vector<128x1xf32>
      %63 = tpu.reciprocal %62 {approx = true} : vector<128x1xf32> -> vector<128x1xf32>
      %64 = vector.broadcast %63 : vector<128x1xf32> to vector<128x128xf32>
      %65 = arith.mulf %60, %64 : vector<128x128xf32>
      %66 = arith.truncf %65 : vector<128x128xf32> to vector<128x128xbf16>
      %cst_33 = arith.constant dense<0.000000e+00> : vector<128x128xf32>
      %67 = tpu.matmul %66, %54, %cst_33 {dimension_numbers = #tpu.dot_dimension_numbers<[1], [0], [0], [1], [0, 0, 1, 1], [], []>} : vector<128x128xbf16>, vector<128x128xbf16>, vector<128x128xf32> -> vector<128x128xf32>
      %68 = arith.truncf %67 : vector<128x128xf32> to vector<128x128xbf16>
      %69 = vector.extract_strided_slice %38 {offsets = [0, 128], sizes = [128, 128], strides = [1, 1]} : vector<128x768xf32> to vector<128x128xf32>
      %70 = arith.mulf %69, %39 : vector<128x128xf32>
      %c64_i32_34 = arith.constant 64 : i32
      %71 = tpu.dynamic_rotate %69 by %c64_i32_34 dim 1 : vector<128x128xf32>, i32 -> vector<128x128xf32>
      %72 = arith.mulf %71, %40 : vector<128x128xf32>
      %73 = arith.addf %70, %72 : vector<128x128xf32>
      %74 = arith.truncf %73 : vector<128x128xf32> to vector<128x128xbf16>
      %75 = vector.extract_strided_slice %38 {offsets = [0, 384], sizes = [128, 128], strides = [1, 1]} : vector<128x768xf32> to vector<128x128xf32>
      %76 = arith.mulf %75, %39 : vector<128x128xf32>
      %c64_i32_35 = arith.constant 64 : i32
      %77 = tpu.dynamic_rotate %75 by %c64_i32_35 dim 1 : vector<128x128xf32>, i32 -> vector<128x128xf32>
      %78 = arith.mulf %77, %40 : vector<128x128xf32>
      %79 = arith.addf %76, %78 : vector<128x128xf32>
      %80 = arith.truncf %79 : vector<128x128xf32> to vector<128x128xbf16>
      %81 = vector.extract_strided_slice %38 {offsets = [0, 640], sizes = [128, 128], strides = [1, 1]} : vector<128x768xf32> to vector<128x128xf32>
      %82 = arith.truncf %81 : vector<128x128xf32> to vector<128x128xbf16>
      %cst_36 = arith.constant dense<0.000000e+00> : vector<128x128xf32>
      %83 = tpu.matmul %74, %80, %cst_36 {dimension_numbers = #tpu.dot_dimension_numbers<[1], [1], [0], [0], [0, 0, 1, 0], [], []>} : vector<128x128xbf16>, vector<128x128xbf16>, vector<128x128xf32> -> vector<128x128xf32>
      %cst_37 = arith.constant dense<0xFF800000> : vector<128xf32>
      %84 = vector.multi_reduction <maximumf>, %83, %cst_37 [1] : vector<128x128xf32> to vector<128xf32>
      %85 = vector.shape_cast %84 : vector<128xf32> to vector<128x1xf32>
      %86 = vector.broadcast %85 : vector<128x1xf32> to vector<128x128xf32>
      %87 = arith.subf %83, %86 : vector<128x128xf32>
      %88 = math.exp %87 : vector<128x128xf32>
      %cst_38 = arith.constant dense<0.000000e+00> : vector<128xf32>
      %89 = vector.multi_reduction <add>, %88, %cst_38 [1] : vector<128x128xf32> to vector<128xf32>
      %90 = vector.shape_cast %89 : vector<128xf32> to vector<128x1xf32>
      %91 = tpu.reciprocal %90 {approx = true} : vector<128x1xf32> -> vector<128x1xf32>
      %92 = vector.broadcast %91 : vector<128x1xf32> to vector<128x128xf32>
      %93 = arith.mulf %88, %92 : vector<128x128xf32>
      %94 = arith.truncf %93 : vector<128x128xf32> to vector<128x128xbf16>
      %cst_39 = arith.constant dense<0.000000e+00> : vector<128x128xf32>
      %95 = tpu.matmul %94, %82, %cst_39 {dimension_numbers = #tpu.dot_dimension_numbers<[1], [0], [0], [1], [0, 0, 1, 1], [], []>} : vector<128x128xbf16>, vector<128x128xbf16>, vector<128x128xf32> -> vector<128x128xf32>
      %96 = arith.truncf %95 : vector<128x128xf32> to vector<128x128xbf16>
      %97 = tpu.concatenate %68, %96 in 1 : vector<128x128xbf16>, vector<128x128xbf16> -> vector<128x256xbf16>
      %c0_40 = arith.constant 0 : index
      %c0_41 = arith.constant 0 : index
      %98 = vector.load %arg4[%c0_40, %c0_41] : memref<256x256xbf16, #tpu.memory_space<vmem>>, vector<256x256xbf16>
      %cst_42 = arith.constant dense<0.000000e+00> : vector<128x256xf32>
      %99 = tpu.matmul %97, %98, %cst_42 {dimension_numbers = #tpu.dot_dimension_numbers<[1], [0], [0], [1], [0, 0, 1, 1], [], []>} : vector<128x256xbf16>, vector<256x256xbf16>, vector<128x256xf32> -> vector<128x256xf32>
      %100 = arith.addf %25, %99 : vector<128x256xf32>
      %c0_43 = arith.constant 0 : index
      %c0_44 = arith.constant 0 : index
      %101 = vector.load %arg11[%c0_43, %c0_44] : memref<128x256xf32, #tpu.memory_space<vmem>>, vector<128x256xf32>
      tpu.vector_store %arg11[%c0_43, %c0_44], %100 {strides = array<i32>} : memref<128x256xf32, #tpu.memory_space<vmem>>, vector<128x256xf32>,
      %102 = arith.mulf %100, %100 : vector<128x256xf32>
      %cst_45 = arith.constant dense<0.000000e+00> : vector<128xf32>
      %103 = vector.multi_reduction <add>, %102, %cst_45 [1] : vector<128x256xf32> to vector<128xf32>
      %104 = vector.shape_cast %103 : vector<128xf32> to vector<128x1xf32>
      %cst_46 = arith.constant 2.560000e+02 : f32
      %105 = vector.broadcast %cst_46 : f32 to vector<128x1xf32>
      %106 = arith.divf %104, %105 : vector<128x1xf32>
      %cst_47 = arith.constant 1.1920929E-7 : f32
      %107 = vector.broadcast %cst_47 : f32 to vector<128x1xf32>
      %108 = arith.addf %106, %107 : vector<128x1xf32>
      %109 = math.rsqrt %108 : vector<128x1xf32>
      %110 = vector.broadcast %109 : vector<128x1xf32> to vector<128x256xf32>
      %111 = arith.mulf %100, %110 : vector<128x256xf32>
      %112 = arith.truncf %111 : vector<128x256xf32> to vector<128x256xbf16>
      %c0_48 = arith.constant 0 : index
      %c0_49 = arith.constant 0 : index
      %113 = vector.load %arg12[%c0_48, %c0_49] : memref<128x256xbf16, #tpu.memory_space<vmem>>, vector<128x256xbf16>
      tpu.vector_store %arg12[%c0_48, %c0_49], %112 {strides = array<i32>} : memref<128x256xbf16, #tpu.memory_space<vmem>>, vector<128x256xbf16>,
      %cst_50 = arith.constant 0.000000e+00 : f32
      %114 = vector.broadcast %cst_50 : f32 to vector<128x256xf32>
      %c0_51 = arith.constant 0 : index
      %c0_52 = arith.constant 0 : index
      %115 = vector.load %arg13[%c0_51, %c0_52] : memref<128x256xf32, #tpu.memory_space<vmem>>, vector<128x256xf32>
      tpu.vector_store %arg13[%c0_51, %c0_52], %114 {strides = array<i32>} : memref<128x256xf32, #tpu.memory_space<vmem>>, vector<128x256xf32>,
    } else {
    }
    %c0 = arith.constant 0 : index
    %c0_1 = arith.constant 0 : index
    %3 = vector.load %arg12[%c0, %c0_1] : memref<128x256xbf16, #tpu.memory_space<vmem>>, vector<128x256xbf16>
    %c0_2 = arith.constant 0 : index
    %c0_3 = arith.constant 0 : index
    %4 = vector.load %arg5[%c0_2, %c0_3] : memref<256x256xbf16, #tpu.memory_space<vmem>>, vector<256x256xbf16>
    %cst = arith.constant dense<0.000000e+00> : vector<128x256xf32>
    %5 = tpu.matmul %3, %4, %cst {dimension_numbers = #tpu.dot_dimension_numbers<[1], [0], [0], [1], [0, 0, 1, 1], [], []>} : vector<128x256xbf16>, vector<256x256xbf16>, vector<128x256xf32> -> vector<128x256xf32>
    %c0_4 = arith.constant 0 : index
    %c0_5 = arith.constant 0 : index
    %6 = vector.load %arg6[%c0_4, %c0_5] : memref<256x256xbf16, #tpu.memory_space<vmem>>, vector<256x256xbf16>
    %cst_6 = arith.constant dense<0.000000e+00> : vector<128x256xf32>
    %7 = tpu.matmul %3, %6, %cst_6 {dimension_numbers = #tpu.dot_dimension_numbers<[1], [0], [0], [1], [0, 0, 1, 1], [], []>} : vector<128x256xbf16>, vector<256x256xbf16>, vector<128x256xf32> -> vector<128x256xf32>
    %8 = arith.negf %5 : vector<128x256xf32>
    %9 = math.exp %8 : vector<128x256xf32>
    %cst_7 = arith.constant 1.000000e+00 : f32
    %10 = vector.broadcast %cst_7 : f32 to vector<128x256xf32>
    %11 = arith.addf %10, %9 : vector<128x256xf32>
    %12 = arith.divf %10, %11 : vector<128x256xf32>
    %13 = arith.mulf %5, %12 : vector<128x256xf32>
    %14 = arith.mulf %13, %7 : vector<128x256xf32>
    %15 = arith.truncf %14 : vector<128x256xf32> to vector<128x256xbf16>
    %c0_8 = arith.constant 0 : index
    %c0_9 = arith.constant 0 : index
    %16 = vector.load %arg13[%c0_8, %c0_9] : memref<128x256xf32, #tpu.memory_space<vmem>>, vector<128x256xf32>
    %c0_10 = arith.constant 0 : index
    %c0_11 = arith.constant 0 : index
    %17 = vector.load %arg7[%c0_10, %c0_11] : memref<256x256xbf16, #tpu.memory_space<vmem>>, vector<256x256xbf16>
    %cst_12 = arith.constant dense<0.000000e+00> : vector<128x256xf32>
    %18 = tpu.matmul %15, %17, %cst_12 {dimension_numbers = #tpu.dot_dimension_numbers<[1], [0], [0], [1], [0, 0, 1, 1], [], []>} : vector<128x256xbf16>, vector<256x256xbf16>, vector<128x256xf32> -> vector<128x256xf32>
    %19 = arith.addf %16, %18 : vector<128x256xf32>
    %c0_13 = arith.constant 0 : index
    %c0_14 = arith.constant 0 : index
    %20 = vector.load %arg13[%c0_13, %c0_14] : memref<128x256xf32, #tpu.memory_space<vmem>>, vector<128x256xf32>
    tpu.vector_store %arg13[%c0_13, %c0_14], %19 {strides = array<i32>} : memref<128x256xf32, #tpu.memory_space<vmem>>, vector<128x256xf32>,
    %c1_i32 = arith.constant 1 : i32
    %21 = arith.cmpi eq, %arg1, %c1_i32 : i32
    %22 = arith.extui %21 : i1 to i32
    %c0_i32_15 = arith.constant 0 : i32
    %23 = arith.cmpi ne, %22, %c0_i32_15 : i32
    scf.if %23 {
      %c0_16 = arith.constant 0 : index
      %c0_17 = arith.constant 0 : index
      %24 = vector.load %arg11[%c0_16, %c0_17] : memref<128x256xf32, #tpu.memory_space<vmem>>, vector<128x256xf32>
      %c0_18 = arith.constant 0 : index
      %c0_19 = arith.constant 0 : index
      %25 = vector.load %arg13[%c0_18, %c0_19] : memref<128x256xf32, #tpu.memory_space<vmem>>, vector<128x256xf32>
      %26 = arith.addf %24, %25 : vector<128x256xf32>
      %c0_20 = arith.constant 0 : index
      %c0_21 = arith.constant 0 : index
      %c0_22 = arith.constant 0 : index
      %27 = vector.load %arg10[%c0_20, %c0_21, %c0_22] : memref<1x128x256xf32, #tpu.memory_space<vmem>>, vector<1x128x256xf32>
      %28 = vector.shape_cast %27 : vector<1x128x256xf32> to vector<128x256xf32>
      %29 = vector.shape_cast %26 : vector<128x256xf32> to vector<1x128x256xf32>
      tpu.vector_store %arg10[%c0_20, %c0_21, %c0_22], %29 {strides = array<i32>} : memref<1x128x256xf32, #tpu.memory_space<vmem>>, vector<1x128x256xf32>,
    } else {
    }
    return
  }
  func.func @transform_0(%arg0: i32, %arg1: i32) -> (i32, i32, i32) {
    %c0_i32 = arith.constant 0 : i32
    %c0_i32_0 = arith.constant 0 : i32
    %c0_i32_1 = arith.constant 0 : i32
    return %arg0, %c0_i32, %c0_i32_0 : i32, i32, i32
  }
  func.func @transform_1(%arg0: i32, %arg1: i32) -> (i32, i32) {
    %c0_i32 = arith.constant 0 : i32
    %c0_i32_0 = arith.constant 0 : i32
    %c0_i32_1 = arith.constant 0 : i32
    return %c0_i32, %c0_i32_0 : i32, i32
  }
  func.func @transform_2(%arg0: i32, %arg1: i32) -> (i32, i32) {
    %c0_i32 = arith.constant 0 : i32
    %c0_i32_0 = arith.constant 0 : i32
    %c0_i32_1 = arith.constant 0 : i32
    return %c0_i32, %c0_i32_0 : i32, i32
  }
  func.func @transform_3(%arg0: i32, %arg1: i32) -> (i32, i32) {
    %c0_i32 = arith.constant 0 : i32
    %c0_i32_0 = arith.constant 0 : i32
    return %c0_i32, %arg1 : i32, i32
  }
  func.func @transform_4(%arg0: i32, %arg1: i32) -> (i32, i32) {
    %c0_i32 = arith.constant 0 : i32
    %c0_i32_0 = arith.constant 0 : i32
    return %c0_i32, %arg1 : i32, i32
  }
  func.func @transform_5(%arg0: i32, %arg1: i32) -> (i32, i32) {
    %c0_i32 = arith.constant 0 : i32
    %c0_i32_0 = arith.constant 0 : i32
    return %arg1, %c0_i32 : i32, i32
  }
  func.func @transform_6(%arg0: i32, %arg1: i32) -> (i32, i32) {
    %c0_i32 = arith.constant 0 : i32
    %c0_i32_0 = arith.constant 0 : i32
    %c0_i32_1 = arith.constant 0 : i32
    return %c0_i32, %c0_i32_0 : i32, i32
  }
  func.func @transform_7(%arg0: i32, %arg1: i32) -> (i32, i32) {
    %c0_i32 = arith.constant 0 : i32
    %c0_i32_0 = arith.constant 0 : i32
    %c0_i32_1 = arith.constant 0 : i32
    return %c0_i32, %c0_i32_0 : i32, i32
  }
  func.func @transform_8(%arg0: i32, %arg1: i32) -> (i32, i32, i32) {
    %c0_i32 = arith.constant 0 : i32
    %c0_i32_0 = arith.constant 0 : i32
    %c0_i32_1 = arith.constant 0 : i32
    return %arg0, %c0_i32, %c0_i32_0 : i32, i32, i32
  }
}

</mosaic_0001>

<bundles_post_ra>
// kernel: tpu_custom_call.1
= control target key start
LH: loop header
LB: loop body
LE: loop exit
PB: predicated region body
PF: predicated region fallthrough
CT: control target
= control target key end

     0   :  { %s8975_s0 = inlined_call_operand.hbm [shape: f32[2,128,256], index: 0, kind: input, shape index: {}]   ;;  %s8976_s1 = inlined_call_operand.hbm [shape: bf16[256,768], index: 1, kind: input, shape index: {}]   ;;  %s8977_s2 = inlined_call_operand.hbm [shape: bf16[256,256], index: 2, kind: input, shape index: {}]   ;;  %s8978_s3 = inlined_call_operand.hbm [shape: bf16[256,512], index: 3, kind: input, shape index: {}]   ;;  %s8979_s4 = inlined_call_operand.hbm [shape: bf16[256,512], index: 4, kind: input, shape index: {}]   ;;  %s8980_s5 = inlined_call_operand.hbm [shape: bf16[512,256], index: 5, kind: input, shape index: {}]   ;;  %s8981_s6 = inlined_call_operand.hbm [shape: f32[128,128], index: 6, kind: input, shape index: {}]   ;;  %s8982_s7 = inlined_call_operand.hbm [shape: f32[128,128], index: 7, kind: input, shape index: {}]   ;;  %s8983_s8 = inlined_call_operand.hbm [shape: f32[2,128,256], index: 8, kind: output, shape index: {}]  }
   0x1   :  { %9060 = sst [smem:[#allocation78_spill]] %s8975_s0 }
   0x2   :  { %9061 = sst [smem:[#allocation79_spill]] %s8976_s1 }
   0x3   :  { %9062 = sst [smem:[#allocation80_spill]] %s8977_s2 }
   0x4   :  { %9063 = sst [smem:[#allocation81_spill]] %s8978_s3 }
   0x5   :  { %9064 = sst [smem:[#allocation82_spill]] %s8979_s4 }
   0x6   :  { %9065 = sst [smem:[#allocation83_spill]] %s8980_s5 }
   0x7   :  { %9066 = sst [smem:[#allocation84_spill]] %s8981_s6 }
   0x8   :  { %9067 = sst [smem:[#allocation85_spill]] %s8982_s7 }
   0x9   :  { %9068 = sst [smem:[#allocation86_spill]] %s8983_s8 }
   0xa   :  { %13 = vsyncpa [#allocation6], 0 }
   0xb   :  { %15 = vsyncpa [#allocation6 + $0x1], 0 }
   0xc   :  { %16 = vsyncpa [#allocation9], 0 }
   0xd   :  { %17 = vsyncpa [#allocation12], 0 }
   0xe   :  { %19 = vsyncpa [#allocation12 + $0x1], 0 }
   0xf   :  { %20 = vsyncpa [#allocation15], 0 }
  0x10   :  { %22 = vsyncpa [#allocation15 + $0x1], 0 }
  0x11   :  { %23 = vsyncpa [#allocation18], 0 }
  0x12   :  { %24 = vsyncpa [#allocation7], 0 }
  0x13   :  { %26 = vsyncpa [#allocation7 + $0x1], 0  ;;  %s6798_s27 = smov 0   ;;  %s6800_s28 = smov 0  }
  0x14   :  { %s6802_s29 = smov 0   ;;  %s6804_s30 = smov 0  }
  0x15   :  { %s6806_s9 = smov 0   ;;  %s6808_s10 = smov 0  }
  0x16   :  { %s6810_s11 = smov 0   ;;  %s6812_s12 = smov 0  }
  0x17   :  { %s6814_s13 = smov 0   ;;  %s6816_s14 = smov 0  }
  0x18   :  { %s6818_s15 = smov 0  }
  0x19 LB: > { %9069 = sst [smem:[#allocation27_spill]] %s6696_s28  ;;  %s6852_s16 = sadd.s32 4294967295, %s6732_s15   ;;  %s6732_s15 = sphi %s6818_s15, %s32_s15   ;;  %s6728_s14 = sphi %s6816_s14, %s9226_s14   ;;  %s6724_s13 = sphi %s6814_s13, %s9221_s13   ;;  %s6720_s12 = sphi %s6812_s12, %s9225_s12   ;;  %s6716_s11 = sphi %s6810_s11, %s9220_s11   ;;  %s6712_s10 = sphi %s6808_s10, %s9224_s10   ;;  %s6708_s9 = sphi %s6806_s9, %s9223_s9   ;;  %s6704_s30 = sphi %s6804_s30, %s9222_s30   ;;  %s6700_s29 = sphi %s6802_s29, %s9219_s29   ;;  %s6696_s28 = sphi %s6800_s28, %s9218_s28   ;;  %s6692_s27 = sphi %s6798_s27, %s9217_s27  }
  0x1a   : > { %9070 = sst [smem:[#allocation28_spill]] %s6700_s29  ;;  %p132_p0 = scmp.ne.s32.totalorder %s6696_s28, %s6692_s27 }
  0x1b   : > { %9071 = sst [smem:[#allocation29_spill]] %s6716_s11  ;;  %p8985_p1 = scmp.eq.s32.totalorder %s6852_s16, 0 }
  0x1c   : > { %9072 = sst [smem:[#allocation30_spill]] %s6720_s12  ;;  %p4980_p3 = scmp.ge.s32.totalorder %s6732_s15, 1 }
  0x1d   : > { %9073 = sst [smem:[#allocation31_spill]] %s6724_s13  ;;  %p263_p4 = scmp.lt.s32.totalorder %s6732_s15, 5 }
  0x1e   : > { %p6861_p5 = por %p132_p0, %p8985_p1  ;;  %s6734_s19 = smov [#allocation8]  }
  0x1f   : > { %p6865_p6 = pnand %p4980_p3, %p263_p4  ;;  %s275_s20 = sshll.u32 %s6734_s19, 4  ;;  %s276_s20 = int_to_ptr.vmem [resolvable:$true] %s275_s20 }
  0x20   : > { %s9074_s17 = scalar_select %p6861_p5, 1, 0 }
  0x21   : > { %s9076_s18 = scalar_select %p6865_p6, 1, 0 }
  0x22   : > { %9075 = sst [smem:[#allocation32_spill]] %s9074_s17  ;;  %p5528_p7 = pneg %p6865_p6 }
  0x23   : > { %9077 = sst [smem:[#allocation33_spill]] %s9076_s18  ;;  %s6735_s22 = smov [#allocation16]  }
  0x24   : > { %p6873_p8 = pnand %p5528_p7, %p8985_p1  ;;  %s301_s23 = sshll.u32 %s6735_s22, 4  ;;  %s302_s23 = int_to_ptr.vmem [resolvable:$true] %s301_s23 }
  0x25   : > { %s9079_s1 = sld [smem:[#allocation79_spill]] }
  0x26   : > { %s9078_s21 = scalar_select %p6873_p8, 1, 0 }
  0x27   : > { %p6885_p10 = pneg %p6873_p8 }
  0x29   : > { %s9080_s19 = scalar_select %p6885_p10, 1, 0 }
  0x2b   : > { %s6358_s26 = scalar_lea.hbm %s9079_s1, 12288 }
  0x2c   : > { %p6359_p9 = scmp.ne.s32.totalorder %s9079_s1, %s6358_s26  ;;  %p6365_p13 = scmp.lt.u32.totalorder %s6358_s26, %s9079_s1 }
  0x2e   : > { %p6361_p11 = pnand %p6885_p10, %p6359_p9 }
  0x30   : > { %p6362_p12 = pneg %p6361_p11 }
  0x32   : > { %p6367_p0 = pnand %p6365_p13, %p6362_p12 }
  0x34   : > { %6370 = shalt.err (!%p6367_p0)
}
  0x35   : > { %s6371_s22 = scalar_lea.vmem %s276_s20, 12288  ;;  %p6379_p2 = scmp.lt.s32.totalorder %s276_s20, %s276_s20 }
  0x36   : > { %p6372_p3 = scmp.ne.s32.totalorder %s276_s20, %s6371_s22  ;;  %p6380_p1 = scmp.lt.s32.totalorder %s6371_s22, %s6371_s22 }
  0x38   : > { %p6374_p4 = pnand %p6372_p3, %p6885_p10  ;;  %p6381_p5 = por %p6380_p1, %p6379_p2 }
  0x3a   : > { %p6375_p7 = pneg %p6374_p4 }
  0x3c   : > { %p6382_p6 = pnand %p6381_p5, %p6375_p7 }
  0x3e   : > { %6385 = shalt.err (!%p6382_p6)
}
  0x3f   : > { %s6736_s8 = smov 384   ;;  %s6737_s24 = smov 24  }
  0x40   : > { %5531 = dma.hbm_to_vmem [thread:$0]  (!%p6873_p8), %s9079_s1, 12288, %s276_s20, [#allocation9], %s6736_s8, %s6736_s8, %s6737_s24  }
  0x41   : > { %s9081_s6 = sld [smem:[#allocation84_spill]] }
  0x47   : > { %s6386_s27 = scalar_lea.hbm %s9081_s6, 2048 }
  0x48   : > { %p6387_p1 = scmp.ne.s32.totalorder %s9081_s6, %s6386_s27  ;;  %p6393_p6 = scmp.lt.u32.totalorder %s6386_s27, %s9081_s6 }
  0x4a   : > { %p6389_p2 = pnand %p6387_p1, %p6885_p10 }
  0x4c   : > { %p6390_p5 = pneg %p6389_p2 }
  0x4e   : > { %p6395_p9 = pnand %p6393_p6, %p6390_p5 }
  0x50   : > { %6398 = shalt.err (!%p6395_p9)
}
  0x51   : > { %s6399_s11 = scalar_lea.vmem %s302_s23, 2048  ;;  %p6407_p0 = scmp.lt.s32.totalorder %s302_s23, %s302_s23 }
  0x52   : > { %p6400_p11 = scmp.ne.s32.totalorder %s302_s23, %s6399_s11  ;;  %p6408_p3 = scmp.lt.s32.totalorder %s6399_s11, %s6399_s11 }
  0x54   : > { %p6402_p12 = pnand %p6400_p11, %p6885_p10  ;;  %p6409_p4 = por %p6408_p3, %p6407_p0 }
  0x56   : > { %p6403_p13 = pneg %p6402_p12 }
  0x58   : > { %p6410_p7 = pnand %p6409_p4, %p6403_p13 }
  0x5a   : > { %6413 = shalt.err (!%p6410_p7)
}
  0x5b   : > { %s8992_s17 = smov 128   ;;  %s8994_s5 = smov 8  }
  0x5c   : > { %5537 = dma.hbm_to_vmem [thread:$0]  (!%p6873_p8), %s9081_s6, 2048, %s302_s23, [#allocation15], %s8992_s17, %s8992_s17, %s8994_s5  }
  0x5d   : > { %p8998_p1 = scmp.eq.s32.totalorder %s6732_s15, 0  ;;  %s41_s8 = sadd.s32 1, %s6724_s13 }
  0x5e   : > { %s119_s24 = sadd.s32 1, %s6700_s29  ;;  %p6925_p2 = scmp.ge.s32.totalorder %s41_s8, 2 }
  0x5f   : > { %p126_p5 = scmp.ne.s32.totalorder %s6700_s29, %s6696_s28  ;;  %p8997_p6 = scmp.lt.s32.totalorder %s6732_s15, 4 }
  0x60   : > { %s9082_s12 = scalar_select %p6925_p2, 1, 0 }
  0x61   : > { %s9228_s8 = smov (%p6925_p2, %s41_s8), 0  ;;  %p128_p9 = por %p126_p5, %p8998_p1 }
  0x62   : > { %9083 = sst [smem:[#allocation34_spill]] %s9228_s8  ;;  %s116_s23 = ssub.s32 %s6724_s13, %s9228_s8 }
  0x63   : > { %p117_p11 = scmp.eq.s32.totalorder %s116_s23, 0  ;;  %s351_s26 = sand.u32 1, %s6700_s29  }
  0x64   : > { %s6942_s27 = sshll.u32 %s351_s26, 8  ;;  %s5273_s22 = sshll.u32 %s6724_s13, 7 }
  0x65   : > { %s6946_s11 = scalar_select %p117_p11, %s6700_s29, %s119_s24  }
  0x66   : > { %s9085_s3 = sld [smem:[#allocation81_spill]]  ;;  %s353_s5 = scalar_lea.vmem [#allocation11], %s6942_s27 }
  0x67   : > { %9084 = sst [smem:[#allocation35_spill]] %s6946_s11  ;;  %s360_s25 = sshll.u32 %s353_s5, 4  ;;  %s6960_s25 = int_to_ptr.vmem [resolvable:$true] %s360_s25 }
  0x68   : > { %p6956_p12 = pnand %p8997_p6, %p128_p9  ;;  %s9088_s4 = sld [smem:[#allocation82_spill]] }
  0x69   : > { %s9089_s20 = sand.u32 1, %s6732_s15  }
  0x6a   : > { %s9086_s23 = scalar_select %p6956_p12, 1, 0 }
  0x6b   : > { %s6969_s1 = scalar_lea.sflag [#allocation12], %s9089_s20  ;;  %p6975_p0 = pneg %p6956_p12 }
  0x6c   : > { %s6951_s17 = scalar_lea.hbm %s9085_s3, %s5273_s22  ;;  %9087 = sst [smem:[#allocation36_spill]] %s9086_s23 }
  0x6d   : > { %s6414_s6 = scalar_lea.hbm %s6951_s17, 4096  ;;  %s6419_s24 = scalar_lea.hbm %s9085_s3, 8192 }
  0x6e   : > { %s6965_s18 = scalar_lea.hbm %s9088_s4, %s5273_s22  ;;  %p6415_p13 = scmp.ne.s32.totalorder %s6951_s17, %s6414_s6 }
  0x6f   : > { %s9090_s5 = scalar_select %p6975_p0, 1, 0 }
  0x70   : > { %p6417_p3 = pnand %p6975_p0, %p6415_p13  ;;  %p6420_p7 = scmp.lt.u32.totalorder %s6951_s17, %s9085_s3 }
  0x71   : > { %9091 = sst [smem:[#allocation37_spill]] %s9090_s5  ;;  %p6421_p5 = scmp.lt.u32.totalorder %s6419_s24, %s6414_s6 }
  0x72   : > { %p6418_p4 = pneg %p6417_p3  ;;  %p6423_p11 = scmp.lt.u32.totalorder %s6414_s6, %s6951_s17 }
  0x73   : > { %p6422_p9 = por %p6421_p5, %p6420_p7 }
  0x75   : > { %p6424_p6 = por %p6423_p11, %p6422_p9 }
  0x77   : > { %p6425_p1 = pnand %p6424_p6, %p6418_p4 }
  0x79   : > { %6428 = shalt.err (!%p6425_p1)
}
  0x7a   : > { %s6429_s20 = scalar_lea.vmem %s6960_s25, 4096  ;;  %s6740_s8 = smov [#allocation11]  }
  0x7b   : > { %p6430_p13 = scmp.ne.s32.totalorder %s6960_s25, %s6429_s20  ;;  %s6434_s11 = sshll.u32 %s6740_s8, 4  ;;  %s6435_s11 = int_to_ptr.vmem [resolvable:$false] %s6434_s11 }
  0x7c   : > { %s6436_s22 = scalar_lea.vmem %s6435_s11, 8192  ;;  %p6437_p8 = scmp.lt.s32.totalorder %s6960_s25, %s6435_s11 }
  0x7d   : > { %p6432_p3 = pnand %p6430_p13, %p6975_p0  ;;  %p6438_p10 = scmp.lt.s32.totalorder %s6436_s22, %s6429_s20 }
  0x7f   : > { %p6433_p2 = pneg %p6432_p3  ;;  %p6439_p7 = por %p6438_p10, %p6437_p8 }
  0x81   : > { %p6440_p5 = pnand %p6439_p7, %p6433_p2 }
  0x83   : > { %6443 = shalt.err (!%p6440_p5)
}
  0x84   : > { %s9016_s6 = smov 256   ;;  %s9092_s24 = smov 8  }
  0x85   : > { %s9093_s26 = smov 128   ;;  %s6742_s3 = smov [#allocation10]  }
  0x86   : > { %5547 = dma.hbm_to_vmem [thread:$0]  (!%p6956_p12), %s6951_s17, 4096, %s6960_s25, %s6969_s1, %s9016_s6, %s9093_s26, %s9092_s24  }
  0x87   : > { %s288_s8 = sshll.u32 %s6742_s3, 4  ;;  %s6743_s29 = smov [#allocation17]   ;;  %s289_s8 = int_to_ptr.vmem [resolvable:$true] %s288_s8 }
  0x88   : > { %s314_s11 = sshll.u32 %s6743_s29, 4  ;;  %s9094_s2 = sld [smem:[#allocation80_spill]]  ;;  %s315_s11 = int_to_ptr.vmem [resolvable:$true] %s314_s11 }
  0x89   : > { %p9095_p10 = scmp.ne.s32.totalorder %s9080_s19, 0 }
  0x8e   : > { %s6444_s28 = scalar_lea.hbm %s9094_s2, 4096 }
  0x8f   : > { %p6445_p8 = scmp.ne.s32.totalorder %s9094_s2, %s6444_s28  ;;  %p6451_p6 = scmp.lt.u32.totalorder %s6444_s28, %s9094_s2 }
  0x91   : > { %p6447_p1 = pnand %p6445_p8, %p9095_p10 }
  0x93   : > { %p6448_p2 = pneg %p6447_p1 }
  0x95   : > { %p6453_p4 = pnand %p6451_p6, %p6448_p2 }
  0x97   : > { %6456 = shalt.err (!%p6453_p4)
}
  0x98   : > { %s6457_s3 = scalar_lea.vmem %s289_s8, 4096  ;;  %p6465_p3 = scmp.lt.s32.totalorder %s289_s8, %s289_s8 }
  0x99   : > { %p6458_p9 = scmp.ne.s32.totalorder %s289_s8, %s6457_s3  ;;  %p6466_p7 = scmp.lt.s32.totalorder %s6457_s3, %s6457_s3 }
  0x9b   : > { %p6460_p11 = pnand %p6458_p9, %p9095_p10  ;;  %p6467_p5 = por %p6466_p7, %p6465_p3 }
  0x9d   : > { %p6461_p13 = pneg %p6460_p11 }
  0x9f   : > { %p6468_p12 = pnand %p6467_p5, %p6461_p13 }
  0xa1   : > { %6471 = shalt.err (!%p6468_p12)
}
  0xa2   : > { %p9096_p8 = scmp.ne.s32.totalorder %s9078_s21, 0  ;;  %s9097_s7 = sld [smem:[#allocation85_spill]] }
  0xa4   : > { %5534 = dma.hbm_to_vmem [thread:$0]  (!%p9096_p8), %s9094_s2, 4096, %s289_s8, [#allocation9], %s9093_s26, %s9093_s26, %s9092_s24  }
  0xa8   : > { %s6472_s17 = scalar_lea.hbm %s9097_s7, 2048 }
  0xa9   : > { %p6473_p1 = scmp.ne.s32.totalorder %s9097_s7, %s6472_s17  ;;  %p6479_p6 = scmp.lt.u32.totalorder %s6472_s17, %s9097_s7 }
  0xab   : > { %p6475_p12 = pnand %p6473_p1, %p9095_p10 }
  0xad   : > { %p6476_p2 = pneg %p6475_p12 }
  0xaf   : > { %p6481_p4 = pnand %p6479_p6, %p6476_p2 }
  0xb1   : > { %6484 = shalt.err (!%p6481_p4)
}
  0xb2   : > { %s6485_s22 = scalar_lea.vmem %s315_s11, 2048  ;;  %p6493_p3 = scmp.lt.s32.totalorder %s315_s11, %s315_s11 }
  0xb3   : > { %p6486_p9 = scmp.ne.s32.totalorder %s315_s11, %s6485_s22  ;;  %p6494_p7 = scmp.lt.s32.totalorder %s6485_s22, %s6485_s22 }
  0xb5   : > { %p6488_p11 = pnand %p6486_p9, %p9095_p10  ;;  %p6495_p5 = por %p6494_p7, %p6493_p3 }
  0xb7   : > { %p6489_p13 = pneg %p6488_p11 }
  0xb9   : > { %p6496_p0 = pnand %p6495_p5, %p6489_p13 }
  0xbb   : > { %6499 = shalt.err (!%p6496_p0)
}
  0xbc   : > { %5540 = dma.hbm_to_vmem [thread:$0]  (!%p9096_p8), %s9097_s7, 2048, %s315_s11, [#allocation18], %s9093_s26, %s9093_s26, %s9092_s24  }
  0xbd   : > { %s4979_s21 = sadd.s32 4294967294, %s6732_s15   ;;  %s44_s19 = sadd.s32 1, %s6728_s14 }
  0xbe   : > { %s51_s4 = sadd.s32 1, %s6712_s10  ;;  %p9098_p0 = scmp.ne.s32.totalorder %s9082_s12, 0 }
  0xbf   : > { %p58_p10 = scmp.ne.s32.totalorder %s6712_s10, %s6708_s9  ;;  %p64_p1 = scmp.ne.s32.totalorder %s6708_s9, %s6704_s30 }
  0xc0   : > { %s9230_s19 = smov (!%p9098_p0, %s44_s19), %s6728_s14  ;;  %p256_p2 = scmp.eq.s32.totalorder %s4979_s21, 3 }
  0xc1   : > { %p46_p12 = scmp.ge.s32.totalorder %s9230_s19, 2  ;;  %p9099_p6 = scmp.eq.s32.totalorder %s6732_s15, 0 }
  0xc2   : > { %p9101_p9 = scmp.eq.s32.totalorder %s6852_s16, 0  ;;  %p9103_p11 = scmp.eq.s32.totalorder %s6852_s16, 3 }
  0xc3   : > { %p7056_p4 = por %p9099_p6, %p58_p10  ;;  %s9232_s19 = smov (%p46_p12, %s9230_s19), 0 }
  0xc4   : > { %p7062_p8 = por %p9101_p9, %p64_p1  ;;  %p7070_p13 = por %p9103_p11, %p58_p10 }
  0xc5   : > { %p7074_p3 = por %p256_p2, %p64_p1  ;;  %s48_s13 = ssub.s32 %s6728_s14, %s9232_s19 }
  0xc6   : > { %s9102_s11 = scalar_select %p7062_p8, 1, 0 }
  0xc7   : > { %s9104_s12 = scalar_select %p7070_p13, 1, 0 }
  0xc8   : > { %s9105_s29 = scalar_select %p7074_p3, 1, 0 }
  0xc9   : > { %s328_s17 = sand.u32 1, %s6712_s10   ;;  %p49_p7 = scmp.eq.s32.totalorder %s48_s13, 0 }
  0xca   : > { %s4986_s25 = sshll.u32 %s328_s17, 8  ;;  %s5272_s23 = sshll.u32 %s6728_s14, 12 }
  0xcb   : > { %s7083_s5 = scalar_select %p49_p7, %s6712_s10, %s51_s4  }
  0xcc   : > { %s9106_s0 = sld [smem:[#allocation78_spill]]  ;;  %s332_s3 = scalar_lea.vmem [#allocation5], %s4986_s25 }
  0xcd   : > { %s339_s21 = sshll.u32 %s332_s3, 4  ;;  %p9107_p5 = scmp.lt.s32.totalorder %s6732_s15, 4  ;;  %s7098_s21 = int_to_ptr.vmem [resolvable:$true] %s339_s21 }
  0xce   : > { %s7100_s4 = scalar_lea.sflag [#allocation6], %s328_s17 }
  0xcf   : > { %p7094_p0 = pnand %p9107_p5, %p7056_p4 }
  0xd1   : > { %p6502_p1 = pneg %p7094_p0 }
  0xd2   : > { %s7088_s8 = scalar_lea.hbm %s9106_s0, %s5272_s23  ;;  %s6505_s23 = scalar_lea.hbm %s9106_s0, 8192 }
  0xd3   : > { %s6500_s13 = scalar_lea.hbm %s7088_s8, 4096  ;;  %p6506_p6 = scmp.lt.u32.totalorder %s7088_s8, %s9106_s0 }
  0xd4   : > { %p6501_p10 = scmp.ne.s32.totalorder %s7088_s8, %s6500_s13  ;;  %p6507_p4 = scmp.lt.u32.totalorder %s6505_s23, %s6500_s13 }
  0xd5   : > { %p6509_p11 = scmp.lt.u32.totalorder %s6500_s13, %s7088_s8 }
  0xd6   : > { %p6503_p12 = pnand %p6502_p1, %p6501_p10  ;;  %p6508_p9 = por %p6507_p4, %p6506_p6 }
  0xd8   : > { %p6504_p2 = pneg %p6503_p12  ;;  %p6510_p7 = por %p6509_p11, %p6508_p9 }
  0xda   : > { %p6511_p5 = pnand %p6510_p7, %p6504_p2 }
  0xdc   : > { %6514 = shalt.err (!%p6511_p5)
}
  0xdd   : > { %s6515_s17 = scalar_lea.vmem %s7098_s21, 4096  ;;  %s6744_s3 = smov [#allocation5]  }
  0xde   : > { %p6516_p10 = scmp.ne.s32.totalorder %s7098_s21, %s6515_s17  ;;  %s6520_s28 = sshll.u32 %s6744_s3, 4  ;;  %s6521_s28 = int_to_ptr.vmem [resolvable:$false] %s6520_s28 }
  0xdf   : > { %s6522_s25 = scalar_lea.vmem %s6521_s28, 8192  ;;  %p6523_p13 = scmp.lt.s32.totalorder %s7098_s21, %s6521_s28 }
  0xe0   : > { %p6518_p12 = pnand %p6516_p10, %p6502_p1  ;;  %p6524_p6 = scmp.lt.s32.totalorder %s6522_s25, %s6515_s17 }
  0xe2   : > { %p6519_p3 = pneg %p6518_p12  ;;  %p6525_p4 = por %p6524_p6, %p6523_p13 }
  0xe4   : > { %p6526_p9 = pnand %p6525_p4, %p6519_p3 }
  0xe6   : > { %6529 = shalt.err (!%p6526_p9)
}
  0xe7   : > { %s6745_s13 = smov 16   ;;  %s9109_s23 = smov 256  }
  0xe8   : > { %s9110_s20 = sld [smem:[#allocation37_spill]]  ;;  %s374_s22 = scalar_lea.vmem [#allocation13], %s6942_s27 }
  0xe9   : > { %5544 = dma.hbm_to_vmem [thread:$0]  (!%p7094_p0), %s7088_s8, 4096, %s7098_s21, %s7100_s4, %s9109_s23, %s9109_s23, %s6745_s13  }
  0xea   : > { %s381_s17 = sshll.u32 %s374_s22, 4  ;;  %s6530_s3 = scalar_lea.hbm %s6965_s18, 4096  ;;  %s7131_s17 = int_to_ptr.vmem [resolvable:$true] %s381_s17 }
  0xeb   : > { %p6531_p13 = scmp.ne.s32.totalorder %s6965_s18, %s6530_s3  ;;  %s9112_s25 = sld [smem:[#allocation82_spill]] }
  0xec   : > { %p6539_p0 = scmp.lt.u32.totalorder %s6530_s3, %s6965_s18 }
  0xee   : > { %p9111_p3 = scmp.ne.s32.totalorder %s9110_s20, 0 }
  0xf0   : > { %p6533_p1 = pnand %p6531_p13, %p9111_p3 }
  0xf1   : > { %s6535_s0 = scalar_lea.hbm %s9112_s25, 8192  ;;  %p6536_p11 = scmp.lt.u32.totalorder %s6965_s18, %s9112_s25 }
  0xf2   : > { %p6534_p2 = pneg %p6533_p1  ;;  %p6537_p7 = scmp.lt.u32.totalorder %s6535_s0, %s6530_s3 }
  0xf4   : > { %p6538_p5 = por %p6537_p7, %p6536_p11 }
  0xf6   : > { %p6540_p10 = por %p6539_p0, %p6538_p5 }
  0xf8   : > { %p6541_p12 = pnand %p6540_p10, %p6534_p2 }
  0xfa   : > { %6544 = shalt.err (!%p6541_p12)
}
  0xfb   : > { %s6545_s8 = scalar_lea.vmem %s7131_s17, 4096  ;;  %s6746_s21 = smov [#allocation13]  }
  0xfc   : > { %p6546_p6 = scmp.ne.s32.totalorder %s7131_s17, %s6545_s8  ;;  %s6550_s4 = sshll.u32 %s6746_s21, 4  ;;  %s6551_s4 = int_to_ptr.vmem [resolvable:$false] %s6550_s4 }
  0xfd   : > { %s6552_s2 = scalar_lea.vmem %s6551_s4, 8192  ;;  %p6553_p13 = scmp.lt.s32.totalorder %s7131_s17, %s6551_s4 }
  0xfe   : > { %p6548_p4 = pnand %p6546_p6, %p9111_p3  ;;  %p6554_p1 = scmp.lt.s32.totalorder %s6552_s2, %s6545_s8 }
 0x100   : > { %p6549_p9 = pneg %p6548_p4  ;;  %p6555_p11 = por %p6554_p1, %p6553_p13 }
 0x102   : > { %p6556_p7 = pnand %p6555_p11, %p6549_p9 }
 0x104   : > { %6559 = shalt.err (!%p6556_p7)
}
 0x105   : > { %s9113_s0 = sld [smem:[#allocation36_spill]]  ;;  %s9115_s7 = sld [smem:[#allocation31_spill]] }
 0x106   : > { %s395_s22 = scalar_lea.vmem [#allocation14], %s6942_s27  ;;  %s9116_s25 = sld [smem:[#allocation83_spill]] }
 0x107   : > { %s403_s3 = sshll.u32 %s395_s22, 4  ;;  %s9117_s21 = sand.u32 1, %s6732_s15   ;;  %s7165_s3 = int_to_ptr.vmem [resolvable:$true] %s403_s3 }
 0x108   : > { %s7169_s4 = scalar_lea.sflag [#allocation15], %s9117_s21 }
 0x10b   : > { %p9114_p2 = scmp.ne.s32.totalorder %s9113_s0, 0  ;;  %s5276_s13 = sshll.u32 %s9115_s7, 12 }
 0x10c   : > { %s7163_s8 = scalar_lea.hbm %s9116_s25, %s5276_s13 }
 0x10d   : > { %5550 = dma.hbm_to_vmem [thread:$0]  (!%p9114_p2), %s6965_s18, 4096, %s7131_s17, %s6969_s1, %s9109_s23, %s9093_s26, %s9092_s24  }
 0x10e   : > { %s6560_s2 = scalar_lea.hbm %s7163_s8, 4096  ;;  %s6565_s18 = scalar_lea.hbm %s9116_s25, 8192 }
 0x10f   : > { %p6561_p5 = scmp.ne.s32.totalorder %s7163_s8, %s6560_s2  ;;  %p6566_p12 = scmp.lt.u32.totalorder %s7163_s8, %s9116_s25 }
 0x110   : > { %p6567_p6 = scmp.lt.u32.totalorder %s6565_s18, %s6560_s2  ;;  %p6569_p9 = scmp.lt.u32.totalorder %s6560_s2, %s7163_s8 }
 0x111   : > { %p6563_p0 = pnand %p6561_p5, %p9111_p3 }
 0x112   : > { %p6568_p4 = por %p6567_p6, %p6566_p12 }
 0x113   : > { %p6564_p10 = pneg %p6563_p0 }
 0x114   : > { %p6570_p13 = por %p6569_p9, %p6568_p4 }
 0x116   : > { %p6571_p1 = pnand %p6570_p13, %p6564_p10 }
 0x118   : > { %6574 = shalt.err (!%p6571_p1)
}
 0x119   : > { %s6575_s7 = scalar_lea.vmem %s7165_s3, 4096  ;;  %s6747_s13 = smov [#allocation14]  }
 0x11a   : > { %p6576_p11 = scmp.ne.s32.totalorder %s7165_s3, %s6575_s7  ;;  %s6580_s22 = sshll.u32 %s6747_s13, 4  ;;  %s6581_s22 = int_to_ptr.vmem [resolvable:$false] %s6580_s22 }
 0x11b   : > { %s6582_s6 = scalar_lea.vmem %s6581_s22, 8192  ;;  %p6583_p0 = scmp.lt.s32.totalorder %s7165_s3, %s6581_s22 }
 0x11c   : > { %p6578_p7 = pnand %p6576_p11, %p9111_p3  ;;  %p6584_p8 = scmp.lt.s32.totalorder %s6582_s6, %s6575_s7 }
 0x11e   : > { %p6579_p5 = pneg %p6578_p7  ;;  %p6585_p12 = por %p6584_p8, %p6583_p0 }
 0x120   : > { %p6586_p6 = pnand %p6585_p12, %p6579_p5 }
 0x122   : > { %6589 = shalt.err (!%p6586_p6)
}
 0x123   : > { %5553 = dma.hbm_to_vmem [thread:$0]  (!%p9114_p2), %s7163_s8, 4096, %s7165_s3, %s7169_s4, %s9093_s26, %s9093_s26, %s9092_s24  }
 0x124   : > { %s9118_s20 = sld [smem:[#allocation33_spill]] }
 0x12a   : > { %p9119_p3 = scmp.ne.s32.totalorder %s9118_s20, 0 }
 0x12b   : > { %s7199_s28 = sand.u32 (!%p9119_p3), 1, %s6708_s9   ;;  %p9120_p8 = scmp.ne.s32.totalorder (!%p9119_p3), %s9102_s11, 0 }
 0x12c   : > { %415 = sbr.rel (%p9119_p3) target bundleno = 2836 (0xb14), region = 52  ;;  %s5000_s21 = sshll.u32 (!%p9119_p3), %s7199_s28, 8 }
 0x12d   : > { %s418_s2 = scalar_lea.sflag (!%p9119_p3), [#allocation6], %s7199_s28  ;;  %s7203_s1 = scalar_lea.vmem (!%p9119_p3), [#allocation5], %s5000_s21 }
 0x133   : > { %6663 = dma.done.wait (%p9120_p8), %s418_s2, 4096  }
 0x134   : > { %6665 = vsyncadd (%p9120_p8), %s418_s2, 4294963200  ;;  %p9121_p2 = scmp.eq.s32.totalorder %s6852_s16, 0 }
 0x136   : > { %6667 = dma.done.wait (%p9121_p2), [#allocation9], 16384   ;;  %p9122_p10 = pmov %p9121_p2 }
 0x137   : > { %s9123_s24 = sld [smem:[#allocation27_spill]]  ;;  %s9124_s26 = sld [smem:[#allocation32_spill]] }
 0x138   : > { %6669 = vsyncadd (%p9122_p10), [#allocation9], 4294950912  ;;  %s434_s0 = sand.u32 1, %s6852_s16  }
 0x139   : > { %s435_s4 = scalar_lea.sflag [#allocation12], %s434_s0 }
 0x13d   : > { %s436_s3 = sand.u32 1, %s9123_s24   ;;  %p9125_p4 = scmp.ne.s32.totalorder %s9124_s26, 0 }
 0x13e   : > { %s5003_s8 = sshll.u32 %s436_s3, 8 }
 0x13f   : > { %s7215_s27 = scalar_lea.vmem [#allocation11], %s5003_s8 }
 0x140   : > { %6671 = dma.done.wait (%p9125_p4), %s435_s4, 8192  }
 0x141   : > { %6673 = vsyncadd (%p9125_p4), %s435_s4, 4294959104  ;;  %s7221_s11 = scalar_lea.vmem [#allocation13], %s5003_s8  ;;  %s453_s18 = scalar_lea.sflag [#allocation15], %s434_s0 }
 0x142   : > { %s7223_s23 = scalar_lea.vmem [#allocation14], %s5003_s8 }
 0x143   : > { %6675 = dma.done.wait (%p9125_p4), %s453_s18, 4096  }
 0x144   : > { %6677 = vsyncadd (%p9125_p4), %s453_s18, 4294963200  ;;  %p9126_p9 = pmov %p9121_p2 }
 0x145   : > { %p9127_p13 = pmov %p9121_p2 }
 0x146   : > { %6679 = dma.done.wait (%p9126_p9), [#allocation15], 2048  }
 0x147   : > { %6681 = vsyncadd (%p9127_p13), [#allocation15], 4294965248  ;;  %p9128_p1 = pmov %p9121_p2 }
 0x149   : > { %6683 = dma.done.wait (%p9128_p1), [#allocation18], 2048   ;;  %p9129_p11 = pmov %p9128_p1 }
 0x14a   : > { %s7237_s17 = scalar_lea.vmem [#allocation19], %s5000_s21  ;;  %s9130_s7 = sld [smem:[#allocation29_spill]] }
 0x14b   : > { %6685 = vsyncadd (%p9129_p11), [#allocation18], 4294965248 }
 0x150   : > { %p5009_p7 = scmp.ne.s32.totalorder %s9130_s7, 0 }
 0x152   : > { %519 = sbr.rel (%p5009_p7) target bundleno = 2208 (0x8a0), region = 88 }
 0x159   : > { %v7241_v0 = vld [vmem:[%s7203_s1] sm:$0xff]  ;;  %v7244_v1 = vld [vmem:[%s7203_s1 + $0x8] sm:$0xff]  ;;  %v7259_v7 = vld [vmem:[%s7203_s1 + $0x10] sm:$0xff]  ;;  %s6748_s16 = smov 64  }
 0x15a   : > { %v7247_v2 = vld [vmem:[%s7203_s1 + $0x20] sm:$0xff]  ;;  %v552_v3 = vmul.f32 %v7241_v0, %v7241_v0  ;;  %v553_v4 = vmul.f32 %v7244_v1, %v7244_v1  ;;  %v7254_v5 = vld [vmem:[%s7203_s1 + $0x28] sm:$0xff]  ;;  %v7262_v8 = vld [vmem:[%s7203_s1 + $0x18] sm:$0xff]  ;;  %v554_v10 = vmul.f32 %v7259_v7, %v7259_v7 }
 0x15b   : > { %v556_v6 = vmul.f32 %v7247_v2, %v7247_v2  ;;  %v557_v9 = vmul.f32 %v7254_v5, %v7254_v5  ;;  %v555_v11 = vmul.f32 %v7262_v8, %v7262_v8  ;;  %v7271_v12 = vld [vmem:[%s7203_s1 + $0x30] sm:$0xff]  ;;  %v7274_v13 = vld [vmem:[%s7203_s1 + $0x38] sm:$0xff]  ;;  %v7287_v19 = vld [vmem:[%s7203_s1 + $0x40] sm:$0xff] }
 0x15c   : > { %v7277_v14 = vld [vmem:[%s7203_s1 + $0x50] sm:$0xff]  ;;  %v584_v15 = vadd.f32 %v553_v4, %v552_v3  ;;  %v558_v16 = vmul.f32 %v7271_v12, %v7271_v12  ;;  %v559_v17 = vmul.f32 %v7274_v13, %v7274_v13  ;;  %v7284_v18 = vld [vmem:[%s7203_s1 + $0x58] sm:$0xff]  ;;  %v7290_v20 = vld [vmem:[%s7203_s1 + $0x48] sm:$0xff]  ;;  %v560_v23 = vmul.f32 %v7287_v19, %v7287_v19 }
 0x15d   : > { %v590_v21 = vadd.f32 %v557_v9, %v556_v6  ;;  %v587_v22 = vadd.f32 %v555_v11, %v554_v10  ;;  %v561_v24 = vmul.f32 %v7290_v20, %v7290_v20  ;;  %v562_v26 = vmul.f32 %v7277_v14, %v7277_v14  ;;  %v7301_v28 = vld [vmem:[%s7203_s1 + $0x60] sm:$0xff]  ;;  %v7304_v29 = vld [vmem:[%s7203_s1 + $0x68] sm:$0xff]  ;;  %v7307_v30 = vld [vmem:[%s7203_s1 + $0x70] sm:$0xff] }
 0x15e   : > { %585 = vadd.xlane.f32.xlu0 %v584_v15  ;;  %v593_v25 = vadd.f32 %v559_v17, %v558_v16  ;;  %v563_v27 = vmul.f32 %v7284_v18, %v7284_v18  ;;  %v7310_v31 = vld [vmem:[%s7203_s1 + $0x78] sm:$0xff]  ;;  %v564_v33 = vmul.f32 %v7301_v28, %v7301_v28  ;;  %v565_v34 = vmul.f32 %v7304_v29, %v7304_v29  ;;  %v7317_v35 = vld [vmem:[%s7203_s1 + $0x90] sm:$0xff]  ;;  %v7327_v40 = vld [vmem:[%s7203_s1 + $0x80] sm:$0xff] }
 0x15f   : > { %591 = vadd.xlane.f32.xlu1 %v590_v21  ;;  %v596_v32 = vadd.f32 %v561_v24, %v560_v23  ;;  %v7320_v36 = vld [vmem:[%s7203_s1 + $0x98] sm:$0xff]  ;;  %v566_v38 = vmul.f32 %v7307_v30, %v7307_v30  ;;  %v567_v39 = vmul.f32 %v7310_v31, %v7310_v31  ;;  %v7330_v41 = vld [vmem:[%s7203_s1 + $0x88] sm:$0xff]  ;;  %v7333_v43 = vld [vmem:[%s7203_s1 + $0xa0] sm:$0xff]  ;;  %v568_v48 = vmul.f32 %v7327_v40, %v7327_v40 }
 0x160   : > { %v599_v37 = vadd.f32 %v563_v27, %v562_v26  ;;  %v5670_v42 = vld [vmem:[#allocation8 + $0x4] ss:$24 sps:$4 sm:$0xff]   ;;  %v7336_v44 = vld [vmem:[%s7203_s1 + $0xa8] sm:$0xff]  ;;  %v5674_v46 = vld [vmem:[#allocation8] ss:$24 sps:$4 sm:$0xff]   ;;  %v602_v47 = vadd.f32 %v565_v34, %v564_v33  ;;  %v569_v49 = vmul.f32 %v7330_v41, %v7330_v41  ;;  %v570_v54 = vmul.f32 %v7317_v35, %v7317_v35 }
 0x161   : > { %v5672_v45 = vld [vmem:[#allocation8 + $0x14] ss:$24 sps:$4 sm:$0xff]   ;;  %v7346_v51 = vld [vmem:[%s7203_s1 + $0xb8] sm:$0xff]  ;;  %1305 = vmatprep.subr.bf16.mxu1 %v5670_v42  ;;  %v5675_v52 = vld [vmem:[#allocation8 + $0x10] ss:$24 sps:$4 sm:$0xff]   ;;  %v605_v53 = vadd.f32 %v567_v39, %v566_v38  ;;  %v571_v55 = vmul.f32 %v7320_v36, %v7320_v36  ;;  %v572_v63 = vmul.f32 %v7333_v43, %v7333_v43  ;;  %v573_v3 = vmul.f32 %v7336_v44, %v7336_v44 }
 0x162   : > { %588 = vadd.xlane.f32.xlu0 %v587_v22  ;;  %v7343_v50 = vld [vmem:[%s7203_s1 + $0xb0] sm:$0xff]  ;;  %1531 = vmatprep.subr.bf16.mxu0 %v5672_v45  ;;  %v5678_v57 = vld [vmem:[#allocation8 + $0x44] ss:$24 sps:$4 sm:$0xff]   ;;  %v5681_v59 = vld [vmem:[#allocation8 + $0x40] ss:$24 sps:$4 sm:$0xff]   ;;  %v608_v62 = vadd.f32 %v569_v49, %v568_v48  ;;  %v575_v15 = vmul.f32 %v7346_v51, %v7346_v51 }
 0x163   : > { %594 = vadd.xlane.f32.xlu1 %v593_v25  ;;  %v5676_v56 = vld [vmem:[#allocation8 + $0x34] ss:$24 sps:$4 sm:$0xff]   ;;  %1306 = vmatpush1.bf16.msra.mxu1 %v5674_v46  ;;  %v5680_v58 = vld [vmem:[#allocation8 + $0x30] ss:$24 sps:$4 sm:$0xff]   ;;  %v7353_v60 = vld [vmem:[%s7203_s1 + $0xc0] sm:$0xff]  ;;  %v611_v10 = vadd.f32 %v571_v55, %v570_v54  ;;  %v574_v11 = vmul.f32 %v7343_v50, %v7343_v50  ;;  %v614_v24 = vadd.f32 %v573_v3, %v572_v63 }
 0x164   : > { %1532 = vmatpush1.bf16.msra.mxu0 %v5675_v52  ;;  %1307 = vmatprep.subr.bf16.mxu1 %v5676_v56  ;;  %v5682_v61 = vld [vmem:[#allocation8 + $0x64] ss:$24 sps:$4 sm:$0xff]   ;;  %v7360_v4 = vld [vmem:[%s7203_s1 + $0xd0] sm:$0xff]  ;;  %v7370_v16 = vld [vmem:[%s7203_s1 + $0xc8] sm:$0xff]  ;;  %v576_v25 = vmul.f32 %v7353_v60, %v7353_v60 }
 0x165   : > { %v7363_v6 = vld [vmem:[%s7203_s1 + $0xd8] sm:$0xff]  ;;  %1533 = vmatprep.subr.bf16.mxu0 %v5678_v57  ;;  %v5684_v9 = vld [vmem:[#allocation8 + $0x74] ss:$24 sps:$4 sm:$0xff]   ;;  %v5687_v21 = vld [vmem:[#allocation8 + $0x70] ss:$24 sps:$4 sm:$0xff]   ;;  %v577_v26 = vmul.f32 %v7370_v16, %v7370_v16  ;;  %v617_v34 = vadd.f32 %v575_v15, %v574_v11 }
 0x166   : > { %597 = vadd.xlane.f32.xlu0 %v596_v32  ;;  %v5686_v17 = vld [vmem:[#allocation8 + $0x60] ss:$24 sps:$4 sm:$0xff]   ;;  %v5688_v22 = vld [vmem:[#allocation8 + $0x94] ss:$24 sps:$4 sm:$0xff]   ;;  %v5690_v23 = vld [vmem:[#allocation8 + $0xa4] ss:$24 sps:$4 sm:$0xff]   ;;  %v579_v38 = vmul.f32 %v7363_v6, %v7363_v6 }
 0x167   : > { %600 = vadd.xlane.f32.xlu1 %v599_v37  ;;  %1308 = vmatpush1.bf16.msra.mxu1 %v5680_v58  ;;  %v7377_v27 = vld [vmem:[%s7203_s1 + $0xf0] sm:$0xff]  ;;  %v7380_v32 = vld [vmem:[%s7203_s1 + $0xf8] sm:$0xff]  ;;  %v7383_v33 = vld [vmem:[%s7203_s1 + $0xe0] sm:$0xff]  ;;  %v578_v37 = vmul.f32 %v7360_v4, %v7360_v4  ;;  %v620_v48 = vadd.f32 %v577_v26, %v576_v25 }
 0x168   : > { %1534 = vmatpush1.bf16.msra.mxu0 %v5681_v59  ;;  %1309 = vmatprep.subr.bf16.mxu1 %v5682_v61  ;;  %v7390_v39 = vld [vmem:[%s7203_s1 + $0xe8] sm:$0xff]  ;;  %v5693_v45 = vld [vmem:[#allocation8 + $0xa0] ss:$24 sps:$4 sm:$0xff]   ;;  %v5694_v46 = vld [vmem:[#allocation8 + $0xc4] ss:$24 sps:$4 sm:$0xff]   ;;  %v580_v49 = vmul.f32 %v7383_v33, %v7383_v33  ;;  %v582_v54 = vmul.f32 %v7377_v27, %v7377_v27  ;;  %v583_v55 = vmul.f32 %v7380_v32, %v7380_v32 }
 0x169   : > { %1535 = vmatprep.subr.bf16.mxu0 %v5684_v9  ;;  %v5692_v42 = vld [vmem:[#allocation8 + $0x90] ss:$24 sps:$4 sm:$0xff]   ;;  %v581_v52 = vmul.f32 %v7390_v39, %v7390_v39  ;;  %v5698_v56 = vld [vmem:[#allocation8 + $0xc0] ss:$24 sps:$4 sm:$0xff]   ;;  %v5700_v58 = vld [vmem:[#allocation8 + $0xf4] ss:$24 sps:$4 sm:$0xff]  }
 0x16a   : > { %603 = vadd.xlane.f32.xlu0 %v602_v47  ;;  %v5696_v47 = vld [vmem:[#allocation8 + $0xd4] ss:$24 sps:$4 sm:$0xff]   ;;  %v5699_v57 = vld [vmem:[#allocation8 + $0xd0] ss:$24 sps:$4 sm:$0xff]   ;;  %v5702_v59 = vld [vmem:[#allocation8 + $0x104] ss:$24 sps:$4 sm:$0xff]  }
 0x16b   : > { %606 = vadd.xlane.f32.xlu1 %v605_v53  ;;  %1310 = vmatpush1.bf16.msra.mxu1 %v5686_v17  ;;  %v623_v53 = vadd.f32 %v579_v38, %v578_v37  ;;  %v626_v61 = vadd.f32 %v581_v52, %v580_v49  ;;  %v5704_v63 = vld [vmem:[#allocation8 + $0xf0] ss:$24 sps:$4 sm:$0xff]   ;;  %v5705_v3 = vld [vmem:[#allocation8 + $0x100] ss:$24 sps:$4 sm:$0xff]   ;;  %v5706_v9 = vld [vmem:[#allocation8 + $0x124] ss:$24 sps:$4 sm:$0xff]  }
 0x16c   : > { %1536 = vmatpush1.bf16.msra.mxu0 %v5687_v21  ;;  %1311 = vmatprep.subr.bf16.mxu1 %v5688_v22  ;;  %v5710_v11 = vld [vmem:[#allocation8 + $0x120] ss:$24 sps:$4 sm:$0xff]   ;;  %v5711_v15 = vld [vmem:[#allocation8 + $0x130] ss:$24 sps:$4 sm:$0xff]   ;;  %v5712_v17 = vld [vmem:[#allocation8 + $0x154] ss:$24 sps:$4 sm:$0xff]  }
 0x16d   : > { %1537 = vmatprep.subr.bf16.mxu0 %v5690_v23  ;;  %v5714_v21 = vld [vmem:[#allocation8 + $0x164] ss:$24 sps:$4 sm:$0xff]   ;;  %v5716_v22 = vld [vmem:[#allocation8 + $0x150] ss:$24 sps:$4 sm:$0xff]   ;;  %v5717_v23 = vld [vmem:[#allocation8 + $0x160] ss:$24 sps:$4 sm:$0xff]  }
 0x16e   : > { %609 = vadd.xlane.f32.xlu0 %v608_v62  ;;  %v629_v62 = vadd.f32 %v583_v55, %v582_v54  ;;  %v5720_v25 = vld [vmem:[#allocation8 + $0x194] ss:$24 sps:$4 sm:$0xff]   ;;  %v5722_v26 = vld [vmem:[#allocation8 + $0x180] ss:$24 sps:$4 sm:$0xff]   ;;  %v5726_v38 = vld [vmem:[#allocation8 + $0x1c4] ss:$24 sps:$4 sm:$0xff]  }
 0x16f   : > { %612 = vadd.xlane.f32.xlu1 %v611_v10  ;;  %1312 = vmatpush1.bf16.msra.mxu1 %v5692_v42  ;;  %v5708_v10 = vld [vmem:[#allocation8 + $0x134] ss:$24 sps:$4 sm:$0xff]   ;;  %v5728_v42 = vld [vmem:[#allocation8 + $0x1b0] ss:$24 sps:$4 sm:$0xff]   ;;  %v5741_v55 = vld [vmem:[#allocation8 + $0x220] ss:$24 sps:$4 sm:$0xff]  }
 0x170   : > { %1538 = vmatpush1.bf16.msra.mxu0 %v5693_v45  ;;  %1313 = vmatprep.subr.bf16.mxu1 %v5694_v46  ;;  %v5724_v37 = vld [vmem:[#allocation8 + $0x1b4] ss:$24 sps:$4 sm:$0xff]   ;;  %v5729_v45 = vld [vmem:[#allocation8 + $0x1c0] ss:$24 sps:$4 sm:$0xff]   ;;  %v5730_v46 = vld [vmem:[#allocation8 + $0x1e4] ss:$24 sps:$4 sm:$0xff]  }
 0x171   : > { %1539 = vmatprep.subr.bf16.mxu0 %v5696_v47  ;;  %v5732_v47 = vld [vmem:[#allocation8 + $0x1f4] ss:$24 sps:$4 sm:$0xff]   ;;  %v5735_v49 = vld [vmem:[#allocation8 + $0x1f0] ss:$24 sps:$4 sm:$0xff]  }
 0x172   : > { %615 = vadd.xlane.f32.xlu0 %v614_v24  ;;  %v5718_v24 = vld [vmem:[#allocation8 + $0x184] ss:$24 sps:$4 sm:$0xff]   ;;  %v5736_v52 = vld [vmem:[#allocation8 + $0x214] ss:$24 sps:$4 sm:$0xff]   ;;  %v5740_v54 = vld [vmem:[#allocation8 + $0x210] ss:$24 sps:$4 sm:$0xff]  }
 0x173   : > { %618 = vadd.xlane.f32.xlu1 %v617_v34  ;;  %1314 = vmatpush1.bf16.msra.mxu1 %v5698_v56  ;;  %v5723_v34 = vld [vmem:[#allocation8 + $0x190] ss:$24 sps:$4 sm:$0xff]   ;;  %v5742_v56 = vld [vmem:[#allocation8 + $0x244] ss:$24 sps:$4 sm:$0xff]  }
 0x174   : > { %1540 = vmatpush1.bf16.msra.mxu0 %v5699_v57  ;;  %1315 = vmatprep.subr.bf16.mxu1 %v5700_v58  ;;  %v5744_v57 = vld [vmem:[#allocation8 + $0x254] ss:$24 sps:$4 sm:$0xff]   ;;  %v5746_v58 = vld [vmem:[#allocation8 + $0x240] ss:$24 sps:$4 sm:$0xff]  }
 0x175   : > { %1541 = vmatprep.subr.bf16.mxu0 %v5702_v59  ;;  %v5747_v59 = vld [vmem:[#allocation8 + $0x250] ss:$24 sps:$4 sm:$0xff]  }
 0x176   : > { %621 = vadd.xlane.f32.xlu0 %v620_v48  ;;  %v5734_v48 = vld [vmem:[#allocation8 + $0x1e0] ss:$24 sps:$4 sm:$0xff]  }
 0x177   : > { %624 = vadd.xlane.f32.xlu1 %v623_v53  ;;  %1316 = vmatpush1.bf16.msra.mxu1 %v5704_v63  ;;  %v5738_v53 = vld [vmem:[#allocation8 + $0x224] ss:$24 sps:$4 sm:$0xff]   ;;  %v5752_v63 = vld [vmem:[#allocation8 + $0x270] ss:$24 sps:$4 sm:$0xff]  }
 0x178   : > { %1542 = vmatpush1.bf16.msra.mxu0 %v5705_v3  ;;  %1317 = vmatprep.subr.bf16.mxu1 %v5706_v9  ;;  %v5753_v3 = vld [vmem:[#allocation8 + $0x280] ss:$24 sps:$4 sm:$0xff]   ;;  %v5754_v9 = vld [vmem:[#allocation8 + $0x2a4] ss:$24 sps:$4 sm:$0xff]  }
 0x179   : > { %1543 = vmatprep.subr.bf16.mxu0 %v5708_v10  ;;  %v5756_v10 = vld [vmem:[#allocation8 + $0x2b4] ss:$24 sps:$4 sm:$0xff]  }
 0x17a   : > { %627 = vadd.xlane.f32.xlu0 %v626_v61  ;;  %v5748_v61 = vld [vmem:[#allocation8 + $0x274] ss:$24 sps:$4 sm:$0xff]  }
 0x17b   : > { %630 = vadd.xlane.f32.xlu1 %v629_v62  ;;  %1318 = vmatpush1.bf16.msra.mxu1 %v5710_v11  ;;  %v5750_v62 = vld [vmem:[#allocation8 + $0x284] ss:$24 sps:$4 sm:$0xff]   ;;  %v5758_v11 = vld [vmem:[#allocation8 + $0x2a0] ss:$24 sps:$4 sm:$0xff]  }
 0x17c   : > { %1544 = vmatpush1.bf16.msra.mxu0 %v5711_v15  ;;  %1319 = vmatprep.subr.bf16.mxu1 %v5712_v17  ;;  %v5759_v15 = vld [vmem:[#allocation8 + $0x2b0] ss:$24 sps:$4 sm:$0xff]   ;;  %v5760_v17 = vld [vmem:[#allocation8 + $0x2d4] ss:$24 sps:$4 sm:$0xff]  }
 0x17d   : > { %1545 = vmatprep.subr.bf16.mxu0 %v5714_v21  ;;  %v5762_v21 = vld [vmem:[#allocation8 + $0x2e4] ss:$24 sps:$4 sm:$0xff]  }
 0x17f   : > { %1320 = vmatpush1.bf16.msra.mxu1 %v5716_v22  ;;  %v5764_v22 = vld [vmem:[#allocation8 + $0x2d0] ss:$24 sps:$4 sm:$0xff]  }
 0x180   : > { %1546 = vmatpush1.bf16.msra.mxu0 %v5717_v23  ;;  %1321 = vmatprep.subr.bf16.mxu1 %v5718_v24  ;;  %v5765_v23 = vld [vmem:[#allocation8 + $0x2e0] ss:$24 sps:$4 sm:$0xff]   ;;  %v5768_v24 = vld [vmem:[#allocation8 + $0xc] ss:$24 sps:$4 sm:$0xff]  }
 0x181   : > { %1547 = vmatprep.subr.bf16.mxu0 %v5720_v25 }
 0x183   : > { %1322 = vmatpush1.bf16.msra.mxu1 %v5722_v26 }
 0x184   : > { %1548 = vmatpush1.bf16.msra.mxu0 %v5723_v34  ;;  %1323 = vmatprep.subr.bf16.mxu1 %v5724_v37 }
 0x185   : > { %1549 = vmatprep.subr.bf16.mxu0 %v5726_v38 }
 0x187   : > { %1324 = vmatpush1.bf16.msra.mxu1 %v5728_v42 }
 0x188   : > { %1550 = vmatpush1.bf16.msra.mxu0 %v5729_v45  ;;  %1325 = vmatprep.subr.bf16.mxu1 %v5730_v46 }
 0x189   : > { %1551 = vmatprep.subr.bf16.mxu0 %v5732_v47 }
 0x18b   : > { %1326 = vmatpush1.bf16.msra.mxu1 %v5734_v48 }
 0x18c   : > { %1552 = vmatpush1.bf16.msra.mxu0 %v5735_v49  ;;  %1327 = vmatprep.subr.bf16.mxu1 %v5736_v52 }
 0x18d   : > { %1553 = vmatprep.subr.bf16.mxu0 %v5738_v53 }
 0x18f   : > { %1328 = vmatpush1.bf16.msra.mxu1 %v5740_v54 }
 0x190   : > { %1554 = vmatpush1.bf16.msra.mxu0 %v5741_v55  ;;  %1329 = vmatprep.subr.bf16.mxu1 %v5742_v56 }
 0x191   : > { %1555 = vmatprep.subr.bf16.mxu0 %v5744_v57 }
 0x193   : > { %1330 = vmatpush1.bf16.msra.mxu1 %v5746_v58 }
 0x194   : > { %1556 = vmatpush1.bf16.msra.mxu0 %v5747_v59  ;;  %1331 = vmatprep.subr.bf16.mxu1 %v5748_v61 }
 0x195   : > { %1557 = vmatprep.subr.bf16.mxu0 %v5750_v62 }
 0x197   : > { %1332 = vmatpush1.bf16.msra.mxu1 %v5752_v63 }
 0x198   : > { %1558 = vmatpush1.bf16.msra.mxu0 %v5753_v3  ;;  %1333 = vmatprep.subr.bf16.mxu1 %v5754_v9 }
 0x199   : > { %1559 = vmatprep.subr.bf16.mxu0 %v5756_v10 }
 0x19b   : > { %1334 = vmatpush1.bf16.msra.mxu1 %v5758_v11 }
 0x19c   : > { %1560 = vmatpush1.bf16.msra.mxu0 %v5759_v15  ;;  %1335 = vmatprep.subr.bf16.mxu1 %v5760_v17 }
 0x19d   : > { %1561 = vmatprep.subr.bf16.mxu0 %v5762_v21 }
 0x19f   : > { %1336 = vmatpush1.bf16.msra.mxu1 %v5764_v22 }
 0x1a0   : > { %1562 = vmatpush1.bf16.msra.mxu0 %v5765_v23  ;;  %1418 = vmatprep.subr.bf16.mxu1 %v5768_v24 }
 0x1eb   : > { %v586_v25 = vpop.xlane.xlu0 %585 }
 0x1ec   : > { %v633_v26 = vmul.f32 0.00390625, %v586_v25  ;;  %v592_v34 = vpop.xlane.xlu1 %591 }
 0x1ed   : > { %v635_v37 = vmul.f32 0.00390625, %v592_v34 }
 0x1ee   : > { %v649_v38 = vadd.f32 1.1920929e-07, %v633_v26 }
 0x1ef   : > { %v651_v42 = vadd.f32 1.1920929e-07, %v635_v37  ;;  %v589_v45 = vpop.xlane.xlu0 %588 }
 0x1f0   : > { %5862 = vrsqrt.f32 %v649_v38  ;;  %v634_v46 = vmul.f32 0.00390625, %v589_v45  ;;  %v595_v47 = vpop.xlane.xlu1 %594 }
 0x1f1   : > { %5864 = vrsqrt.f32 %v651_v42  ;;  %v636_v48 = vmul.f32 0.00390625, %v595_v47 }
 0x1f2   : > { %v650_v49 = vadd.f32 1.1920929e-07, %v634_v46 }
 0x1f3   : > { %v652_v52 = vadd.f32 1.1920929e-07, %v636_v48  ;;  %v598_v53 = vpop.xlane.xlu0 %597 }
 0x1f4   : > { %5866 = vrsqrt.f32 %v650_v49  ;;  %v601_v54 = vpop.xlane.xlu1 %600  ;;  %v637_v55 = vmul.f32 0.00390625, %v598_v53  ;;  %v5769_v49 = vld [vmem:[#allocation8 + $0x38] ss:$24 sps:$4 sm:$0xff]  }
 0x1f5   : > { %5868 = vrsqrt.f32 %v652_v52  ;;  %v638_v56 = vmul.f32 0.00390625, %v601_v54 }
 0x1f6   : > { %v653_v57 = vadd.f32 1.1920929e-07, %v637_v55 }
 0x1f7   : > { %v654_v58 = vadd.f32 1.1920929e-07, %v638_v56  ;;  %v604_v59 = vpop.xlane.xlu0 %603 }
 0x1f8   : > { %5870 = vrsqrt.f32 %v653_v57  ;;  %v607_v61 = vpop.xlane.xlu1 %606  ;;  %v639_v62 = vmul.f32 0.00390625, %v604_v59  ;;  %v5774_v57 = vld [vmem:[#allocation8 + $0x6c] ss:$24 sps:$4 sm:$0xff]  }
 0x1f9   : > { %5872 = vrsqrt.f32 %v654_v58  ;;  %v640_v63 = vmul.f32 0.00390625, %v607_v61 }
 0x1fa   : > { %v5863_v3 = vpop.eup %5862  ;;  %v655_v10 = vadd.f32 1.1920929e-07, %v639_v62  ;;  %v5772_v62 = vld [vmem:[#allocation8 + $0x68] ss:$24 sps:$4 sm:$0xff]  }
 0x1fb   : > { %v5865_v9 = vpop.eup %5864  ;;  %v656_v11 = vadd.f32 1.1920929e-07, %v640_v63  ;;  %v610_v15 = vpop.xlane.xlu0 %609  ;;  %v682_v22 = vmul.f32 %v5863_v3, %v7244_v1  ;;  %v681_v23 = vmul.f32 %v5863_v3, %v7241_v0  ;;  %v5766_v1 = vld [vmem:[#allocation8 + $0x8] ss:$24 sps:$4 sm:$0xff]   ;;  %v5777_v3 = vld [vmem:[#allocation8 + $0x9c] ss:$24 sps:$4 sm:$0xff]  }
 0x1fc   : > { %v613_v17 = vpop.xlane.xlu1 %612  ;;  %v686_v24 = vmul.f32 %v5865_v9, %v7254_v5  ;;  %5874 = vrsqrt.f32 %v655_v10  ;;  %v641_v37 = vmul.f32 0.00390625, %v610_v15  ;;  %v5771_v5 = vld [vmem:[#allocation8 + $0x3c] ss:$24 sps:$4 sm:$0xff]   ;;  %v685_v55 = vmul.f32 %v5865_v9, %v7247_v2  ;;  %v5775_v15 = vld [vmem:[#allocation8 + $0x98] ss:$24 sps:$4 sm:$0xff]  }
 0x1fd   : > { %5876 = vrsqrt.f32 %v656_v11  ;;  %v642_v42 = vmul.f32 0.00390625, %v613_v17 }
 0x1fe   : > { %v5867_v21 = vpop.eup %5866 }
 0x1ff   : > { %v5869_v25 = vpop.eup %5868  ;;  %v684_v26 = vmul.f32 %v5867_v21, %v7262_v8  ;;  %v683_v34 = vmul.f32 %v5867_v21, %v7259_v7  ;;  %v657_v7 = vadd.f32 1.1920929e-07, %v641_v37  ;;  %v658_v8 = vadd.f32 1.1920929e-07, %v642_v42 }
 0x200   : > { %v688_v38 = vmul.f32 %v5869_v25, %v7274_v13  ;;  %v616_v13 = vpop.xlane.xlu0 %615  ;;  %v619_v54 = vpop.xlane.xlu1 %618  ;;  %v687_v56 = vmul.f32 %v5869_v25, %v7271_v12 }
 0x201   : > { %v7406_v45 = vpack.c.bf16 %v684_v26, %v682_v22  ;;  %v7408_v46 = vpack.c.bf16 %v683_v34, %v681_v23  ;;  %5878 = vrsqrt.f32 %v657_v7  ;;  %v643_v58 = vmul.f32 0.00390625, %v616_v13  ;;  %v5780_v23 = vld [vmem:[#allocation8 + $0xcc] ss:$24 sps:$4 sm:$0xff]   ;;  %v5778_v26 = vld [vmem:[#allocation8 + $0xc8] ss:$24 sps:$4 sm:$0xff]  }
 0x202   : > { %v5871_v47 = vpop.eup %5870  ;;  %v7410_v0 = vpack.c.bf16 %v688_v38, %v686_v24  ;;  %5880 = vrsqrt.f32 %v658_v8  ;;  %v644_v59 = vmul.f32 0.00390625, %v619_v54  ;;  %v5786_v13 = vld [vmem:[#allocation8 + $0x12c] ss:$24 sps:$4 sm:$0xff]  }
 0x203   : > { %v5873_v48 = vpop.eup %5872  ;;  %1337 = vmatprep.mubr.bf16.mxu1 %v7406_v45  ;;  %1563 = vmatprep.mubr.bf16.mxu0 %v7406_v45  ;;  %v690_v52 = vmul.f32 %v5871_v47, %v7290_v20  ;;  %v659_v10 = vadd.f32 1.1920929e-07, %v643_v58  ;;  %v689_v2 = vmul.f32 %v5871_v47, %v7287_v19 }
 0x204   : > { %1338 = vmatmul.mubr.bf16.vlgmr.msra.gmra.mrb[0].mxu1 %v7408_v46  ;;  %1564 = vmatmul.mubr.bf16.vlgmr.msra.gmra.mrb[0].mxu0 %v7408_v46  ;;  %v692_v53 = vmul.f32 %v5873_v48, %v7284_v18  ;;  %v7424_v18 = vpack.c.bf16 %v687_v56, %v685_v55  ;;  %v691_v12 = vmul.f32 %v5873_v48, %v7277_v14  ;;  %v660_v9 = vadd.f32 1.1920929e-07, %v644_v59  ;;  %v622_v11 = vpop.xlane.xlu0 %621  ;;  %v625_v22 = vpop.xlane.xlu1 %624  ;;  %v5787_v59 = vld [vmem:[#allocation8 + $0x158] ss:$24 sps:$4 sm:$0xff]  }
 0x205   : > { %1419 = vmatpush1.bf16.msra.mxu1 %v5766_v1  ;;  %1347 = vmatprep.mubr.bf16.mxu1 %v7410_v0  ;;  %5882 = vrsqrt.f32 %v659_v10  ;;  %v645_v24 = vmul.f32 0.00390625, %v622_v11  ;;  %v646_v14 = vmul.f32 0.00390625, %v625_v22 }
 0x206   : > { %1573 = vmatprep.mubr.bf16.mxu0 %v7410_v0  ;;  %1420 = vmatprep.subr.bf16.mxu1 %v5771_v5  ;;  %v5875_v61 = vpop.eup %5874  ;;  %v7422_v63 = vpack.c.bf16 %v692_v53, %v690_v52  ;;  %v7434_v19 = vpack.c.bf16 %v691_v12, %v689_v2  ;;  %5884 = vrsqrt.f32 %v660_v9  ;;  %v5781_v5 = vld [vmem:[#allocation8 + $0xf8] ss:$24 sps:$4 sm:$0xff]   ;;  %v5784_v53 = vld [vmem:[#allocation8 + $0x128] ss:$24 sps:$4 sm:$0xff]   ;;  %v5795_v12 = vld [vmem:[#allocation8 + $0x1bc] ss:$24 sps:$4 sm:$0xff]  }
 0x207   : > { %v5877_v20 = vpop.eup %5876  ;;  %v694_v17 = vmul.f32 %v5875_v61, %v7304_v29  ;;  %v5783_v29 = vld [vmem:[#allocation8 + $0xfc] ss:$24 sps:$4 sm:$0xff]   ;;  %v693_v38 = vmul.f32 %v5875_v61, %v7301_v28  ;;  %v662_v1 = vadd.f32 1.1920929e-07, %v646_v14  ;;  %v5793_v9 = vld [vmem:[#allocation8 + $0x1b8] ss:$24 sps:$4 sm:$0xff]  }
 0x208   : > { %v696_v21 = vmul.f32 %v5877_v20, %v7310_v31  ;;  %v661_v31 = vadd.f32 1.1920929e-07, %v645_v24  ;;  %v695_v42 = vmul.f32 %v5877_v20, %v7307_v30  ;;  %v628_v47 = vpop.xlane.xlu0 %627  ;;  %v631_v8 = vpop.xlane.xlu1 %630  ;;  %v5792_v20 = vld [vmem:[#allocation8 + $0x18c] ss:$24 sps:$4 sm:$0xff]  }
 0x209   : > { %1421 = vmatpush1.bf16.msra.mxu1 %v5769_v49  ;;  %v647_v49 = vmul.f32 0.00390625, %v628_v47  ;;  %v648_v30 = vmul.f32 0.00390625, %v631_v8  ;;  %v5808_v47 = vld [vmem:[#allocation8 + $0x2a8] ss:$24 sps:$4 sm:$0xff]  }
 0x20a   : > { %1422 = vmatprep.subr.bf16.mxu1 %v5774_v57  ;;  %v7436_v34 = vpack.c.bf16 %v696_v21, %v694_v17  ;;  %5886 = vrsqrt.f32 %v661_v31  ;;  %v7446_v28 = vpack.c.bf16 %v695_v42, %v693_v38  ;;  %v5798_v17 = vld [vmem:[#allocation8 + $0x1ec] ss:$24 sps:$4 sm:$0xff]   ;;  %v5802_v31 = vld [vmem:[#allocation8 + $0x248] ss:$24 sps:$4 sm:$0xff]   ;;  %v5807_v42 = vld [vmem:[#allocation8 + $0x27c] ss:$24 sps:$4 sm:$0xff]  }
 0x20b   : > { %v5879_v25 = vpop.eup %5878  ;;  %5888 = vrsqrt.f32 %v662_v1  ;;  %v664_v58 = vadd.f32 1.1920929e-07, %v648_v30  ;;  %v5805_v1 = vld [vmem:[#allocation8 + $0x278] ss:$24 sps:$4 sm:$0xff]  }
 0x20c   : > { %1348 = vmatmul.mubr.bf16.gmra.mrb[4].mxu1 %v7424_v18  ;;  %1574 = vmatmul.mubr.bf16.gmra.mrb[4].mxu0 %v7424_v18  ;;  %v5881_v37 = vpop.eup %5880  ;;  %v698_v48 = vmul.f32 %v5879_v25, %v7330_v41  ;;  %v5789_v41 = vld [vmem:[#allocation8 + $0x15c] ss:$24 sps:$4 sm:$0xff]   ;;  %v697_v56 = vmul.f32 %v5879_v25, %v7327_v40 }
 0x20d   : > { %1423 = vmatpush1.bf16.msra.mxu1 %v5772_v62  ;;  %1357 = vmatprep.mubr.bf16.mxu1 %v7422_v63  ;;  %v700_v7 = vmul.f32 %v5881_v37, %v7320_v36  ;;  %v663_v36 = vadd.f32 1.1920929e-07, %v647_v49  ;;  %v699_v57 = vmul.f32 %v5881_v37, %v7317_v35  ;;  %v5790_v35 = vld [vmem:[#allocation8 + $0x188] ss:$24 sps:$4 sm:$0xff]   ;;  %v5804_v37 = vld [vmem:[#allocation8 + $0x24c] ss:$24 sps:$4 sm:$0xff]  }
 0x20e   : > { %1424 = vmatprep.subr.bf16.mxu1 %v5777_v3  ;;  %1583 = vmatprep.mubr.bf16.mxu0 %v7422_v63 }
 0x20f   : > { %v5883_v52 = vpop.eup %5882  ;;  %v7448_v54 = vpack.c.bf16 %v700_v7, %v698_v48  ;;  %5890 = vrsqrt.f32 %v663_v36  ;;  %v7458_v3 = vpack.c.bf16 %v699_v57, %v697_v56  ;;  %v5811_v48 = vld [vmem:[#allocation8 + $0x2d8] ss:$24 sps:$4 sm:$0xff]  }
 0x210   : > { %v5885_v55 = vpop.eup %5884  ;;  %v702_v61 = vmul.f32 %v5883_v52, %v7336_v44  ;;  %5892 = vrsqrt.f32 %v664_v58  ;;  %v701_v44 = vmul.f32 %v5883_v52, %v7333_v43 }
 0x211   : > { %1425 = vmatpush1.bf16.msra.mxu1 %v5775_v15  ;;  %v704_v62 = vmul.f32 %v5885_v55, %v7346_v51  ;;  %v703_v51 = vmul.f32 %v5885_v55, %v7343_v50  ;;  %v5801_v50 = vld [vmem:[#allocation8 + $0x21c] ss:$24 sps:$4 sm:$0xff]  }
 0x212   : > { %1426 = vmatprep.subr.bf16.mxu1 %v5780_v23  ;;  %v5796_v23 = vld [vmem:[#allocation8 + $0x1e8] ss:$24 sps:$4 sm:$0xff]  }
 0x213   : > { %v7460_v10 = vpack.c.bf16 %v704_v62, %v702_v61  ;;  %v723_v21 = vpack.c.bf16 %v703_v51, %v701_v44 }
 0x214   : > { %1358 = vmatmul.mubr.bf16.gmra.mrb[8].mxu1 %v7434_v19  ;;  %1584 = vmatmul.mubr.bf16.gmra.mrb[8].mxu0 %v7434_v19  ;;  %v5887_v40 = vpop.eup %5886 }
 0x215   : > { %1427 = vmatpush1.bf16.msra.mxu1 %v5778_v26  ;;  %1367 = vmatprep.mubr.bf16.mxu1 %v7436_v34  ;;  %v5889_v2 = vpop.eup %5888  ;;  %v706_v11 = vmul.f32 %v5887_v40, %v7370_v16  ;;  %v705_v14 = vmul.f32 %v5887_v40, %v7353_v60 }
 0x216   : > { %1428 = vmatprep.subr.bf16.mxu1 %v5783_v29  ;;  %1593 = vmatprep.mubr.bf16.mxu0 %v7436_v34  ;;  %v708_v15 = vmul.f32 %v5889_v2, %v7363_v6  ;;  %v707_v16 = vmul.f32 %v5889_v2, %v7360_v4  ;;  %v5799_v6 = vld [vmem:[#allocation8 + $0x218] ss:$24 sps:$4 sm:$0xff]  }
 0x218   : > { %v726_v24 = vpack.c.bf16 %v708_v15, %v706_v11  ;;  %v725_v29 = vpack.c.bf16 %v707_v16, %v705_v14 }
 0x219   : > { %1429 = vmatpush1.bf16.msra.mxu1 %v5781_v5  ;;  %v5891_v22 = vpop.eup %5890  ;;  %v5813_v5 = vld [vmem:[#allocation8 + $0x2dc] ss:$24 sps:$4 sm:$0xff]  }
 0x21a   : > { %1430 = vmatprep.subr.bf16.mxu1 %v5786_v13  ;;  %v5893_v43 = vpop.eup %5892  ;;  %v710_v25 = vmul.f32 %v5891_v22, %v7390_v39  ;;  %v709_v60 = vmul.f32 %v5891_v22, %v7383_v33 }
 0x21b   : > { %v712_v26 = vmul.f32 %v5893_v43, %v7380_v32  ;;  %v711_v4 = vmul.f32 %v5893_v43, %v7377_v27  ;;  %v5810_v32 = vld [vmem:[#allocation8 + $0x2ac] ss:$24 sps:$4 sm:$0xff]  }
 0x21c   : > { %1368 = vmatmul.mubr.bf16.gmra.mrb[12].mxu1 %v7446_v28  ;;  %1594 = vmatmul.mubr.bf16.gmra.mrb[12].mxu0 %v7446_v28 }
 0x21d   : > { %1431 = vmatpush1.bf16.msra.mxu1 %v5784_v53  ;;  %1377 = vmatprep.mubr.bf16.mxu1 %v7448_v54  ;;  %v728_v38 = vpack.c.bf16 %v712_v26, %v710_v25  ;;  %v727_v39 = vpack.c.bf16 %v711_v4, %v709_v60 }
 0x21e   : > { %1432 = vmatprep.subr.bf16.mxu1 %v5789_v41  ;;  %1603 = vmatprep.mubr.bf16.mxu0 %v7448_v54 }
 0x221   : > { %1433 = vmatpush1.bf16.msra.mxu1 %v5787_v59 }
 0x222   : > { %1434 = vmatprep.subr.bf16.mxu1 %v5792_v20 }
 0x224   : > { %1378 = vmatmul.mubr.bf16.gmra.mrb[16].mxu1 %v7458_v3  ;;  %1604 = vmatmul.mubr.bf16.gmra.mrb[16].mxu0 %v7458_v3 }
 0x225   : > { %1435 = vmatpush1.bf16.msra.mxu1 %v5790_v35  ;;  %1387 = vmatprep.mubr.bf16.mxu1 %v7460_v10 }
 0x226   : > { %1436 = vmatprep.subr.bf16.mxu1 %v5795_v12  ;;  %1613 = vmatprep.mubr.bf16.mxu0 %v7460_v10 }
 0x229   : > { %1437 = vmatpush1.bf16.msra.mxu1 %v5793_v9 }
 0x22a   : > { %1438 = vmatprep.subr.bf16.mxu1 %v5798_v17 }
 0x22c   : > { %1388 = vmatmul.mubr.bf16.gmra.mrb[20].mxu1 %v723_v21  ;;  %1614 = vmatmul.mubr.bf16.gmra.mrb[20].mxu0 %v723_v21 }
 0x22d   : > { %1439 = vmatpush1.bf16.msra.mxu1 %v5796_v23  ;;  %1397 = vmatprep.mubr.bf16.mxu1 %v726_v24 }
 0x22e   : > { %1440 = vmatprep.subr.bf16.mxu1 %v5801_v50  ;;  %1623 = vmatprep.mubr.bf16.mxu0 %v726_v24 }
 0x231   : > { %1441 = vmatpush1.bf16.msra.mxu1 %v5799_v6 }
 0x232   : > { %1442 = vmatprep.subr.bf16.mxu1 %v5804_v37 }
 0x234   : > { %1398 = vmatmul.mubr.bf16.gmra.mrb[24].mxu1 %v725_v29  ;;  %1624 = vmatmul.mubr.bf16.gmra.mrb[24].mxu0 %v725_v29 }
 0x235   : > { %1443 = vmatpush1.bf16.msra.mxu1 %v5802_v31  ;;  %1407 = vmatprep.mubr.bf16.mxu1 %v728_v38 }
 0x236   : > { %1444 = vmatprep.subr.bf16.mxu1 %v5807_v42  ;;  %1633 = vmatprep.mubr.bf16.mxu0 %v728_v38 }
 0x239   : > { %1445 = vmatpush1.bf16.msra.mxu1 %v5805_v1 }
 0x23a   : > { %1446 = vmatprep.subr.bf16.mxu1 %v5810_v32 }
 0x23c   : > { %1408 = vmatmul.mubr.bf16.gmra.mrb[28].mxu1 %v727_v39  ;;  %1634 = vmatmul.mubr.bf16.gmra.mrb[28].mxu0 %v727_v39 }
 0x23d   : > { %1447 = vmatpush1.bf16.msra.mxu1 %v5808_v47  ;;  %1450 = vmatprep.mubr.bf16.mxu1 %v7406_v45 }
 0x23e   : > { %1448 = vmatprep.subr.bf16.mxu1 %v5813_v5 }
 0x241   : > { %1449 = vmatpush1.bf16.msra.mxu1 %v5811_v48 }
 0x244   : > { %1451 = vmatmul.mubr.bf16.vlgmr.msra.gmra.mrb[32].mxu1 %v7408_v46 }
 0x245   : > { %1460 = vmatprep.mubr.bf16.mxu1 %v7410_v0 }
 0x24c   : > { %1461 = vmatmul.mubr.bf16.gmra.mrb[36].mxu1 %v7424_v18 }
 0x24d   : > { %1470 = vmatprep.mubr.bf16.mxu1 %v7422_v63 }
 0x254   : > { %1471 = vmatmul.mubr.bf16.gmra.mrb[40].mxu1 %v7434_v19 }
 0x255   : > { %1480 = vmatprep.mubr.bf16.mxu1 %v7436_v34 }
 0x25c   : > { %1481 = vmatmul.mubr.bf16.gmra.mrb[44].mxu1 %v7446_v28 }
 0x25d   : > { %1490 = vmatprep.mubr.bf16.mxu1 %v7448_v54 }
 0x264   : > { %1491 = vmatmul.mubr.bf16.gmra.mrb[48].mxu1 %v7458_v3 }
 0x265   : > { %1500 = vmatprep.mubr.bf16.mxu1 %v7460_v10 }
 0x26c   : > { %1501 = vmatmul.mubr.bf16.gmra.mrb[52].mxu1 %v723_v21 }
 0x26d   : > { %1510 = vmatprep.mubr.bf16.mxu1 %v726_v24 }
 0x274   : > { %1511 = vmatmul.mubr.bf16.gmra.mrb[56].mxu1 %v725_v29 }
 0x275   : > { %1520 = vmatprep.mubr.bf16.mxu1 %v728_v38 }
 0x27c   : > { %1521 = vmatmul.mubr.bf16.gmra.mrb[60].mxu1 %v727_v39 }
 0x2d7   : > { %v7487_v27 = vpop.f32.mrb[0].mxu1  ;;  %v1565_v33 = vpop.f32.mrb[0].mxu0 }
 0x2d8   : > { %v7489_v45 = vpop.f32.mrb[1].mxu1  ;;  %v1567_v46 = vpop.f32.mrb[1].mxu0 }
 0x2d9   : > { %9131 = vst [vmem:[#allocation38_spill] sm:$0xff] %v7489_v45  ;;  %v7491_v0 = vpop.f32.mrb[2].mxu1  ;;  %v1569_v63 = vpop.f32.mrb[2].mxu0 }
 0x2da   : > { %v7493_v18 = vpack.c.bf16 %v1569_v63, %v1565_v33  ;;  %v1571_v19 = vpop.f32.mrb[3].mxu0  ;;  %1694 = vrot.lane.b32.xlu1 %v7491_v0, %s6748_s16  ;;  %v7497_v34 = vpop.f32.mrb[3].mxu1 }
 0x2db   : > { %9133 = vst [vmem:[#allocation40_spill] sm:$0xff] %v7497_v34  ;;  %v7499_v7 = vpack.c.bf16 %v1571_v19, %v1567_v46 }
 0x2dc   : > { %9132 = vst [vmem:[#allocation39_spill] sm:$0xff] %v7493_v18 }
 0x2dd   : > { %9134 = vst [vmem:[#allocation41_spill] sm:$0xff] %v7499_v7 }
 0x2df   : > { %v7501_v8 = vpop.f32.mrb[4].mxu1  ;;  %v1575_v13 = vpop.f32.mrb[4].mxu0 }
 0x2e0   : > { %v7503_v49 = vpop.f32.mrb[5].mxu1  ;;  %v1577_v28 = vpop.f32.mrb[5].mxu0 }
 0x2e1   : > { %9135 = vst [vmem:[#allocation42_spill] sm:$0xff] %v7503_v49  ;;  %v7505_v30 = vpop.f32.mrb[6].mxu1  ;;  %v1579_v52 = vpop.f32.mrb[6].mxu0 }
 0x2e2   : > { %v7507_v53 = vpack.c.bf16 %v1579_v52, %v1575_v13  ;;  %v7509_v54 = vpop.f32.mrb[7].mxu1  ;;  %v1581_v55 = vpop.f32.mrb[7].mxu0  ;;  %v7573_v52 = vld [vmem:[#allocation16 + $0x70] sm:$0xff] }
 0x2e3   : > { %9137 = vst [vmem:[#allocation44_spill] sm:$0xff] %v7509_v54  ;;  %v7511_v41 = vpack.c.bf16 %v1581_v55, %v1577_v28  ;;  %9161 = vst [vmem:[#allocation68_spill] sm:$0xff] %v7573_v52 }
 0x2e4   : > { %9136 = vst [vmem:[#allocation43_spill] sm:$0xff] %v7507_v53 }
 0x2e5   : > { %9138 = vst [vmem:[#allocation45_spill] sm:$0xff] %v7511_v41 }
 0x2e7   : > { %v7513_v36 = vpop.f32.mrb[8].mxu1  ;;  %v1585_v56 = vpop.f32.mrb[8].mxu0 }
 0x2e8   : > { %v7515_v57 = vpop.f32.mrb[9].mxu1  ;;  %v1587_v58 = vpop.f32.mrb[9].mxu0 }
 0x2e9   : > { %9139 = vst [vmem:[#allocation46_spill] sm:$0xff] %v7515_v57  ;;  %v7517_v59 = vpop.f32.mrb[10].mxu1  ;;  %v1589_v61 = vpop.f32.mrb[10].mxu0 }
 0x2ea   : > { %v7519_v62 = vpack.c.bf16 %v1589_v61, %v1585_v56  ;;  %v7521_v20 = vpop.f32.mrb[11].mxu1  ;;  %v1591_v3 = vpop.f32.mrb[11].mxu0 }
 0x2eb   : > { %9141 = vst [vmem:[#allocation48_spill] sm:$0xff] %v7521_v20  ;;  %v7523_v40 = vpack.c.bf16 %v1591_v3, %v1587_v58  ;;  %v7579_v3 = vld [vmem:[#allocation16 + $0x78] sm:$0xff] }
 0x2ec   : > { %9140 = vst [vmem:[#allocation47_spill] sm:$0xff] %v7519_v62  ;;  %9163 = vst [vmem:[#allocation70_spill] sm:$0xff] %v7579_v3 }
 0x2ed   : > { %9142 = vst [vmem:[#allocation49_spill] sm:$0xff] %v7523_v40 }
 0x2ef   : > { %v7525_v35 = vpop.f32.mrb[12].mxu1  ;;  %v1595_v10 = vpop.f32.mrb[12].mxu0 }
 0x2f0   : > { %v7527_v2 = vpop.f32.mrb[13].mxu1  ;;  %v1597_v12 = vpop.f32.mrb[13].mxu0 }
 0x2f1   : > { %9143 = vst [vmem:[#allocation50_spill] sm:$0xff] %v7527_v2  ;;  %v7529_v44 = vpop.f32.mrb[14].mxu1  ;;  %v1599_v51 = vpop.f32.mrb[14].mxu0 }
 0x2f2   : > { %v7531_v9 = vpack.c.bf16 %v1599_v51, %v1595_v10  ;;  %v7533_v11 = vpop.f32.mrb[15].mxu1  ;;  %v1601_v15 = vpop.f32.mrb[15].mxu0 }
 0x2f3   : > { %9145 = vst [vmem:[#allocation52_spill] sm:$0xff] %v7533_v11  ;;  %v7535_v17 = vpack.c.bf16 %v1601_v15, %v1597_v12 }
 0x2f4   : > { %9144 = vst [vmem:[#allocation51_spill] sm:$0xff] %v7531_v9 }
 0x2f5   : > { %9146 = vst [vmem:[#allocation53_spill] sm:$0xff] %v7535_v17 }
 0x2f7   : > { %v7537_v21 = vpop.f32.mrb[16].mxu1  ;;  %v1605_v22 = vpop.f32.mrb[16].mxu0 }
 0x2f8   : > { %v7539_v23 = vpop.f32.mrb[17].mxu1  ;;  %v1607_v24 = vpop.f32.mrb[17].mxu0 }
 0x2f9   : > { %9147 = vst [vmem:[#allocation54_spill] sm:$0xff] %v7539_v23  ;;  %v7541_v43 = vpop.f32.mrb[18].mxu1  ;;  %v1609_v50 = vpop.f32.mrb[18].mxu0 }
 0x2fa   : > { %v7543_v14 = vpack.c.bf16 %v1609_v50, %v1605_v22  ;;  %v7545_v16 = vpop.f32.mrb[19].mxu1  ;;  %v1611_v6 = vpop.f32.mrb[19].mxu0 }
 0x2fb   : > { %9149 = vst [vmem:[#allocation56_spill] sm:$0xff] %v7545_v16  ;;  %v7547_v25 = vpack.c.bf16 %v1611_v6, %v1607_v24 }
 0x2fc   : > { %9148 = vst [vmem:[#allocation55_spill] sm:$0xff] %v7543_v14 }
 0x2fd   : > { %9150 = vst [vmem:[#allocation57_spill] sm:$0xff] %v7547_v25 }
 0x2ff   : > { %v7549_v26 = vpop.f32.mrb[20].mxu1  ;;  %v1615_v37 = vpop.f32.mrb[20].mxu0 }
 0x300   : > { %v7551_v29 = vpop.f32.mrb[21].mxu1  ;;  %v1617_v31 = vpop.f32.mrb[21].mxu0 }
 0x301   : > { %9151 = vst [vmem:[#allocation58_spill] sm:$0xff] %v7551_v29  ;;  %v7553_v38 = vpop.f32.mrb[22].mxu1  ;;  %v1619_v42 = vpop.f32.mrb[22].mxu0 }
 0x302   : > { %v7555_v60 = vpack.c.bf16 %v1619_v42, %v1615_v37  ;;  %v7557_v4 = vpop.f32.mrb[23].mxu1  ;;  %v1621_v1 = vpop.f32.mrb[23].mxu0 }
 0x303   : > { %9153 = vst [vmem:[#allocation60_spill] sm:$0xff] %v7557_v4  ;;  %v7559_v32 = vpack.c.bf16 %v1621_v1, %v1617_v31 }
 0x304   : > { %9152 = vst [vmem:[#allocation59_spill] sm:$0xff] %v7555_v60 }
 0x305   : > { %9154 = vst [vmem:[#allocation61_spill] sm:$0xff] %v7559_v32 }
 0x307   : > { %v7561_v39 = vpop.f32.mrb[24].mxu1  ;;  %v1625_v47 = vpop.f32.mrb[24].mxu0 }
 0x308   : > { %9155 = vst [vmem:[#allocation62_spill] sm:$0xff] %v7561_v39  ;;  %v7563_v5 = vpop.f32.mrb[25].mxu1  ;;  %v1627_v48 = vpop.f32.mrb[25].mxu0 }
 0x309   : > { %9156 = vst [vmem:[#allocation63_spill] sm:$0xff] %v7563_v5  ;;  %v7565_v33 = vpop.f32.mrb[26].mxu1  ;;  %v1629_v46 = vpop.f32.mrb[26].mxu0 }
 0x30a   : > { %9157 = vst [vmem:[#allocation64_spill] sm:$0xff] %v7565_v33  ;;  %v7567_v63 = vpack.c.bf16 %v1629_v46, %v1625_v47  ;;  %v7569_v19 = vpop.f32.mrb[27].mxu1  ;;  %v1631_v13 = vpop.f32.mrb[27].mxu0 }
 0x30b   : > { %9159 = vst [vmem:[#allocation66_spill] sm:$0xff] %v7569_v19  ;;  %v7571_v28 = vpack.c.bf16 %v1631_v13, %v1627_v48 }
 0x30c   : > { %9158 = vst [vmem:[#allocation65_spill] sm:$0xff] %v7567_v63 }
 0x30d   : > { %9160 = vst [vmem:[#allocation67_spill] sm:$0xff] %v7571_v28 }
 0x30f   : > { %v7575_v55 = vpop.f32.mrb[28].mxu1  ;;  %v1635_v56 = vpop.f32.mrb[28].mxu0 }
 0x310   : > { %9162 = vst [vmem:[#allocation69_spill] sm:$0xff] %v7575_v55  ;;  %v7577_v58 = vpop.f32.mrb[29].mxu1  ;;  %v1637_v61 = vpop.f32.mrb[29].mxu0 }
 0x311   : > { %v7583_v10 = vmul.f32 %v7573_v52, %v7577_v58  ;;  %v7585_v12 = vpop.f32.mrb[30].mxu1  ;;  %v1639_v51 = vpop.f32.mrb[30].mxu0 }
 0x312   : > { %9165 = vst [vmem:[#allocation72_spill] sm:$0xff] %v7585_v12  ;;  %v7587_v15 = vpack.c.bf16 %v1639_v51, %v1635_v56  ;;  %v7589_v22 = vpop.f32.mrb[31].mxu1  ;;  %v1641_v24 = vpop.f32.mrb[31].mxu0 }
 0x313   : > { %9164 = vst [vmem:[#allocation71_spill] sm:$0xff] %v7583_v10  ;;  %v7593_v50 = vmul.f32 %v7579_v3, %v7589_v22  ;;  %v7595_v6 = vpack.c.bf16 %v1641_v24, %v1637_v61 }
 0x314   : > { %9166 = vst [vmem:[#allocation73_spill] sm:$0xff] %v7587_v15 }
 0x315   : > { %9167 = vst [vmem:[#allocation74_spill] sm:$0xff] %v7593_v50  ;;  %9168 = vst [vmem:[#allocation75_spill] sm:$0xff] %v7595_v6 }
 0x317   : > { %v7597_v37 = vpop.f32.mrb[32].mxu1 }
 0x318   : > { %1780 = vrot.lane.b32.xlu0 %v7597_v37, %s6748_s16  ;;  %v7601_v31 = vpop.f32.mrb[33].mxu1 }
 0x319   : > { %v7603_v42 = vpop.f32.mrb[34].mxu1 }
 0x31a   : > { %1782 = vrot.lane.b32.xlu1 %v7603_v42, %s6748_s16  ;;  %v7607_v1 = vpop.f32.mrb[35].mxu1 }
 0x31c   : > { %1692 = vrot.lane.b32.xlu0 %v7487_v27, %s6748_s16 }
 0x31e   : > { %2320 = vrot.lane.b32.xlu1 %v7607_v1, %s6748_s16 }
 0x31f   : > { %v7613_v47 = vpop.f32.mrb[36].mxu1 }
 0x320   : > { %2318 = vrot.lane.b32.xlu0 %v7601_v31, %s6748_s16  ;;  %v7617_v48 = vpop.f32.mrb[37].mxu1 }
 0x321   : > { %v7619_v46 = vpop.f32.mrb[38].mxu1 }
 0x322   : > { %1784 = vrot.lane.b32.xlu1 %v7613_v47, %s6748_s16  ;;  %v7623_v13 = vpop.f32.mrb[39].mxu1 }
 0x324   : > { %2322 = vrot.lane.b32.xlu0 %v7617_v48, %s6748_s16 }
 0x326   : > { %1786 = vrot.lane.b32.xlu1 %v7619_v46, %s6748_s16 }
 0x327   : > { %v7629_v56 = vpop.f32.mrb[40].mxu1 }
 0x328   : > { %1788 = vrot.lane.b32.xlu0 %v7629_v56, %s6748_s16  ;;  %v7633_v61 = vpop.f32.mrb[41].mxu1 }
 0x329   : > { %v7635_v51 = vpop.f32.mrb[42].mxu1 }
 0x32a   : > { %2324 = vrot.lane.b32.xlu1 %v7623_v13, %s6748_s16  ;;  %v7639_v24 = vpop.f32.mrb[43].mxu1 }
 0x32c   : > { %2326 = vrot.lane.b32.xlu0 %v7633_v61, %s6748_s16 }
 0x32e   : > { %1790 = vrot.lane.b32.xlu1 %v7635_v51, %s6748_s16 }
 0x32f   : > { %v7645_v6 = vpop.f32.mrb[44].mxu1 }
 0x330   : > { %1792 = vrot.lane.b32.xlu0 %v7645_v6, %s6748_s16  ;;  %v7649_v28 = vpop.f32.mrb[45].mxu1 }
 0x331   : > { %v7651_v32 = vpop.f32.mrb[46].mxu1 }
 0x332   : > { %2328 = vrot.lane.b32.xlu1 %v7639_v24, %s6748_s16  ;;  %v7655_v25 = vpop.f32.mrb[47].mxu1 }
 0x334   : > { %2330 = vrot.lane.b32.xlu0 %v7649_v28, %s6748_s16 }
 0x336   : > { %1794 = vrot.lane.b32.xlu1 %v7651_v32, %s6748_s16 }
 0x337   : > { %v7661_v17 = vpop.f32.mrb[48].mxu1 }
 0x338   : > { %1796 = vrot.lane.b32.xlu0 %v7661_v17, %s6748_s16  ;;  %v7665_v40 = vpop.f32.mrb[49].mxu1 }
 0x339   : > { %v7667_v41 = vpop.f32.mrb[50].mxu1 }
 0x33a   : > { %2332 = vrot.lane.b32.xlu1 %v7655_v25, %s6748_s16  ;;  %v7671_v50 = vpop.f32.mrb[51].mxu1 }
 0x33c   : > { %1696 = vrot.lane.b32.xlu0 %v7501_v8, %s6748_s16 }
 0x33e   : > { %1798 = vrot.lane.b32.xlu1 %v7667_v41, %s6748_s16 }
 0x33f   : > { %v7677_v10 = vpop.f32.mrb[52].mxu1 }
 0x340   : > { %1800 = vrot.lane.b32.xlu0 %v7677_v10, %s6748_s16  ;;  %v7681_v7 = vpop.f32.mrb[53].mxu1 }
 0x341   : > { %v7683_v15 = vpop.f32.mrb[54].mxu1 }
 0x342   : > { %1698 = vrot.lane.b32.xlu1 %v7505_v30, %s6748_s16  ;;  %v7687_v63 = vpop.f32.mrb[55].mxu1 }
 0x344   : > { %2334 = vrot.lane.b32.xlu0 %v7665_v40, %s6748_s16 }
 0x346   : > { %1802 = vrot.lane.b32.xlu1 %v7683_v15, %s6748_s16 }
 0x347   : > { %v7693_v60 = vpop.f32.mrb[56].mxu1 }
 0x348   : > { %1804 = vrot.lane.b32.xlu0 %v7693_v60, %s6748_s16  ;;  %v7697_v14 = vpop.f32.mrb[57].mxu1 }
 0x349   : > { %v7699_v9 = vpop.f32.mrb[58].mxu1 }
 0x34a   : > { %2336 = vrot.lane.b32.xlu1 %v7671_v50, %s6748_s16  ;;  %v7703_v62 = vpop.f32.mrb[59].mxu1 }
 0x34c   : > { %1700 = vrot.lane.b32.xlu0 %v7513_v36, %s6748_s16 }
 0x34e   : > { %1806 = vrot.lane.b32.xlu1 %v7699_v9, %s6748_s16 }
 0x34f   : > { %v7709_v53 = vpop.f32.mrb[60].mxu1 }
 0x350   : > { %1808 = vrot.lane.b32.xlu0 %v7709_v53, %s6748_s16  ;;  %v7713_v18 = vpop.f32.mrb[61].mxu1 }
 0x351   : > { %9169 = vst [vmem:[#allocation76_spill] sm:$0xff] %v7713_v18  ;;  %v7715_v3 = vpop.f32.mrb[62].mxu1 }
 0x352   : > { %1702 = vrot.lane.b32.xlu1 %v7517_v59, %s6748_s16  ;;  %v7719_v52 = vpop.f32.mrb[63].mxu1 }
 0x353   : > { %9170 = vst [vmem:[#allocation77_spill] sm:$0xff] %v7719_v52 }
 0x354   : > { %1704 = vrot.lane.b32.xlu0 %v7525_v35, %s6748_s16 }
 0x356   : > { %1810 = vrot.lane.b32.xlu1 %v7715_v3, %s6748_s16 }
 0x358   : > { %2338 = vrot.lane.b32.xlu0 %v7681_v7, %s6748_s16 }
 0x35a   : > { %1706 = vrot.lane.b32.xlu1 %v7529_v44, %s6748_s16 }
 0x35c   : > { %1708 = vrot.lane.b32.xlu0 %v7537_v21, %s6748_s16 }
 0x35e   : > { %2340 = vrot.lane.b32.xlu1 %v7687_v63, %s6748_s16 }
 0x360   : > { %1712 = vrot.lane.b32.xlu0 %v7549_v26, %s6748_s16 }
 0x362   : > { %1710 = vrot.lane.b32.xlu1 %v7541_v43, %s6748_s16 }
 0x364   : > { %2342 = vrot.lane.b32.xlu0 %v7697_v14, %s6748_s16 }
 0x366   : > { %1714 = vrot.lane.b32.xlu1 %v7553_v38, %s6748_s16 }
 0x368   : > { %1716 = vrot.lane.b32.xlu0 %v7561_v39, %s6748_s16 }
 0x36a   : > { %2344 = vrot.lane.b32.xlu1 %v7703_v62, %s6748_s16 }
 0x36c   : > { %1720 = vrot.lane.b32.xlu0 %v7575_v55, %s6748_s16 }
 0x36e   : > { %1718 = vrot.lane.b32.xlu1 %v7565_v33, %s6748_s16 }
 0x370   : > { %2346 = vrot.lane.b32.xlu0 %v7713_v18, %s6748_s16 }
 0x372   : > { %1722 = vrot.lane.b32.xlu1 %v7585_v12, %s6748_s16 }
 0x374   : > { %2230 = vrot.lane.b32.xlu0 %v7489_v45, %s6748_s16 }
 0x376   : > { %2348 = vrot.lane.b32.xlu1 %v7719_v52, %s6748_s16 }
 0x378   : > { %2234 = vrot.lane.b32.xlu0 %v7503_v49, %s6748_s16  ;;  %v1695_v49 = vpop.permute.xlu1 %1694 }
 0x37a   : > { %2232 = vrot.lane.b32.xlu1 %v7497_v34, %s6748_s16  ;;  %v7777_v34 = vld [vmem:[#allocation17 + $0x8] sm:$0xff] }
 0x37b   : > { %v1725_v52 = vmul.f32 %v1695_v49, %v7777_v34 }
 0x37c   : > { %2238 = vrot.lane.b32.xlu0 %v7515_v57, %s6748_s16  ;;  %v7775_v57 = vld [vmem:[#allocation17] sm:$0xff] }
 0x37e   : > { %2236 = vrot.lane.b32.xlu1 %v7509_v54, %s6748_s16 }
 0x380   : > { %2242 = vrot.lane.b32.xlu0 %v7527_v2, %s6748_s16  ;;  %v7781_v2 = vld [vmem:[#allocation16] sm:$0xff] }
 0x381   : > { %v1676_v18 = vmul.f32 %v7781_v2, %v7487_v27 }
 0x382   : > { %2240 = vrot.lane.b32.xlu1 %v7521_v20, %s6748_s16 }
 0x384   : > { %2246 = vrot.lane.b32.xlu0 %v7539_v23, %s6748_s16  ;;  %v7784_v23 = vld [vmem:[#allocation16 + $0x8] sm:$0xff] }
 0x386   : > { %2244 = vrot.lane.b32.xlu1 %v7533_v11, %s6748_s16  ;;  %v1765_v11 = vmul.f32 %v7784_v23, %v7603_v42 }
 0x388   : > { %2250 = vrot.lane.b32.xlu0 %v7551_v29, %s6748_s16  ;;  %v1764_v29 = vmul.f32 %v7781_v2, %v7597_v37 }
 0x38a   : > { %v1781_v54 = vpop.permute.xlu0 %1780  ;;  %2248 = vrot.lane.b32.xlu1 %v7545_v16, %s6748_s16 }
 0x38b   : > { %v1812_v20 = vmul.f32 %v1781_v54, %v7775_v57 }
 0x38c   : > { %v1783_v45 = vpop.permute.xlu1 %1782  ;;  %2254 = vrot.lane.b32.xlu0 %v7563_v5, %s6748_s16  ;;  %v1677_v5 = vmul.f32 %v7784_v23, %v7491_v0  ;;  %v2302_v0 = vmul.f32 %v7781_v2, %v7601_v31  ;;  %v7818_v31 = vld [vmem:[#allocation16 + $0x10] sm:$0xff] }
 0x38d   : > { %v1813_v16 = vmul.f32 %v1783_v45, %v7777_v34  ;;  %v1828_v12 = vadd.f32 %v1812_v20, %v1764_v29  ;;  %v2303_v20 = vmul.f32 %v7784_v23, %v7607_v1  ;;  %v7811_v29 = vld [vmem:[#allocation17 + $0x10] sm:$0xff] }
 0x38e   : > { %v1693_v54 = vpop.permute.xlu0 %1692  ;;  %2252 = vrot.lane.b32.xlu1 %v7557_v4, %s6748_s16  ;;  %v1741_v49 = vadd.f32 %v1725_v52, %v1677_v5 }
 0x38f   : > { %v1829_v55 = vadd.f32 %v1813_v16, %v1765_v11  ;;  %v1724_v37 = vmul.f32 %v1693_v54, %v7775_v57  ;;  %v1766_v54 = vmul.f32 %v7818_v31, %v7613_v47 }
 0x390   : > { %v2321_v33 = vpop.permute.xlu1 %2320  ;;  %2258 = vrot.lane.b32.xlu0 %v7577_v58, %s6748_s16 }
 0x391   : > { %v1740_v45 = vadd.f32 %v1724_v37, %v1676_v18  ;;  %v2351_v42 = vmul.f32 %v2321_v33, %v7777_v34  ;;  %v1844_v27 = vpack.c.bf16 %v1829_v55, %v1828_v12  ;;  %v7815_v55 = vld [vmem:[#allocation17 + $0x18] sm:$0xff] }
 0x392   : > { %v2319_v39 = vpop.permute.xlu0 %2318  ;;  %2256 = vrot.lane.b32.xlu1 %v7569_v19, %s6748_s16 }
 0x393   : > { %v2350_v11 = vmul.f32 %v2319_v39, %v7775_v57  ;;  %5342 = vmatprep.subr.bf16.mxu1 %v1844_v27  ;;  %v1756_v16 = vpack.c.bf16 %v1741_v49, %v1740_v45  ;;  %v2367_v5 = vadd.f32 %v2351_v42, %v2303_v20  ;;  %v7820_v39 = vld [vmem:[#allocation16 + $0x18] sm:$0xff] }
 0x394   : > { %5343 = vmatpush3.bf16.xpose.msra.mxu1 %v1844_v27  ;;  %v1785_v18 = vpop.permute.xlu1 %1784  ;;  %v1767_v37 = vmul.f32 %v7820_v39, %v7619_v46  ;;  %v2305_v47 = vmul.f32 %v7820_v39, %v7623_v13 }
 0x395   : > { %v2366_v33 = vadd.f32 %v2350_v11, %v2302_v0  ;;  %5358 = vmatprep.mubr.bf16.mxu1 %v1756_v16  ;;  %v1814_v58 = vmul.f32 %v1785_v18, %v7811_v29  ;;  %v7828_v0 = vld [vmem:[#allocation17 + $0x20] sm:$0xff]  ;;  %v2304_v11 = vmul.f32 %v7818_v31, %v7617_v48 }
 0x396   : > { %v2323_v52 = vpop.permute.xlu0 %2322  ;;  %2260 = vrot.lane.b32.xlu1 %v7589_v22, %s6748_s16 }
 0x397   : > { %v2382_v12 = vpack.c.bf16 %v2367_v5, %v2366_v33  ;;  %v1830_v45 = vadd.f32 %v1814_v58, %v1766_v54  ;;  %v2352_v42 = vmul.f32 %v2323_v52, %v7811_v29  ;;  %v7835_v5 = vld [vmem:[#allocation17 + $0x28] sm:$0xff] }
 0x398   : > { %v1787_v1 = vpop.permute.xlu1 %1786 }
 0x399   : > { %v1815_v49 = vmul.f32 %v1787_v1, %v7815_v55  ;;  %5406 = vmatprep.subr.bf16.mxu0 %v2382_v12  ;;  %v2368_v33 = vadd.f32 %v2352_v42, %v2304_v11  ;;  %v7840_v1 = vld [vmem:[#allocation16 + $0x28] sm:$0xff] }
 0x39a   : > { %5407 = vmatpush3.bf16.xpose.msra.mxu0 %v2382_v12  ;;  %v1789_v22 = vpop.permute.xlu0 %1788  ;;  %v7838_v12 = vld [vmem:[#allocation16 + $0x20] sm:$0xff]  ;;  %v1769_v54 = vmul.f32 %v7840_v1, %v7635_v51 }
 0x39b   : > { %v1831_v27 = vadd.f32 %v1815_v49, %v1767_v37  ;;  %v1816_v58 = vmul.f32 %v1789_v22, %v7828_v0  ;;  %v1768_v13 = vmul.f32 %v7838_v12, %v7629_v56  ;;  %v2307_v56 = vmul.f32 %v7840_v1, %v7639_v24 }
 0x39c   : > { %v2325_v20 = vpop.permute.xlu1 %2324 }
 0x39d   : > { %v2353_v46 = vmul.f32 %v2325_v20, %v7815_v55  ;;  %v1845_v16 = vpack.c.bf16 %v1831_v27, %v1830_v45  ;;  %v1832_v42 = vadd.f32 %v1816_v58, %v1768_v13  ;;  %v7848_v20 = vld [vmem:[#allocation17 + $0x30] sm:$0xff]  ;;  %v7860_v13 = vld [vmem:[#allocation16 + $0x38] sm:$0xff] }
 0x39e   : > { %v2327_v18 = vpop.permute.xlu0 %2326 }
 0x39f   : > { %v2369_v52 = vadd.f32 %v2353_v46, %v2305_v47  ;;  %5344 = vmatprep.subr.bf16.mxu1 %v1845_v16  ;;  %v2354_v22 = vmul.f32 %v2327_v18, %v7828_v0  ;;  %v2306_v47 = vmul.f32 %v7838_v12, %v7633_v61 }
 0x3a0   : > { %5345 = vmatpush3.bf16.xpose.msra.mxu1 %v1845_v16  ;;  %v1791_v48 = vpop.permute.xlu1 %1790 }
 0x3a1   : > { %v1817_v37 = vmul.f32 %v1791_v48, %v7835_v5  ;;  %v2383_v49 = vpack.c.bf16 %v2369_v52, %v2368_v33  ;;  %v7855_v33 = vld [vmem:[#allocation17 + $0x38] sm:$0xff]  ;;  %v2370_v58 = vadd.f32 %v2354_v22, %v2306_v47  ;;  %v7858_v48 = vld [vmem:[#allocation16 + $0x30] sm:$0xff] }
 0x3a2   : > { %v1793_v45 = vpop.permute.xlu0 %1792  ;;  %v1770_v24 = vmul.f32 %v7858_v48, %v7645_v6  ;;  %v2309_v6 = vmul.f32 %v7860_v13, %v7655_v25 }
 0x3a3   : > { %v1833_v27 = vadd.f32 %v1817_v37, %v1769_v54  ;;  %5408 = vmatprep.subr.bf16.mxu0 %v2383_v49  ;;  %v1818_v18 = vmul.f32 %v1793_v45, %v7848_v20  ;;  %v1771_v54 = vmul.f32 %v7860_v13, %v7651_v32 }
 0x3a4   : > { %5409 = vmatpush3.bf16.xpose.msra.mxu0 %v2383_v49  ;;  %v2329_v11 = vpop.permute.xlu1 %2328 }
 0x3a5   : > { %v2355_v51 = vmul.f32 %v2329_v11, %v7835_v5  ;;  %v1846_v46 = vpack.c.bf16 %v1833_v27, %v1832_v42  ;;  %v1834_v22 = vadd.f32 %v1818_v18, %v1770_v24  ;;  %v7868_v11 = vld [vmem:[#allocation17 + $0x40] sm:$0xff]  ;;  %v7880_v24 = vld [vmem:[#allocation16 + $0x48] sm:$0xff] }
 0x3a6   : > { %v2331_v16 = vpop.permute.xlu0 %2330 }
 0x3a7   : > { %v2371_v52 = vadd.f32 %v2355_v51, %v2307_v56  ;;  %5346 = vmatprep.subr.bf16.mxu1 %v1846_v46  ;;  %v2356_v45 = vmul.f32 %v2331_v16, %v7848_v20  ;;  %v2308_v56 = vmul.f32 %v7858_v48, %v7649_v28 }
 0x3a8   : > { %5347 = vmatpush3.bf16.xpose.msra.mxu1 %v1846_v46  ;;  %v1795_v61 = vpop.permute.xlu1 %1794 }
 0x3a9   : > { %v1819_v37 = vmul.f32 %v1795_v61, %v7855_v33  ;;  %v2384_v49 = vpack.c.bf16 %v2371_v52, %v2370_v58  ;;  %v7875_v58 = vld [vmem:[#allocation17 + $0x48] sm:$0xff]  ;;  %v2372_v18 = vadd.f32 %v2356_v45, %v2308_v56  ;;  %v7878_v61 = vld [vmem:[#allocation16 + $0x40] sm:$0xff] }
 0x3aa   : > { %v1797_v42 = vpop.permute.xlu0 %1796  ;;  %v1772_v25 = vmul.f32 %v7878_v61, %v7661_v17  ;;  %v1679_v17 = vmul.f32 %v7820_v39, %v7505_v30 }
 0x3ab   : > { %v1835_v27 = vadd.f32 %v1819_v37, %v1771_v54  ;;  %5410 = vmatprep.subr.bf16.mxu0 %v2384_v49  ;;  %v1820_v16 = vmul.f32 %v1797_v42, %v7868_v11  ;;  %v1773_v54 = vmul.f32 %v7880_v24, %v7667_v41 }
 0x3ac   : > { %5411 = vmatpush3.bf16.xpose.msra.mxu0 %v2384_v49  ;;  %v2333_v47 = vpop.permute.xlu1 %2332 }
 0x3ad   : > { %v2357_v32 = vmul.f32 %v2333_v47, %v7855_v33  ;;  %v1847_v51 = vpack.c.bf16 %v1835_v27, %v1834_v22  ;;  %v1836_v45 = vadd.f32 %v1820_v16, %v1772_v25  ;;  %v7888_v47 = vld [vmem:[#allocation17 + $0x50] sm:$0xff]  ;;  %v7904_v25 = vld [vmem:[#allocation16 + $0x58] sm:$0xff] }
 0x3ae   : > { %v1697_v46 = vpop.permute.xlu0 %1696 }
 0x3af   : > { %v2373_v52 = vadd.f32 %v2357_v32, %v2309_v6  ;;  %5348 = vmatprep.subr.bf16.mxu1 %v1847_v51  ;;  %v1726_v42 = vmul.f32 %v1697_v46, %v7811_v29  ;;  %v1678_v6 = vmul.f32 %v7818_v31, %v7501_v8 }
 0x3b0   : > { %5349 = vmatpush3.bf16.xpose.msra.mxu1 %v1847_v51  ;;  %v1799_v28 = vpop.permute.xlu1 %1798 }
 0x3b1   : > { %v1821_v37 = vmul.f32 %v1799_v28, %v7875_v58  ;;  %v2385_v49 = vpack.c.bf16 %v2373_v52, %v2372_v18  ;;  %v7895_v18 = vld [vmem:[#allocation17 + $0x58] sm:$0xff]  ;;  %v7897_v16 = vadd.f32 %v1726_v42, %v1678_v6  ;;  %v7902_v28 = vld [vmem:[#allocation16 + $0x50] sm:$0xff] }
 0x3b2   : > { %v1801_v22 = vpop.permute.xlu0 %1800  ;;  %v1774_v30 = vmul.f32 %v7902_v28, %v7677_v10  ;;  %v2311_v10 = vmul.f32 %v7880_v24, %v7671_v50 }
 0x3b3   : > { %v1837_v27 = vadd.f32 %v1821_v37, %v1773_v54  ;;  %5412 = vmatprep.subr.bf16.mxu0 %v2385_v49  ;;  %v1822_v46 = vmul.f32 %v1801_v22, %v7888_v47  ;;  %v1775_v54 = vmul.f32 %v7904_v25, %v7683_v15  ;;  %v7921_v37 = vld [vmem:[#allocation17 + $0x68] sm:$0xff] }
 0x3b4   : > { %5413 = vmatpush3.bf16.xpose.msra.mxu0 %v2385_v49  ;;  %v1699_v56 = vpop.permute.xlu1 %1698 }
 0x3b5   : > { %v1727_v41 = vmul.f32 %v1699_v56, %v7815_v55  ;;  %v1848_v32 = vpack.c.bf16 %v1837_v27, %v1836_v45  ;;  %v1838_v45 = vadd.f32 %v1822_v46, %v1774_v30  ;;  %v7914_v56 = vld [vmem:[#allocation17 + $0x60] sm:$0xff] }
 0x3b6   : > { %v2335_v51 = vpop.permute.xlu0 %2334  ;;  %v7924_v30 = vld [vmem:[#allocation16 + $0x60] sm:$0xff] }
 0x3b7   : > { %v7900_v52 = vadd.f32 %v1727_v41, %v1679_v17  ;;  %5350 = vmatprep.subr.bf16.mxu1 %v1848_v32  ;;  %v2358_v42 = vmul.f32 %v2335_v51, %v7868_v11  ;;  %v2310_v17 = vmul.f32 %v7878_v61, %v7665_v40  ;;  %v1776_v50 = vmul.f32 %v7924_v30, %v7693_v60 }
 0x3b8   : > { %5351 = vmatpush3.bf16.xpose.msra.mxu1 %v1848_v32  ;;  %v1803_v8 = vpop.permute.xlu1 %1802  ;;  %v1681_v60 = vmul.f32 %v7840_v1, %v7517_v59 }
 0x3b9   : > { %v1823_v49 = vmul.f32 %v1803_v8, %v7895_v18  ;;  %v2374_v8 = vadd.f32 %v2358_v42, %v2310_v17 }
 0x3ba   : > { %v1805_v22 = vpop.permute.xlu0 %1804 }
 0x3bb   : > { %v1839_v27 = vadd.f32 %v1823_v49, %v1775_v54  ;;  %v1824_v46 = vmul.f32 %v1805_v22, %v7914_v56  ;;  %v7926_v54 = vld [vmem:[#allocation16 + $0x68] sm:$0xff] }
 0x3bc   : > { %v2337_v6 = vpop.permute.xlu1 %2336  ;;  %v1777_v49 = vmul.f32 %v7926_v54, %v7699_v9 }
 0x3bd   : > { %v2359_v15 = vmul.f32 %v2337_v6, %v7875_v58  ;;  %v1849_v41 = vpack.c.bf16 %v1839_v27, %v1838_v45  ;;  %v1840_v6 = vadd.f32 %v1824_v46, %v1776_v50 }
 0x3be   : > { %v1701_v32 = vpop.permute.xlu0 %1700 }
 0x3bf   : > { %v2375_v51 = vadd.f32 %v2359_v15, %v2311_v10  ;;  %5352 = vmatprep.subr.bf16.mxu1 %v1849_v41  ;;  %v1728_v22 = vmul.f32 %v1701_v32, %v7828_v0  ;;  %v7934_v10 = vld [vmem:[#allocation17 + $0x70] sm:$0xff] }
 0x3c0   : > { %5353 = vmatpush3.bf16.xpose.msra.mxu1 %v1849_v41  ;;  %v1807_v40 = vpop.permute.xlu1 %1806  ;;  %v1680_v41 = vmul.f32 %v7838_v12, %v7513_v36  ;;  %v9172_v36 = vld [vmem:[#allocation70_spill] sm:$0xff] }
 0x3c1   : > { %v1825_v45 = vmul.f32 %v1807_v40, %v7921_v37  ;;  %v2386_v27 = vpack.c.bf16 %v2375_v51, %v2374_v8  ;;  %v7941_v51 = vld [vmem:[#allocation17 + $0x78] sm:$0xff]  ;;  %v1779_v19 = vmul.f32 %v9172_v36, %v7715_v3 }
 0x3c2   : > { %v1809_v42 = vpop.permute.xlu0 %1808  ;;  %v1744_v46 = vadd.f32 %v1728_v22, %v1680_v41 }
 0x3c3   : > { %v1841_v17 = vadd.f32 %v1825_v45, %v1777_v49  ;;  %5414 = vmatprep.subr.bf16.mxu0 %v2386_v27  ;;  %v1826_v32 = vmul.f32 %v1809_v42, %v7934_v10  ;;  %v9171_v45 = vld [vmem:[#allocation68_spill] sm:$0xff]  ;;  %v1682_v42 = vmul.f32 %v7858_v48, %v7525_v35  ;;  %v2313_v35 = vmul.f32 %v7904_v25, %v7687_v63 }
 0x3c4   : > { %5415 = vmatpush3.bf16.xpose.msra.mxu0 %v2386_v27  ;;  %v1703_v15 = vpop.permute.xlu1 %1702  ;;  %v1778_v27 = vmul.f32 %v9171_v45, %v7709_v53 }
 0x3c5   : > { %v1729_v9 = vmul.f32 %v1703_v15, %v7835_v5  ;;  %v1850_v40 = vpack.c.bf16 %v1841_v17, %v1840_v6 }
 0x3c6   : > { %v1705_v8 = vpop.permute.xlu0 %1704  ;;  %v1842_v17 = vadd.f32 %v1826_v32, %v1778_v27 }
 0x3c7   : > { %v1745_v50 = vadd.f32 %v1729_v9, %v1681_v60  ;;  %5354 = vmatprep.subr.bf16.mxu1 %v1850_v40  ;;  %v1730_v4 = vmul.f32 %v1705_v8, %v7848_v20  ;;  %v1683_v60 = vmul.f32 %v7860_v13, %v7529_v44  ;;  %v9173_v44 = vld [vmem:[#allocation39_spill] sm:$0xff] }
 0x3c8   : > { %5355 = vmatpush3.bf16.xpose.msra.mxu1 %v1850_v40  ;;  %v1811_v49 = vpop.permute.xlu1 %1810 }
 0x3c9   : > { %v1827_v59 = vmul.f32 %v1811_v49, %v7941_v51  ;;  %v1758_v15 = vpack.c.bf16 %v1745_v50, %v1744_v46  ;;  %v1746_v3 = vadd.f32 %v1730_v4, %v1682_v42 }
 0x3ca   : > { %v2339_v6 = vpop.permute.xlu0 %2338 }
 0x3cb   : > { %v1843_v22 = vadd.f32 %v1827_v59, %v1779_v19  ;;  %v2360_v49 = vmul.f32 %v2339_v6, %v7888_v47  ;;  %v2312_v19 = vmul.f32 %v7902_v28, %v7681_v7  ;;  %v1685_v7 = vmul.f32 %v7880_v24, %v7541_v43 }
 0x3cc   : > { %v1707_v41 = vpop.permute.xlu1 %1706  ;;  %v1687_v43 = vmul.f32 %v7904_v25, %v7553_v38 }
 0x3cd   : > { %v1731_v53 = vmul.f32 %v1707_v41, %v7855_v33  ;;  %v1851_v9 = vpack.c.bf16 %v1843_v22, %v1842_v17  ;;  %v2376_v59 = vadd.f32 %v2360_v49, %v2312_v19  ;;  %v1684_v22 = vmul.f32 %v7878_v61, %v7537_v21 }
 0x3ce   : > { %v1709_v40 = vpop.permute.xlu0 %1708  ;;  %v1686_v21 = vmul.f32 %v7902_v28, %v7549_v26  ;;  %v2315_v26 = vmul.f32 %v7926_v54, %v7703_v62 }
 0x3cf   : > { %v1747_v46 = vadd.f32 %v1731_v53, %v1683_v60  ;;  %5356 = vmatprep.subr.bf16.mxu1 %v1851_v9  ;;  %v1732_v4 = vmul.f32 %v1709_v40, %v7868_v11 }
 0x3d0   : > { %v2341_v32 = vpop.permute.xlu1 %2340  ;;  %5357 = vmatpush3.bf16.xpose.msra.mxu1 %v1851_v9 }
 0x3d1   : > { %v2361_v8 = vmul.f32 %v2341_v32, %v7895_v18  ;;  %5374 = vmatprep.subr.bf16.mxu1 %v9173_v44  ;;  %v1759_v50 = vpack.c.bf16 %v1747_v46, %v1746_v3  ;;  %v1748_v60 = vadd.f32 %v1732_v4, %v1684_v22  ;;  %v9174_v3 = vpack.c.bf16 %v7900_v52, %v7897_v16  ;;  %v9175_v32 = vld [vmem:[#allocation43_spill] sm:$0xff] }
 0x3d2   : > { %v1713_v27 = vpop.permute.xlu0 %1712 }
 0x3d3   : > { %v2377_v6 = vadd.f32 %v2361_v8, %v2313_v35  ;;  %v1734_v53 = vmul.f32 %v1713_v27, %v7888_v47  ;;  %v9176_v27 = vld [vmem:[#allocation47_spill] sm:$0xff] }
 0x3d4   : > { %v1711_v17 = vpop.permute.xlu1 %1710 }
 0x3d5   : > { %v1733_v41 = vmul.f32 %v1711_v17, %v7875_v58  ;;  %v2387_v63 = vpack.c.bf16 %v2377_v6, %v2376_v59  ;;  %v1750_v16 = vadd.f32 %v1734_v53, %v1686_v21  ;;  %v9180_v21 = vld [vmem:[#allocation69_spill] sm:$0xff] }
 0x3d6   : > { %v2343_v42 = vpop.permute.xlu0 %2342 }
 0x3d7   : > { %v1749_v9 = vadd.f32 %v1733_v41, %v1685_v7  ;;  %5359 = vmatmul.mubr.bf16.vlgmr.msra.gmra.mrb[64].mxu1 %v9174_v3  ;;  %5416 = vmatprep.subr.bf16.mxu0 %v2387_v63  ;;  %v2362_v52 = vmul.f32 %v2343_v42, %v7914_v56  ;;  %v9177_v7 = vld [vmem:[#allocation62_spill] sm:$0xff]  ;;  %v9178_v41 = vld [vmem:[#allocation64_spill] sm:$0xff] }
 0x3d8   : > { %5417 = vmatpush3.bf16.xpose.msra.mxu0 %v2387_v63  ;;  %v1715_v40 = vpop.permute.xlu1 %1714  ;;  %5362 = vmatprep.mubr.bf16.mxu1 %v1758_v15  ;;  %v2314_v15 = vmul.f32 %v7924_v30, %v7697_v14  ;;  %v1688_v14 = vmul.f32 %v7924_v30, %v9177_v7  ;;  %v1689_v62 = vmul.f32 %v7926_v54, %v9178_v41 }
 0x3d9   : > { %v1735_v49 = vmul.f32 %v1715_v40, %v7895_v18  ;;  %5375 = vmatpush3.bf16.msra.mxu1 %v9173_v44  ;;  %v1760_v46 = vpack.c.bf16 %v1749_v9, %v1748_v60  ;;  %v9179_v60 = vld [vmem:[#allocation51_spill] sm:$0xff] }
 0x3da   : > { %5376 = vmatprep.subr.bf16.mxu1 %v9175_v32  ;;  %v1717_v19 = vpop.permute.xlu0 %1716  ;;  %v2378_v4 = vadd.f32 %v2362_v52, %v2314_v15 }
 0x3db   : > { %v1751_v35 = vadd.f32 %v1735_v49, %v1687_v43  ;;  %v1736_v6 = vmul.f32 %v1717_v19, %v7914_v56  ;;  %v1690_v43 = vmul.f32 %v9171_v45, %v9180_v21  ;;  %v9181_v49 = vld [vmem:[#allocation72_spill] sm:$0xff] }
 0x3dc   : > { %v2345_v8 = vpop.permute.xlu1 %2344 }
 0x3dd   : > { %v2363_v38 = vmul.f32 %v2345_v8, %v7921_v37  ;;  %5377 = vmatpush3.bf16.msra.mxu1 %v9175_v32  ;;  %v1761_v44 = vpack.c.bf16 %v1751_v35, %v1750_v16  ;;  %v1752_v9 = vadd.f32 %v1736_v6, %v1688_v14  ;;  %v9182_v16 = vld [vmem:[#allocation55_spill] sm:$0xff] }
 0x3de   : > { %5378 = vmatprep.subr.bf16.mxu1 %v9176_v27  ;;  %v1721_v59 = vpop.permute.xlu0 %1720 }
 0x3df   : > { %v2379_v17 = vadd.f32 %v2363_v38, %v2315_v26  ;;  %5363 = vmatmul.mubr.bf16.gmra.mrb[68].mxu1 %v1759_v50  ;;  %v1738_v3 = vmul.f32 %v1721_v59, %v7934_v10  ;;  %v9183_v38 = vld [vmem:[#allocation76_spill] sm:$0xff]  ;;  %v9184_v59 = vld [vmem:[#allocation77_spill] sm:$0xff] }
 0x3e0   : > { %v1719_v22 = vpop.permute.xlu1 %1718  ;;  %5366 = vmatprep.mubr.bf16.mxu1 %v1760_v46  ;;  %v1691_v46 = vmul.f32 %v9172_v36, %v9181_v49 }
 0x3e1   : > { %v1737_v63 = vmul.f32 %v1719_v22, %v7921_v37  ;;  %5379 = vmatpush3.bf16.msra.mxu1 %v9176_v27  ;;  %v2388_v42 = vpack.c.bf16 %v2379_v17, %v2378_v4  ;;  %v1754_v35 = vadd.f32 %v1738_v3, %v1690_v43  ;;  %v2316_v27 = vmul.f32 %v9171_v45, %v9183_v38  ;;  %v9185_v22 = vld [vmem:[#allocation59_spill] sm:$0xff]  ;;  %v9187_v45 = vld [vmem:[#allocation40_spill] sm:$0xff]  ;;  %v9194_v38 = vld [vmem:[#allocation41_spill] sm:$0xff] }
 0x3e2   : > { %5380 = vmatprep.subr.bf16.mxu1 %v9179_v60  ;;  %v2347_v53 = vpop.permute.xlu0 %2346  ;;  %v2317_v4 = vmul.f32 %v9172_v36, %v9184_v59 }
 0x3e3   : > { %v1753_v50 = vadd.f32 %v1737_v63, %v1689_v62  ;;  %5418 = vmatprep.subr.bf16.mxu0 %v2388_v42  ;;  %v2364_v8 = vmul.f32 %v2347_v53, %v7934_v10  ;;  %v9186_v63 = vld [vmem:[#allocation38_spill] sm:$0xff] }
 0x3e4   : > { %5419 = vmatpush3.bf16.xpose.msra.mxu0 %v2388_v42  ;;  %v1723_v40 = vpop.permute.xlu1 %1722  ;;  %v2214_v42 = vmul.f32 %v7781_v2, %v9186_v63  ;;  %v9189_v2 = vld [vmem:[#allocation42_spill] sm:$0xff] }
 0x3e5   : > { %v1739_v32 = vmul.f32 %v1723_v40, %v7941_v51  ;;  %5381 = vmatpush3.bf16.msra.mxu1 %v9179_v60  ;;  %v1762_v19 = vpack.c.bf16 %v1753_v50, %v1752_v9  ;;  %v2380_v14 = vadd.f32 %v2364_v8, %v2316_v27  ;;  %v2215_v60 = vmul.f32 %v7784_v23, %v9187_v45  ;;  %v9188_v9 = vld [vmem:[#allocation65_spill] sm:$0xff]  ;;  %v9190_v23 = vld [vmem:[#allocation44_spill] sm:$0xff]  ;;  %v9192_v8 = vld [vmem:[#allocation46_spill] sm:$0xff] }
 0x3e6   : > { %5382 = vmatprep.subr.bf16.mxu1 %v9182_v16  ;;  %v2231_v52 = vpop.permute.xlu0 %2230  ;;  %v2216_v43 = vmul.f32 %v7818_v31, %v9189_v2  ;;  %v2217_v49 = vmul.f32 %v7820_v39, %v9190_v23  ;;  %v2218_v31 = vmul.f32 %v7838_v12, %v9192_v8  ;;  %v9198_v45 = vld [vmem:[#allocation56_spill] sm:$0xff] }
 0x3e7   : > { %v1755_v15 = vadd.f32 %v1739_v32, %v1691_v46  ;;  %5367 = vmatmul.mubr.bf16.gmra.mrb[72].mxu1 %v1761_v44  ;;  %v2262_v41 = vmul.f32 %v2231_v52, %v7775_v57  ;;  %v9191_v32 = vld [vmem:[#allocation73_spill] sm:$0xff] }
 0x3e8   : > { %5370 = vmatprep.mubr.bf16.mxu1 %v1762_v19  ;;  %v2349_v26 = vpop.permute.xlu1 %2348 }
 0x3e9   : > { %5383 = vmatpush3.bf16.msra.mxu1 %v9182_v16  ;;  %v2365_v6 = vmul.f32 %v2349_v26, %v7941_v51  ;;  %v1763_v17 = vpack.c.bf16 %v1755_v15, %v1754_v35  ;;  %v2278_v50 = vadd.f32 %v2262_v41, %v2214_v42  ;;  %v9193_v15 = vld [vmem:[#allocation48_spill] sm:$0xff] }
 0x3ea   : > { %5384 = vmatprep.subr.bf16.mxu1 %v9185_v22  ;;  %v2235_v7 = vpop.permute.xlu0 %2234  ;;  %v2219_v39 = vmul.f32 %v7840_v1, %v9193_v15 }
 0x3eb   : > { %v2381_v44 = vadd.f32 %v2365_v6, %v2317_v4  ;;  %v2264_v40 = vmul.f32 %v2235_v7, %v7811_v29 }
 0x3ec   : > { %v2233_v62 = vpop.permute.xlu1 %2232 }
 0x3ed   : > { %5385 = vmatpush3.bf16.msra.mxu1 %v9185_v22  ;;  %v2263_v36 = vmul.f32 %v2233_v62, %v7777_v34  ;;  %v2389_v53 = vpack.c.bf16 %v2381_v44, %v2380_v14  ;;  %v2280_v29 = vadd.f32 %v2264_v40, %v2216_v43  ;;  %v9196_v22 = vld [vmem:[#allocation52_spill] sm:$0xff] }
 0x3ee   : > { %5386 = vmatprep.subr.bf16.mxu1 %v9188_v9  ;;  %v2239_v3 = vpop.permute.xlu0 %2238  ;;  %v2221_v1 = vmul.f32 %v7860_v13, %v9196_v22  ;;  %v9200_v40 = vld [vmem:[#allocation60_spill] sm:$0xff] }
 0x3ef   : > { %v2279_v57 = vadd.f32 %v2263_v36, %v2215_v60  ;;  %5371 = vmatmul.mubr.bf16.gmra.mrb[76].mxu1 %v1763_v17  ;;  %5420 = vmatprep.subr.bf16.mxu0 %v2389_v53  ;;  %v2266_v16 = vmul.f32 %v2239_v3, %v7828_v0  ;;  %v9195_v17 = vld [vmem:[#allocation50_spill] sm:$0xff]  ;;  %v2223_v60 = vmul.f32 %v7880_v24, %v9198_v45 }
 0x3f0   : > { %v2237_v21 = vpop.permute.xlu1 %2236  ;;  %5421 = vmatpush3.bf16.xpose.msra.mxu0 %v2389_v53  ;;  %v2220_v12 = vmul.f32 %v7858_v48, %v9195_v17 }
 0x3f1   : > { %5387 = vmatpush3.bf16.msra.mxu1 %v9188_v9  ;;  %v2265_v34 = vmul.f32 %v2237_v21, %v7815_v55  ;;  %v2294_v46 = vpack.c.bf16 %v2279_v57, %v2278_v50  ;;  %v2282_v59 = vadd.f32 %v2266_v16, %v2218_v31  ;;  %v2225_v57 = vmul.f32 %v7904_v25, %v9200_v40 }
 0x3f2   : > { %5388 = vmatprep.subr.bf16.mxu1 %v9191_v32  ;;  %v2243_v19 = vpop.permute.xlu0 %2242 }
 0x3f3   : > { %v2281_v52 = vadd.f32 %v2265_v34, %v2217_v49  ;;  %5422 = vmatprep.mubr.bf16.mxu0 %v2294_v46  ;;  %v2268_v0 = vmul.f32 %v2243_v19, %v7848_v20  ;;  %v9197_v20 = vld [vmem:[#allocation54_spill] sm:$0xff] }
 0x3f4   : > { %v2241_v35 = vpop.permute.xlu1 %2240  ;;  %v2222_v42 = vmul.f32 %v7878_v61, %v9197_v20  ;;  %v9202_v46 = vld [vmem:[#allocation66_spill] sm:$0xff] }
 0x3f5   : > { %v2295_v26 = vpack.c.bf16 %v2281_v52, %v2280_v29  ;;  %5389 = vmatpush3.bf16.msra.mxu1 %v9191_v32  ;;  %v2267_v55 = vmul.f32 %v2241_v35, %v7835_v5  ;;  %v2284_v5 = vadd.f32 %v2268_v0, %v2220_v12  ;;  %v9203_v32 = vld [vmem:[#allocation71_spill] sm:$0xff]  ;;  %v9204_v35 = vld [vmem:[#allocation74_spill] sm:$0xff] }
 0x3f6   : > { %5438 = vmatprep.subr.bf16.mxu1 %v9194_v38  ;;  %v2247_v27 = vpop.permute.xlu0 %2246 }
 0x3f7   : > { %v2283_v4 = vadd.f32 %v2267_v55, %v2219_v39  ;;  %5423 = vmatmul.mubr.bf16.vlgmr.msra.gmra.mrb[32].mxu0 %v2295_v26  ;;  %v2270_v44 = vmul.f32 %v2247_v27, %v7868_v11  ;;  %v9199_v11 = vld [vmem:[#allocation58_spill] sm:$0xff] }
 0x3f8   : > { %v2245_v6 = vpop.permute.xlu1 %2244  ;;  %v2224_v50 = vmul.f32 %v7902_v28, %v9199_v11  ;;  %v2227_v28 = vmul.f32 %v7926_v54, %v9202_v46 }
 0x3f9   : > { %v2269_v7 = vmul.f32 %v2245_v6, %v7855_v33  ;;  %v2296_v14 = vpack.c.bf16 %v2283_v4, %v2282_v59  ;;  %v2286_v53 = vadd.f32 %v2270_v44, %v2222_v42 }
 0x3fa   : > { %v2251_v41 = vpop.permute.xlu0 %2250 }
 0x3fb   : > { %v2285_v62 = vadd.f32 %v2269_v7, %v2221_v1  ;;  %5426 = vmatprep.mubr.bf16.mxu0 %v2296_v14  ;;  %v2272_v33 = vmul.f32 %v2251_v41, %v7888_v47  ;;  %v9201_v47 = vld [vmem:[#allocation63_spill] sm:$0xff] }
 0x3fc   : > { %v2249_v63 = vpop.permute.xlu1 %2248  ;;  %v2226_v49 = vmul.f32 %v7924_v30, %v9201_v47 }
 0x3fd   : > { %v2271_v48 = vmul.f32 %v2249_v63, %v7875_v58  ;;  %v2297_v36 = vpack.c.bf16 %v2285_v62, %v2284_v5  ;;  %v2288_v2 = vadd.f32 %v2272_v33, %v2224_v50 }
 0x3fe   : > { %v2255_v13 = vpop.permute.xlu0 %2254 }
 0x3ff   : > { %v2287_v9 = vadd.f32 %v2271_v48, %v2223_v60  ;;  %5427 = vmatmul.mubr.bf16.gmra.mrb[36].mxu0 %v2297_v36  ;;  %v2274_v58 = vmul.f32 %v2255_v13, %v7914_v56 }
 0x400   : > { %v2253_v3 = vpop.permute.xlu1 %2252 }
 0x401   : > { %v2273_v61 = vmul.f32 %v2253_v3, %v7895_v18  ;;  %v2298_v21 = vpack.c.bf16 %v2287_v9, %v2286_v53  ;;  %v2290_v29 = vadd.f32 %v2274_v58, %v2226_v49 }
 0x402   : > { %v2259_v24 = vpop.permute.xlu0 %2258 }
 0x403   : > { %v2289_v43 = vadd.f32 %v2273_v61, %v2225_v57  ;;  %v2276_v23 = vmul.f32 %v2259_v24, %v7934_v10  ;;  %5430 = vmatprep.mubr.bf16.mxu0 %v2298_v21 }
 0x404   : > { %v2257_v34 = vpop.permute.xlu1 %2256 }
 0x405   : > { %v2292_v25 = vadd.f32 %v2276_v23, %v9203_v32  ;;  %v2275_v18 = vmul.f32 %v2257_v34, %v7921_v37  ;;  %v2299_v19 = vpack.c.bf16 %v2289_v43, %v2288_v2 }
 0x407   : > { %v2291_v16 = vadd.f32 %v2275_v18, %v2227_v28  ;;  %5431 = vmatmul.mubr.bf16.gmra.mrb[40].mxu0 %v2299_v19 }
 0x408   : > { %v2261_v56 = vpop.permute.xlu1 %2260 }
 0x409   : > { %v2277_v52 = vmul.f32 %v2261_v56, %v7941_v51  ;;  %v2300_v10 = vpack.c.bf16 %v2291_v16, %v2290_v29 }
 0x40b   : > { %v2293_v8 = vadd.f32 %v2277_v52, %v9204_v35  ;;  %5434 = vmatprep.mubr.bf16.mxu0 %v2300_v10 }
 0x40d   : > { %v2301_v30 = vpack.c.bf16 %v2293_v8, %v2292_v25 }
 0x40f   : > { %5435 = vmatmul.mubr.bf16.gmra.mrb[44].mxu0 %v2301_v30 }
 0x4aa   : > { %v8063_v31 = vpop.f32.mrb[64].mxu1 }
 0x4ab   : > { %v8065_v54 = vpop.f32.mrb[65].mxu1 }
 0x4ac   : > { %1957 = vmax.xlane.f32.xlu0 %v8065_v54  ;;  %v8068_v37 = vpop.f32.mrb[66].mxu1 }
 0x4ad   : > { %v8070_v15 = vpop.f32.mrb[67].mxu1 }
 0x4ae   : > { %1959 = vmax.xlane.f32.xlu1 %v8070_v15 }
 0x4b0   : > { %1961 = vmax.xlane.f32.xlu0 %v8063_v31 }
 0x4b2   : > { %v8074_v51 = vpop.f32.mrb[68].mxu1 }
 0x4b3   : > { %v8076_v39 = vpop.f32.mrb[69].mxu1 }
 0x4b4   : > { %1963 = vmax.xlane.f32.xlu0 %v8068_v37  ;;  %v8079_v26 = vpop.f32.mrb[70].mxu1 }
 0x4b5   : > { %v8081_v55 = vpop.f32.mrb[71].mxu1 }
 0x4b6   : > { %1967 = vmax.xlane.f32.xlu1 %v8081_v55 }
 0x4b8   : > { %1965 = vmax.xlane.f32.xlu0 %v8076_v39 }
 0x4ba   : > { %1971 = vmax.xlane.f32.xlu1 %v8079_v26  ;;  %v8086_v27 = vpop.f32.mrb[72].mxu1 }
 0x4bb   : > { %v8088_v59 = vpop.f32.mrb[73].mxu1 }
 0x4bc   : > { %1969 = vmax.xlane.f32.xlu0 %v8074_v51  ;;  %v8091_v0 = vpop.f32.mrb[74].mxu1 }
 0x4bd   : > { %v8093_v4 = vpop.f32.mrb[75].mxu1 }
 0x4be   : > { %1975 = vmax.xlane.f32.xlu1 %v8093_v4 }
 0x4c0   : > { %1973 = vmax.xlane.f32.xlu0 %v8088_v59 }
 0x4c2   : > { %1979 = vmax.xlane.f32.xlu1 %v8091_v0  ;;  %v8098_v6 = vpop.f32.mrb[76].mxu1 }
 0x4c3   : > { %v8100_v17 = vpop.f32.mrb[77].mxu1 }
 0x4c4   : > { %1977 = vmax.xlane.f32.xlu0 %v8086_v27  ;;  %v8103_v12 = vpop.f32.mrb[78].mxu1 }
 0x4c5   : > { %v8105_v22 = vpop.f32.mrb[79].mxu1 }
 0x4c6   : > { %1983 = vmax.xlane.f32.xlu1 %v8105_v22 }
 0x4c8   : > { %1981 = vmax.xlane.f32.xlu0 %v8100_v17 }
 0x4ca   : > { %v8109_v1 = vpop.f32.mrb[32].mxu0  ;;  %1987 = vmax.xlane.f32.xlu1 %v8103_v12 }
 0x4cb   : > { %v8112_v7 = vpop.f32.mrb[33].mxu0 }
 0x4cc   : > { %v8114_v14 = vpop.f32.mrb[34].mxu0  ;;  %1985 = vmax.xlane.f32.xlu0 %v8098_v6 }
 0x4cd   : > { %v8117_v41 = vpop.f32.mrb[35].mxu0 }
 0x4ce   : > { %2497 = vmax.xlane.f32.xlu1 %v8117_v41 }
 0x4d0   : > { %2495 = vmax.xlane.f32.xlu0 %v8112_v7 }
 0x4d2   : > { %v8121_v5 = vpop.f32.mrb[36].mxu0  ;;  %2501 = vmax.xlane.f32.xlu1 %v8114_v14 }
 0x4d3   : > { %v8124_v44 = vpop.f32.mrb[37].mxu0 }
 0x4d4   : > { %v8126_v62 = vpop.f32.mrb[38].mxu0  ;;  %2499 = vmax.xlane.f32.xlu0 %v8109_v1 }
 0x4d5   : > { %v8129_v63 = vpop.f32.mrb[39].mxu0 }
 0x4d6   : > { %2505 = vmax.xlane.f32.xlu1 %v8129_v63 }
 0x4d8   : > { %2503 = vmax.xlane.f32.xlu0 %v8124_v44 }
 0x4da   : > { %v8133_v20 = vpop.f32.mrb[40].mxu0  ;;  %2509 = vmax.xlane.f32.xlu1 %v8126_v62 }
 0x4db   : > { %v8136_v42 = vpop.f32.mrb[41].mxu0 }
 0x4dc   : > { %v8138_v45 = vpop.f32.mrb[42].mxu0  ;;  %2507 = vmax.xlane.f32.xlu0 %v8121_v5 }
 0x4dd   : > { %v8141_v60 = vpop.f32.mrb[43].mxu0 }
 0x4de   : > { %2513 = vmax.xlane.f32.xlu1 %v8141_v60 }
 0x4e0   : > { %2511 = vmax.xlane.f32.xlu0 %v8136_v42 }
 0x4e2   : > { %v8145_v48 = vpop.f32.mrb[44].mxu0  ;;  %2517 = vmax.xlane.f32.xlu1 %v8138_v45 }
 0x4e3   : > { %v8148_v36 = vpop.f32.mrb[45].mxu0 }
 0x4e4   : > { %v8150_v13 = vpop.f32.mrb[46].mxu0  ;;  %2515 = vmax.xlane.f32.xlu0 %v8133_v20 }
 0x4e5   : > { %v8153_v53 = vpop.f32.mrb[47].mxu0 }
 0x4e6   : > { %2525 = vmax.xlane.f32.xlu1 %v8150_v13 }
 0x4e8   : > { %2519 = vmax.xlane.f32.xlu0 %v8148_v36 }
 0x4ea   : > { %2521 = vmax.xlane.f32.xlu1 %v8153_v53 }
 0x4ec   : > { %2523 = vmax.xlane.f32.xlu0 %v8145_v48 }
 0x539   : > { %v1958_v33 = vpop.xlane.xlu0 %1957 }
 0x53a   : > { %v1989_v9 = vsub.f32 %v8065_v54, %v1958_v33 }
 0x53b   : > { %v1960_v3 = vpop.xlane.xlu1 %1959 }
 0x53c   : > { %v2005_v11 = vmul.f32 1.442695, %v1989_v9  ;;  %v1990_v50 = vsub.f32 %v8070_v15, %v1960_v3 }
 0x53d   : > { %v1962_v40 = vpop.xlane.xlu0 %1961 }
 0x53e   : > { %5894 = vpow2.f32 %v2005_v11  ;;  %v2007_v57 = vmul.f32 1.442695, %v1990_v50  ;;  %v1991_v61 = vsub.f32 %v8063_v31, %v1962_v40 }
 0x540   : > { %5896 = vpow2.f32 %v2007_v57  ;;  %v2009_v21 = vmul.f32 1.442695, %v1991_v61 }
 0x541   : > { %v1964_v24 = vpop.xlane.xlu0 %1963 }
 0x542   : > { %5898 = vpow2.f32 %v2009_v21  ;;  %v1992_v2 = vsub.f32 %v8068_v37, %v1964_v24 }
 0x543   : > { %v1968_v58 = vpop.xlane.xlu1 %1967 }
 0x544   : > { %v2011_v43 = vmul.f32 1.442695, %v1992_v2  ;;  %v1994_v23 = vsub.f32 %v8081_v55, %v1968_v58 }
 0x545   : > { %v1966_v47 = vpop.xlane.xlu0 %1965 }
 0x546   : > { %5900 = vpow2.f32 %v2011_v43  ;;  %v2015_v49 = vmul.f32 1.442695, %v1994_v23  ;;  %v1993_v34 = vsub.f32 %v8076_v39, %v1966_v47 }
 0x547   : > { %v1972_v46 = vpop.xlane.xlu1 %1971 }
 0x548   : > { %v8165_v28 = vpop.eup %5894  ;;  %v2013_v32 = vmul.f32 1.442695, %v1993_v34  ;;  %v1996_v25 = vsub.f32 %v8079_v26, %v1972_v46  ;;  %5902 = vpow2.f32 %v2015_v49 }
 0x549   : > { %v1970_v18 = vpop.xlane.xlu0 %1969  ;;  %2037 = vadd.xlane.f32.xlu0 %v8165_v28 }
 0x54a   : > { %v8169_v19 = vpop.eup %5896  ;;  %5904 = vpow2.f32 %v2013_v32  ;;  %v2019_v29 = vmul.f32 1.442695, %v1996_v25  ;;  %v1995_v16 = vsub.f32 %v8074_v51, %v1970_v18 }
 0x54b   : > { %v1976_v56 = vpop.xlane.xlu1 %1975  ;;  %2039 = vadd.xlane.f32.xlu1 %v8169_v19 }
 0x54c   : > { %v8173_v52 = vpop.eup %5898  ;;  %v2017_v10 = vmul.f32 1.442695, %v1995_v16  ;;  %v1998_v35 = vsub.f32 %v8093_v4, %v1976_v56  ;;  %5906 = vpow2.f32 %v2019_v29 }
 0x54d   : > { %v1974_v8 = vpop.xlane.xlu0 %1973  ;;  %2041 = vadd.xlane.f32.xlu0 %v8173_v52 }
 0x54e   : > { %5908 = vpow2.f32 %v2017_v10  ;;  %v2023_v30 = vmul.f32 1.442695, %v1998_v35  ;;  %v1997_v31 = vsub.f32 %v8088_v59, %v1974_v8 }
 0x54f   : > { %v1980_v54 = vpop.xlane.xlu1 %1979 }
 0x550   : > { %v8178_v37 = vpop.eup %5900  ;;  %v2021_v15 = vmul.f32 1.442695, %v1997_v31  ;;  %v2000_v51 = vsub.f32 %v8091_v0, %v1980_v54  ;;  %5910 = vpow2.f32 %v2023_v30 }
 0x551   : > { %v1978_v39 = vpop.xlane.xlu0 %1977  ;;  %2043 = vadd.xlane.f32.xlu1 %v8178_v37 }
 0x552   : > { %5912 = vpow2.f32 %v2021_v15  ;;  %v2027_v26 = vmul.f32 1.442695, %v2000_v51  ;;  %v1999_v55 = vsub.f32 %v8086_v27, %v1978_v39  ;;  %v8183_v4 = vpop.eup %5902 }
 0x553   : > { %v1984_v33 = vpop.xlane.xlu1 %1983 }
 0x554   : > { %v8185_v9 = vpop.eup %5904  ;;  %v2025_v59 = vmul.f32 1.442695, %v1999_v55  ;;  %v2002_v3 = vsub.f32 %v8105_v22, %v1984_v33  ;;  %5914 = vpow2.f32 %v2027_v26 }
 0x555   : > { %2045 = vadd.xlane.f32.xlu0 %v8185_v9  ;;  %v1982_v0 = vpop.xlane.xlu0 %1981  ;;  %2047 = vadd.xlane.f32.xlu1 %v8183_v4 }
 0x556   : > { %5916 = vpow2.f32 %v2025_v59  ;;  %v2031_v11 = vmul.f32 1.442695, %v2002_v3  ;;  %v2001_v50 = vsub.f32 %v8100_v17, %v1982_v0  ;;  %v8191_v40 = vpop.eup %5906 }
 0x557   : > { %v1988_v27 = vpop.xlane.xlu1 %1987 }
 0x558   : > { %v8193_v57 = vpop.eup %5908  ;;  %v2029_v61 = vmul.f32 1.442695, %v2001_v50  ;;  %v2004_v21 = vsub.f32 %v8103_v12, %v1988_v27  ;;  %5918 = vpow2.f32 %v2031_v11 }
 0x559   : > { %2049 = vadd.xlane.f32.xlu0 %v8193_v57  ;;  %v1986_v22 = vpop.xlane.xlu0 %1985  ;;  %2051 = vadd.xlane.f32.xlu1 %v8191_v40 }
 0x55a   : > { %5920 = vpow2.f32 %v2029_v61  ;;  %v2035_v24 = vmul.f32 1.442695, %v2004_v21  ;;  %v2003_v2 = vsub.f32 %v8098_v6, %v1986_v22  ;;  %v8199_v58 = vpop.eup %5910 }
 0x55b   : > { %v2498_v17 = vpop.xlane.xlu1 %2497 }
 0x55c   : > { %v8201_v43 = vpop.eup %5912  ;;  %v2033_v23 = vmul.f32 1.442695, %v2003_v2  ;;  %v2528_v47 = vsub.f32 %v8117_v41, %v2498_v17  ;;  %5922 = vpow2.f32 %v2035_v24 }
 0x55d   : > { %2053 = vadd.xlane.f32.xlu0 %v8201_v43  ;;  %v2496_v12 = vpop.xlane.xlu0 %2495  ;;  %2055 = vadd.xlane.f32.xlu1 %v8199_v58 }
 0x55e   : > { %5924 = vpow2.f32 %v2033_v23  ;;  %v2545_v49 = vmul.f32 1.442695, %v2528_v47  ;;  %v2527_v34 = vsub.f32 %v8112_v7, %v2496_v12  ;;  %v8207_v46 = vpop.eup %5914 }
 0x55f   : > { %v2502_v6 = vpop.xlane.xlu1 %2501 }
 0x560   : > { %v8209_v32 = vpop.eup %5916  ;;  %v2543_v25 = vmul.f32 1.442695, %v2527_v34  ;;  %v2530_v18 = vsub.f32 %v8114_v14, %v2502_v6  ;;  %5926 = vpow2.f32 %v2545_v49 }
 0x561   : > { %2057 = vadd.xlane.f32.xlu0 %v8209_v32  ;;  %v2500_v41 = vpop.xlane.xlu0 %2499  ;;  %2059 = vadd.xlane.f32.xlu1 %v8207_v46 }
 0x562   : > { %5928 = vpow2.f32 %v2543_v25  ;;  %v2549_v29 = vmul.f32 1.442695, %v2530_v18  ;;  %v2529_v16 = vsub.f32 %v8109_v1, %v2500_v41  ;;  %v8215_v56 = vpop.eup %5918 }
 0x563   : > { %v2506_v7 = vpop.xlane.xlu1 %2505 }
 0x564   : > { %v8217_v10 = vpop.eup %5920  ;;  %v2547_v35 = vmul.f32 1.442695, %v2529_v16  ;;  %v2532_v8 = vsub.f32 %v8129_v63, %v2506_v7  ;;  %5930 = vpow2.f32 %v2549_v29 }
 0x565   : > { %2061 = vadd.xlane.f32.xlu0 %v8217_v10  ;;  %v2504_v14 = vpop.xlane.xlu0 %2503  ;;  %2063 = vadd.xlane.f32.xlu1 %v8215_v56 }
 0x566   : > { %5932 = vpow2.f32 %v2547_v35  ;;  %v2553_v30 = vmul.f32 1.442695, %v2532_v8  ;;  %v2531_v31 = vsub.f32 %v8124_v44, %v2504_v14  ;;  %v8223_v54 = vpop.eup %5922 }
 0x567   : > { %v2510_v1 = vpop.xlane.xlu1 %2509 }
 0x568   : > { %v8225_v15 = vpop.eup %5924  ;;  %v2551_v51 = vmul.f32 1.442695, %v2531_v31  ;;  %v2534_v39 = vsub.f32 %v8126_v62, %v2510_v1  ;;  %5934 = vpow2.f32 %v2553_v30  ;;  %v5814_v1 = vld [vmem:[#allocation10] ss:$8 sps:$4 sm:$0xff]  }
 0x569   : > { %2065 = vadd.xlane.f32.xlu0 %v8225_v15  ;;  %v2508_v63 = vpop.xlane.xlu0 %2507  ;;  %2067 = vadd.xlane.f32.xlu1 %v8223_v54 }
 0x56a   : > { %5936 = vpow2.f32 %v2551_v51  ;;  %v2557_v26 = vmul.f32 1.442695, %v2534_v39  ;;  %v2533_v55 = vsub.f32 %v8121_v5, %v2508_v63  ;;  %v8231_v33 = vpop.eup %5926  ;;  %v5816_v51 = vld [vmem:[#allocation10 + $0x4] ss:$8 sps:$4 sm:$0xff]   ;;  %v5819_v39 = vld [vmem:[#allocation10 + $0x14] ss:$8 sps:$4 sm:$0xff]  }
 0x56b   : > { %v2514_v44 = vpop.xlane.xlu1 %2513  ;;  %2944 = vmatprep.subr.bf16.mxu0 %v5816_v51  ;;  %v5817_v63 = vld [vmem:[#allocation10 + $0x10] ss:$8 sps:$4 sm:$0xff]  }
 0x56c   : > { %v8233_v59 = vpop.eup %5928  ;;  %v2555_v3 = vmul.f32 1.442695, %v2533_v55  ;;  %v2536_v0 = vsub.f32 %v8141_v60, %v2514_v44  ;;  %5938 = vpow2.f32 %v2557_v26  ;;  %2945 = vmatpush1.bf16.msra.mxu0 %v5814_v1  ;;  %v5822_v26 = vld [vmem:[#allocation10 + $0x24] ss:$8 sps:$4 sm:$0xff]   ;;  %v5820_v55 = vld [vmem:[#allocation10 + $0x20] ss:$8 sps:$4 sm:$0xff]  }
 0x56d   : > { %2575 = vadd.xlane.f32.xlu0 %v8233_v59  ;;  %v2512_v62 = vpop.xlane.xlu0 %2511  ;;  %2577 = vadd.xlane.f32.xlu1 %v8231_v33  ;;  %v5825_v44 = vld [vmem:[#allocation10 + $0x34] ss:$8 sps:$4 sm:$0xff]  }
 0x56e   : > { %5940 = vpow2.f32 %v2555_v3  ;;  %v2561_v11 = vmul.f32 1.442695, %v2536_v0  ;;  %v2535_v50 = vsub.f32 %v8136_v42, %v2512_v62  ;;  %v8239_v27 = vpop.eup %5930  ;;  %2946 = vmatprep.subr.bf16.mxu0 %v5819_v39  ;;  %v5823_v3 = vld [vmem:[#allocation10 + $0x30] ss:$8 sps:$4 sm:$0xff]   ;;  %v5828_v0 = vld [vmem:[#allocation10 + $0x44] ss:$8 sps:$4 sm:$0xff]  }
 0x56f   : > { %v2518_v5 = vpop.xlane.xlu1 %2517  ;;  %v5826_v62 = vld [vmem:[#allocation10 + $0x40] ss:$8 sps:$4 sm:$0xff]  }
 0x570   : > { %v8241_v61 = vpop.eup %5932  ;;  %v2559_v21 = vmul.f32 1.442695, %v2535_v50  ;;  %v2538_v22 = vsub.f32 %v8138_v45, %v2518_v5  ;;  %5942 = vpow2.f32 %v2561_v11  ;;  %2947 = vmatpush1.bf16.msra.mxu0 %v5817_v63  ;;  %v5831_v11 = vld [vmem:[#allocation10 + $0x54] ss:$8 sps:$4 sm:$0xff]   ;;  %v5829_v50 = vld [vmem:[#allocation10 + $0x50] ss:$8 sps:$4 sm:$0xff]  }
 0x571   : > { %2579 = vadd.xlane.f32.xlu0 %v8241_v61  ;;  %v2516_v60 = vpop.xlane.xlu0 %2515  ;;  %2581 = vadd.xlane.f32.xlu1 %v8239_v27  ;;  %v5834_v5 = vld [vmem:[#allocation10 + $0x64] ss:$8 sps:$4 sm:$0xff]  }
 0x572   : > { %5944 = vpow2.f32 %v2559_v21  ;;  %v2565_v24 = vmul.f32 1.442695, %v2538_v22  ;;  %v2537_v2 = vsub.f32 %v8133_v20, %v2516_v60  ;;  %v8247_v17 = vpop.eup %5934  ;;  %2948 = vmatprep.subr.bf16.mxu0 %v5822_v26  ;;  %v5832_v21 = vld [vmem:[#allocation10 + $0x60] ss:$8 sps:$4 sm:$0xff]  }
 0x573   : > { %v2526_v42 = vpop.xlane.xlu1 %2525 }
 0x574   : > { %v8249_v23 = vpop.eup %5936  ;;  %v2563_v47 = vmul.f32 1.442695, %v2537_v2  ;;  %5946 = vpow2.f32 %v2565_v24  ;;  %v2542_v20 = vsub.f32 %v8150_v13, %v2526_v42  ;;  %2949 = vmatpush1.bf16.msra.mxu0 %v5820_v55 }
 0x575   : > { %2583 = vadd.xlane.f32.xlu0 %v8249_v23  ;;  %v2520_v45 = vpop.xlane.xlu0 %2519  ;;  %2585 = vadd.xlane.f32.xlu1 %v8247_v17 }
 0x576   : > { %5948 = vpow2.f32 %v2563_v47  ;;  %v2539_v12 = vsub.f32 %v8148_v36, %v2520_v45  ;;  %v8254_v49 = vpop.eup %5938  ;;  %v2573_v35 = vmul.f32 1.442695, %v2542_v20  ;;  %2950 = vmatprep.subr.bf16.mxu0 %v5825_v44 }
 0x577   : > { %v2522_v34 = vpop.xlane.xlu1 %2521 }
 0x578   : > { %v8256_v6 = vpop.eup %5940  ;;  %v2567_v25 = vmul.f32 1.442695, %v2539_v12  ;;  %v2540_v18 = vsub.f32 %v8153_v53, %v2522_v34  ;;  %2951 = vmatpush1.bf16.msra.mxu0 %v5823_v3 }
 0x579   : > { %2587 = vadd.xlane.f32.xlu0 %v8256_v6  ;;  %v2524_v41 = vpop.xlane.xlu0 %2523  ;;  %2589 = vadd.xlane.f32.xlu1 %v8254_v49 }
 0x57a   : > { %5950 = vpow2.f32 %v2567_v25  ;;  %v2569_v29 = vmul.f32 1.442695, %v2540_v18  ;;  %v2541_v16 = vsub.f32 %v8145_v48, %v2524_v41  ;;  %v8263_v36 = vpop.eup %5942  ;;  %2952 = vmatprep.subr.bf16.mxu0 %v5828_v0 }
 0x57c   : > { %v8265_v7 = vpop.eup %5944  ;;  %5952 = vpow2.f32 %v2569_v29  ;;  %v2571_v8 = vmul.f32 1.442695, %v2541_v16  ;;  %2953 = vmatpush1.bf16.msra.mxu0 %v5826_v62 }
 0x57d   : > { %2591 = vadd.xlane.f32.xlu0 %v8265_v7  ;;  %2593 = vadd.xlane.f32.xlu1 %v8263_v36 }
 0x57e   : > { %5954 = vpow2.f32 %v2571_v8  ;;  %v8269_v13 = vpop.eup %5946  ;;  %2954 = vmatprep.subr.bf16.mxu0 %v5831_v11 }
 0x57f   : > { %5956 = vpow2.f32 %v2573_v35 }
 0x580   : > { %v8271_v53 = vpop.eup %5948  ;;  %2955 = vmatpush1.bf16.msra.mxu0 %v5829_v50 }
 0x581   : > { %2595 = vadd.xlane.f32.xlu0 %v8271_v53  ;;  %2597 = vadd.xlane.f32.xlu1 %v8269_v13 }
 0x582   : > { %2956 = vmatprep.subr.bf16.mxu0 %v5834_v5 }
 0x584   : > { %v8275_v48 = vpop.eup %5950  ;;  %2957 = vmatpush1.bf16.msra.mxu0 %v5832_v21 }
 0x585   : > { %2599 = vadd.xlane.f32.xlu0 %v8275_v48 }
 0x586   : > { %v8278_v14 = vpop.eup %5952 }
 0x587   : > { %2601 = vadd.xlane.f32.xlu1 %v8278_v14 }
 0x588   : > { %v8281_v30 = vpop.eup %5954 }
 0x589   : > { %2603 = vadd.xlane.f32.xlu0 %v8281_v30  ;;  %v8284_v31 = vpop.eup %5956 }
 0x58b   : > { %2605 = vadd.xlane.f32.xlu1 %v8284_v31 }
 0x5d6   : > { %v2038_v22 = vpop.xlane.xlu0 %2037 }
 0x5d7   : > { %5958 = vrcp.f32 %v2038_v22 }
 0x5d8   : > { %v2040_v60 = vpop.xlane.xlu1 %2039 }
 0x5d9   : > { %5960 = vrcp.f32 %v2040_v60 }
 0x5da   : > { %v2042_v24 = vpop.xlane.xlu0 %2041 }
 0x5db   : > { %5962 = vrcp.f32 %v2042_v24 }
 0x5de   : > { %v2044_v2 = vpop.xlane.xlu1 %2043 }
 0x5df   : > { %5964 = vrcp.f32 %v2044_v2 }
 0x5e1   : > { %v5959_v42 = vpop.eup %5958 }
 0x5e2   : > { %v2046_v47 = vpop.xlane.xlu0 %2045  ;;  %v2048_v45 = vpop.xlane.xlu1 %2047  ;;  %v2085_v34 = vmul.f32 %v5959_v42, %v8165_v28  ;;  %v9207_v42 = vld [vmem:[#allocation53_spill] sm:$0xff] }
 0x5e3   : > { %v5961_v12 = vpop.eup %5960  ;;  %5966 = vrcp.f32 %v2046_v47 }
 0x5e4   : > { %5968 = vrcp.f32 %v2048_v45  ;;  %v2086_v20 = vmul.f32 %v5961_v12, %v8169_v19 }
 0x5e5   : > { %v5963_v29 = vpop.eup %5962 }
 0x5e6   : > { %v2050_v25 = vpop.xlane.xlu0 %2049  ;;  %v2052_v18 = vpop.xlane.xlu1 %2051  ;;  %v2101_v41 = vpack.c.bf16 %v2086_v20, %v2085_v34  ;;  %v2087_v35 = vmul.f32 %v5963_v29, %v8173_v52  ;;  %v9205_v52 = vld [vmem:[#allocation45_spill] sm:$0xff] }
 0x5e7   : > { %5970 = vrcp.f32 %v2050_v25  ;;  %v9208_v20 = vld [vmem:[#allocation57_spill] sm:$0xff] }
 0x5e8   : > { %5972 = vrcp.f32 %v2052_v18  ;;  %5390 = vmatprep.mubr.bf16.mxu1 %v2101_v41 }
 0x5e9   : > { %v5965_v16 = vpop.eup %5964 }
 0x5ea   : > { %v2088_v8 = vmul.f32 %v5965_v16, %v8178_v37  ;;  %v2054_v1 = vpop.xlane.xlu0 %2053  ;;  %v2056_v51 = vpop.xlane.xlu1 %2055 }
 0x5eb   : > { %5974 = vrcp.f32 %v2054_v1 }
 0x5ec   : > { %5976 = vrcp.f32 %v2056_v51  ;;  %v2102_v39 = vpack.c.bf16 %v2088_v8, %v2087_v35  ;;  %v9209_v35 = vld [vmem:[#allocation61_spill] sm:$0xff] }
 0x5ed   : > { %v5967_v28 = vpop.eup %5966 }
 0x5ee   : > { %v5969_v63 = vpop.eup %5968  ;;  %v2058_v19 = vpop.xlane.xlu0 %2057  ;;  %5391 = vmatmul.mubr.bf16.vlgmr.msra.gmra.mrb[80].mxu1 %v2102_v39  ;;  %v2089_v55 = vmul.f32 %v5967_v28, %v8185_v9 }
 0x5ef   : > { %v2060_v26 = vpop.xlane.xlu1 %2059  ;;  %5978 = vrcp.f32 %v2058_v19  ;;  %5439 = vmatpush3.bf16.msra.mxu1 %v9194_v38  ;;  %v2090_v44 = vmul.f32 %v5969_v63, %v8183_v4  ;;  %v9206_v38 = vld [vmem:[#allocation49_spill] sm:$0xff]  ;;  %v9210_v63 = vld [vmem:[#allocation67_spill] sm:$0xff] }
 0x5f0   : > { %5980 = vrcp.f32 %v2060_v26  ;;  %5440 = vmatprep.subr.bf16.mxu1 %v9205_v52 }
 0x5f1   : > { %v5971_v37 = vpop.eup %5970  ;;  %v2103_v3 = vpack.c.bf16 %v2090_v44, %v2089_v55 }
 0x5f2   : > { %v5973_v0 = vpop.eup %5972  ;;  %v2062_v62 = vpop.xlane.xlu0 %2061  ;;  %v2091_v50 = vmul.f32 %v5971_v37, %v8193_v57  ;;  %v9211_v37 = vld [vmem:[#allocation75_spill] sm:$0xff] }
 0x5f3   : > { %v2064_v11 = vpop.xlane.xlu1 %2063  ;;  %5982 = vrcp.f32 %v2062_v62  ;;  %5394 = vmatprep.mubr.bf16.mxu1 %v2103_v3  ;;  %5441 = vmatpush3.bf16.msra.mxu1 %v9205_v52  ;;  %v2092_v9 = vmul.f32 %v5973_v0, %v8191_v40 }
 0x5f4   : > { %5984 = vrcp.f32 %v2064_v11  ;;  %5442 = vmatprep.subr.bf16.mxu1 %v9206_v38 }
 0x5f5   : > { %v5975_v4 = vpop.eup %5974  ;;  %v2104_v5 = vpack.c.bf16 %v2092_v9, %v2091_v50 }
 0x5f6   : > { %v5977_v21 = vpop.eup %5976  ;;  %v2066_v22 = vpop.xlane.xlu0 %2065  ;;  %v2093_v24 = vmul.f32 %v5975_v4, %v8201_v43 }
 0x5f7   : > { %v2068_v60 = vpop.xlane.xlu1 %2067  ;;  %5986 = vrcp.f32 %v2066_v22  ;;  %5395 = vmatmul.mubr.bf16.gmra.mrb[84].mxu1 %v2104_v5  ;;  %v2094_v57 = vmul.f32 %v5977_v21, %v8199_v58 }
 0x5f8   : > { %5443 = vmatpush3.bf16.msra.mxu1 %v9206_v38  ;;  %5988 = vrcp.f32 %v2068_v60 }
 0x5f9   : > { %v5979_v2 = vpop.eup %5978  ;;  %5444 = vmatprep.subr.bf16.mxu1 %v9207_v42  ;;  %v2105_v40 = vpack.c.bf16 %v2094_v57, %v2093_v24 }
 0x5fa   : > { %v5981_v47 = vpop.eup %5980  ;;  %v2576_v45 = vpop.xlane.xlu0 %2575  ;;  %v2095_v34 = vmul.f32 %v5979_v2, %v8209_v32 }
 0x5fb   : > { %v2578_v12 = vpop.xlane.xlu1 %2577  ;;  %5990 = vrcp.f32 %v2576_v45  ;;  %5398 = vmatprep.mubr.bf16.mxu1 %v2105_v40  ;;  %v2096_v43 = vmul.f32 %v5981_v47, %v8207_v46 }
 0x5fc   : > { %5445 = vmatpush3.bf16.msra.mxu1 %v9207_v42  ;;  %5992 = vrcp.f32 %v2578_v12 }
 0x5fd   : > { %v5983_v58 = vpop.eup %5982  ;;  %5446 = vmatprep.subr.bf16.mxu1 %v9208_v20  ;;  %v2106_v25 = vpack.c.bf16 %v2096_v43, %v2095_v34 }
 0x5fe   : > { %v5985_v18 = vpop.eup %5984  ;;  %v2580_v41 = vpop.xlane.xlu0 %2579  ;;  %v2097_v16 = vmul.f32 %v5983_v58, %v8217_v10 }
 0x5ff   : > { %v2582_v29 = vpop.xlane.xlu1 %2581  ;;  %5994 = vrcp.f32 %v2580_v41  ;;  %5399 = vmatmul.mubr.bf16.gmra.mrb[88].mxu1 %v2106_v25  ;;  %v2098_v32 = vmul.f32 %v5985_v18, %v8215_v56 }
 0x600   : > { %5447 = vmatpush3.bf16.msra.mxu1 %v9208_v20  ;;  %5996 = vrcp.f32 %v2582_v29 }
 0x601   : > { %v5987_v46 = vpop.eup %5986  ;;  %5448 = vmatprep.subr.bf16.mxu1 %v9209_v35  ;;  %v2107_v8 = vpack.c.bf16 %v2098_v32, %v2097_v16 }
 0x602   : > { %v5989_v1 = vpop.eup %5988  ;;  %v2584_v51 = vpop.xlane.xlu0 %2583  ;;  %v2099_v28 = vmul.f32 %v5987_v46, %v8225_v15 }
 0x603   : > { %v2586_v39 = vpop.xlane.xlu1 %2585  ;;  %5998 = vrcp.f32 %v2584_v51  ;;  %5402 = vmatprep.mubr.bf16.mxu1 %v2107_v8  ;;  %v2100_v10 = vmul.f32 %v5989_v1, %v8223_v54  ;;  %v5837_v8 = vld [vmem:[#allocation10 + $0x74] ss:$8 sps:$4 sm:$0xff]   ;;  %v5840_v1 = vld [vmem:[#allocation10 + $0x84] ss:$8 sps:$4 sm:$0xff]   ;;  %v5838_v51 = vld [vmem:[#allocation10 + $0x80] ss:$8 sps:$4 sm:$0xff]  }
 0x604   : > { %5449 = vmatpush3.bf16.msra.mxu1 %v9209_v35  ;;  %6000 = vrcp.f32 %v2586_v39  ;;  %2958 = vmatprep.subr.bf16.mxu0 %v5837_v8  ;;  %v5846_v39 = vld [vmem:[#allocation10 + $0xa4] ss:$8 sps:$4 sm:$0xff]  }
 0x605   : > { %v5991_v56 = vpop.eup %5990  ;;  %5450 = vmatprep.subr.bf16.mxu1 %v9210_v63  ;;  %v2108_v19 = vpack.c.bf16 %v2100_v10, %v2099_v28  ;;  %v5844_v28 = vld [vmem:[#allocation10 + $0xa0] ss:$8 sps:$4 sm:$0xff]   ;;  %v5852_v10 = vld [vmem:[#allocation10 + $0xc4] ss:$8 sps:$4 sm:$0xff]  }
 0x606   : > { %v5993_v26 = vpop.eup %5992  ;;  %v2588_v55 = vpop.xlane.xlu0 %2587  ;;  %v2623_v52 = vmul.f32 %v5991_v56, %v8233_v59  ;;  %v5850_v56 = vld [vmem:[#allocation10 + $0xc0] ss:$8 sps:$4 sm:$0xff]  }
 0x607   : > { %v2590_v44 = vpop.xlane.xlu1 %2589  ;;  %6002 = vrcp.f32 %v2588_v55  ;;  %5403 = vmatmul.mubr.bf16.gmra.mrb[92].mxu1 %v2108_v19  ;;  %v2624_v15 = vmul.f32 %v5993_v26, %v8231_v33  ;;  %v5853_v19 = vld [vmem:[#allocation10 + $0xd0] ss:$8 sps:$4 sm:$0xff]   ;;  %v5858_v26 = vld [vmem:[#allocation10 + $0xe4] ss:$8 sps:$4 sm:$0xff]   ;;  %v5856_v55 = vld [vmem:[#allocation10 + $0xe0] ss:$8 sps:$4 sm:$0xff]  }
 0x608   : > { %5451 = vmatpush3.bf16.msra.mxu1 %v9210_v63  ;;  %6004 = vrcp.f32 %v2590_v44  ;;  %v5855_v63 = vld [vmem:[#allocation10 + $0xd4] ss:$8 sps:$4 sm:$0xff]  }
 0x609   : > { %v5995_v54 = vpop.eup %5994  ;;  %5452 = vmatprep.subr.bf16.mxu1 %v9211_v37  ;;  %v2639_v3 = vpack.c.bf16 %v2624_v15, %v2623_v52  ;;  %v5861_v44 = vld [vmem:[#allocation10 + $0xf4] ss:$8 sps:$4 sm:$0xff]   ;;  %v5859_v52 = vld [vmem:[#allocation10 + $0xf0] ss:$8 sps:$4 sm:$0xff]  }
 0x60a   : > { %v5997_v0 = vpop.eup %5996  ;;  %v2625_v62 = vmul.f32 %v5995_v54, %v8241_v61  ;;  %v2592_v11 = vpop.xlane.xlu0 %2591 }
 0x60b   : > { %v2594_v50 = vpop.xlane.xlu1 %2593  ;;  %v2626_v9 = vmul.f32 %v5997_v0, %v8239_v27  ;;  %6006 = vrcp.f32 %v2592_v11  ;;  %5454 = vmatprep.mubr.bf16.mxu1 %v2639_v3 }
 0x60c   : > { %5453 = vmatpush3.bf16.msra.mxu1 %v9211_v37  ;;  %6008 = vrcp.f32 %v2594_v50 }
 0x60d   : > { %v5999_v33 = vpop.eup %5998  ;;  %v2640_v59 = vpack.c.bf16 %v2626_v9, %v2625_v62 }
 0x60e   : > { %v6001_v38 = vpop.eup %6000  ;;  %v2596_v4 = vpop.xlane.xlu0 %2595  ;;  %v2627_v21 = vmul.f32 %v5999_v33, %v8249_v23 }
 0x60f   : > { %v2598_v5 = vpop.xlane.xlu1 %2597  ;;  %6010 = vrcp.f32 %v2596_v4  ;;  %5455 = vmatmul.mubr.bf16.vlgmr.msra.gmra.mrb[96].mxu1 %v2640_v59  ;;  %v2628_v61 = vmul.f32 %v6001_v38, %v8247_v17 }
 0x610   : > { %6012 = vrcp.f32 %v2598_v5 }
 0x611   : > { %v6003_v22 = vpop.eup %6002  ;;  %v2641_v60 = vpack.c.bf16 %v2628_v61, %v2627_v21 }
 0x612   : > { %v6005_v27 = vpop.eup %6004  ;;  %v2600_v24 = vpop.xlane.xlu0 %2599  ;;  %v2629_v57 = vmul.f32 %v6003_v22, %v8256_v6 }
 0x613   : > { %6014 = vrcp.f32 %v2600_v24  ;;  %5458 = vmatprep.mubr.bf16.mxu1 %v2641_v60  ;;  %v2630_v2 = vmul.f32 %v6005_v27, %v8254_v49 }
 0x614   : > { %v2602_v42 = vpop.xlane.xlu1 %2601 }
 0x615   : > { %v6007_v40 = vpop.eup %6006  ;;  %6016 = vrcp.f32 %v2602_v42  ;;  %v2642_v47 = vpack.c.bf16 %v2630_v2, %v2629_v57 }
 0x616   : > { %v6009_v23 = vpop.eup %6008  ;;  %v2604_v45 = vpop.xlane.xlu0 %2603  ;;  %v2631_v12 = vmul.f32 %v6007_v40, %v8265_v7 }
 0x617   : > { %6018 = vrcp.f32 %v2604_v45  ;;  %5459 = vmatmul.mubr.bf16.gmra.mrb[100].mxu1 %v2642_v47  ;;  %v2632_v17 = vmul.f32 %v6009_v23, %v8263_v36 }
 0x618   : > { %v2606_v34 = vpop.xlane.xlu1 %2605 }
 0x619   : > { %v6011_v43 = vpop.eup %6010  ;;  %6020 = vrcp.f32 %v2606_v34  ;;  %v2643_v6 = vpack.c.bf16 %v2632_v17, %v2631_v12 }
 0x61a   : > { %v6013_v58 = vpop.eup %6012  ;;  %v2633_v20 = vmul.f32 %v6011_v43, %v8271_v53 }
 0x61b   : > { %5462 = vmatprep.mubr.bf16.mxu1 %v2643_v6  ;;  %v2634_v49 = vmul.f32 %v6013_v58, %v8269_v13  ;;  %v5835_v13 = vld [vmem:[#allocation10 + $0x70] ss:$8 sps:$4 sm:$0xff]  }
 0x61c   : > { %2959 = vmatpush1.bf16.msra.mxu0 %v5835_v13 }
 0x61d   : > { %v6015_v25 = vpop.eup %6014  ;;  %v2644_v18 = vpack.c.bf16 %v2634_v49, %v2633_v20  ;;  %2960 = vmatprep.subr.bf16.mxu0 %v5840_v1 }
 0x61e   : > { %v2635_v7 = vmul.f32 %v6015_v25, %v8275_v48  ;;  %v5843_v48 = vld [vmem:[#allocation10 + $0x94] ss:$8 sps:$4 sm:$0xff]  }
 0x61f   : > { %v6017_v41 = vpop.eup %6016  ;;  %5463 = vmatmul.mubr.bf16.gmra.mrb[104].mxu1 %v2644_v18 }
 0x620   : > { %v2636_v29 = vmul.f32 %v6017_v41, %v8278_v14  ;;  %2961 = vmatpush1.bf16.msra.mxu0 %v5838_v51  ;;  %v5841_v14 = vld [vmem:[#allocation10 + $0x90] ss:$8 sps:$4 sm:$0xff]   ;;  %v6054_v51 = vld [vmem:[%s7203_s1] sm:$0xff] }
 0x621   : > { %v6019_v16 = vpop.eup %6018  ;;  %2962 = vmatprep.subr.bf16.mxu0 %v5843_v48 }
 0x622   : > { %v2645_v36 = vpack.c.bf16 %v2636_v29, %v2635_v7  ;;  %v2637_v46 = vmul.f32 %v6019_v16, %v8281_v30  ;;  %v5849_v30 = vld [vmem:[#allocation10 + $0xb4] ss:$8 sps:$4 sm:$0xff]  }
 0x623   : > { %v6021_v32 = vpop.eup %6020 }
 0x624   : > { %5466 = vmatprep.mubr.bf16.mxu1 %v2645_v36  ;;  %v2638_v35 = vmul.f32 %v6021_v32, %v8284_v31  ;;  %2963 = vmatpush1.bf16.msra.mxu0 %v5841_v14  ;;  %v5847_v31 = vld [vmem:[#allocation10 + $0xb0] ss:$8 sps:$4 sm:$0xff]  }
 0x625   : > { %2964 = vmatprep.subr.bf16.mxu0 %v5846_v39  ;;  %v6055_v39 = vld [vmem:[%s7203_s1 + $0x8] sm:$0xff] }
 0x626   : > { %v2646_v53 = vpack.c.bf16 %v2638_v35, %v2637_v46 }
 0x628   : > { %5467 = vmatmul.mubr.bf16.gmra.mrb[108].mxu1 %v2646_v53  ;;  %2965 = vmatpush1.bf16.msra.mxu0 %v5844_v28 }
 0x629   : > { %2966 = vmatprep.subr.bf16.mxu0 %v5849_v30 }
 0x62c   : > { %2967 = vmatpush1.bf16.msra.mxu0 %v5847_v31 }
 0x62d   : > { %2968 = vmatprep.subr.bf16.mxu0 %v5852_v10  ;;  %v6056_v10 = vld [vmem:[%s7203_s1 + $0x10] sm:$0xff] }
 0x630   : > { %2969 = vmatpush1.bf16.msra.mxu0 %v5850_v56 }
 0x631   : > { %2970 = vmatprep.subr.bf16.mxu0 %v5855_v63 }
 0x634   : > { %2971 = vmatpush1.bf16.msra.mxu0 %v5853_v19 }
 0x635   : > { %2972 = vmatprep.subr.bf16.mxu0 %v5858_v26  ;;  %v6057_v26 = vld [vmem:[%s7203_s1 + $0x18] sm:$0xff] }
 0x638   : > { %2973 = vmatpush1.bf16.msra.mxu0 %v5856_v55 }
 0x639   : > { %2974 = vmatprep.subr.bf16.mxu0 %v5861_v44 }
 0x63c   : > { %2975 = vmatpush1.bf16.msra.mxu0 %v5859_v52 }
 0x6c1   : > { %v5392_v15 = vpop.f32.mrb[80].mxu1 }
 0x6c2   : > { %v2143_v54 = vpop.f32.mrb[81].mxu1 }
 0x6c3   : > { %v5393_v37 = vpop.f32.mrb[82].mxu1 }
 0x6c4   : > { %v2207_v3 = vpack.c.bf16 %v5393_v37, %v5392_v15  ;;  %v2146_v0 = vpop.f32.mrb[83].mxu1 }
 0x6c5   : > { %v2206_v62 = vpack.c.bf16 %v2146_v0, %v2143_v54 }
 0x6ca   : > { %v5396_v11 = vpop.f32.mrb[84].mxu1 }
 0x6cb   : > { %v2159_v50 = vpop.f32.mrb[85].mxu1 }
 0x6cc   : > { %v5397_v9 = vpop.f32.mrb[86].mxu1 }
 0x6cd   : > { %v2209_v33 = vpack.c.bf16 %v5397_v9, %v5396_v11  ;;  %v2162_v59 = vpop.f32.mrb[87].mxu1  ;;  %v6059_v11 = vld [vmem:[%s7203_s1 + $0x28] sm:$0xff] }
 0x6ce   : > { %v2208_v38 = vpack.c.bf16 %v2162_v59, %v2159_v50  ;;  %v6060_v59 = vld [vmem:[%s7203_s1 + $0x30] sm:$0xff] }
 0x6d2   : > { %v5400_v4 = vpop.f32.mrb[88].mxu1 }
 0x6d3   : > { %v2175_v5 = vpop.f32.mrb[89].mxu1 }
 0x6d4   : > { %v5401_v21 = vpop.f32.mrb[90].mxu1 }
 0x6d5   : > { %v2211_v61 = vpack.c.bf16 %v5401_v21, %v5400_v4  ;;  %v2178_v22 = vpop.f32.mrb[91].mxu1  ;;  %v6061_v21 = vld [vmem:[%s7203_s1 + $0x38] sm:$0xff] }
 0x6d6   : > { %v2210_v60 = vpack.c.bf16 %v2178_v22, %v2175_v5 }
 0x6da   : > { %v5404_v27 = vpop.f32.mrb[92].mxu1 }
 0x6db   : > { %v2191_v24 = vpop.f32.mrb[93].mxu1 }
 0x6dc   : > { %v5405_v57 = vpop.f32.mrb[94].mxu1 }
 0x6dd   : > { %v2213_v2 = vpack.c.bf16 %v5405_v57, %v5404_v27  ;;  %v2194_v42 = vpop.f32.mrb[95].mxu1 }
 0x6de   : > { %v2212_v40 = vpack.c.bf16 %v2194_v42, %v2191_v24 }
 0x6e2   : > { %v5456_v47 = vpop.f32.mrb[96].mxu1 }
 0x6e3   : > { %v2681_v23 = vpop.f32.mrb[97].mxu1 }
 0x6e4   : > { %v5457_v45 = vpop.f32.mrb[98].mxu1 }
 0x6e5   : > { %v2745_v12 = vpack.c.bf16 %v5457_v45, %v5456_v47  ;;  %v2684_v17 = vpop.f32.mrb[99].mxu1  ;;  %v6063_v47 = vld [vmem:[%s7203_s1 + $0x48] sm:$0xff] }
 0x6e6   : > { %v2744_v34 = vpack.c.bf16 %v2684_v17, %v2681_v23  ;;  %v6064_v17 = vld [vmem:[%s7203_s1 + $0x50] sm:$0xff] }
 0x6e8   : > { %2976 = vmatprep.mubr.bf16.mxu0 %v2744_v34 }
 0x6e9   : > { %2977 = vmatmul.mubr.bf16.vlgmr.msra.gmra.mrb[48].mxu0 %v2206_v62 }
 0x6ea   : > { %v5460_v43 = vpop.f32.mrb[100].mxu1  ;;  %2986 = vmatprep.mubr.bf16.mxu0 %v2745_v12 }
 0x6eb   : > { %v2697_v6 = vpop.f32.mrb[101].mxu1 }
 0x6ec   : > { %v5461_v58 = vpop.f32.mrb[102].mxu1 }
 0x6ed   : > { %v2747_v20 = vpack.c.bf16 %v5461_v58, %v5460_v43  ;;  %v2700_v49 = vpop.f32.mrb[103].mxu1  ;;  %v6065_v58 = vld [vmem:[%s7203_s1 + $0x58] sm:$0xff] }
 0x6ee   : > { %v2746_v25 = vpack.c.bf16 %v2700_v49, %v2697_v6 }
 0x6f1   : > { %2987 = vmatmul.mubr.bf16.gmra.mrb[52].mxu0 %v2207_v3  ;;  %v6058_v3 = vld [vmem:[%s7203_s1 + $0x20] sm:$0xff] }
 0x6f2   : > { %v5464_v18 = vpop.f32.mrb[104].mxu1  ;;  %2996 = vmatprep.mubr.bf16.mxu0 %v2746_v25 }
 0x6f3   : > { %v2713_v41 = vpop.f32.mrb[105].mxu1 }
 0x6f4   : > { %v5465_v7 = vpop.f32.mrb[106].mxu1 }
 0x6f5   : > { %v2749_v29 = vpack.c.bf16 %v5465_v7, %v5464_v18  ;;  %v2716_v16 = vpop.f32.mrb[107].mxu1 }
 0x6f6   : > { %v2748_v36 = vpack.c.bf16 %v2716_v16, %v2713_v41 }
 0x6f9   : > { %2997 = vmatmul.mubr.bf16.gmra.mrb[56].mxu0 %v2208_v38 }
 0x6fa   : > { %3006 = vmatprep.mubr.bf16.mxu0 %v2747_v20 }
 0x6fb   : > { %v5468_v32 = vpop.f32.mrb[108].mxu1 }
 0x6fc   : > { %v2729_v46 = vpop.f32.mrb[109].mxu1 }
 0x6fd   : > { %v5469_v35 = vpop.f32.mrb[110].mxu1 }
 0x6fe   : > { %v2751_v53 = vpack.c.bf16 %v5469_v35, %v5468_v32  ;;  %v2732_v8 = vpop.f32.mrb[111].mxu1  ;;  %v6067_v32 = vld [vmem:[%s7203_s1 + $0x68] sm:$0xff] }
 0x6ff   : > { %v2750_v13 = vpack.c.bf16 %v2732_v8, %v2729_v46  ;;  %v6068_v8 = vld [vmem:[%s7203_s1 + $0x70] sm:$0xff] }
 0x701   : > { %3007 = vmatmul.mubr.bf16.gmra.mrb[60].mxu0 %v2209_v33 }
 0x702   : > { %3016 = vmatprep.mubr.bf16.mxu0 %v2748_v36 }
 0x709   : > { %3017 = vmatmul.mubr.bf16.gmra.mrb[64].mxu0 %v2210_v60 }
 0x70a   : > { %3026 = vmatprep.mubr.bf16.mxu0 %v2749_v29  ;;  %v6066_v29 = vld [vmem:[%s7203_s1 + $0x60] sm:$0xff] }
 0x711   : > { %3027 = vmatmul.mubr.bf16.gmra.mrb[68].mxu0 %v2211_v61 }
 0x712   : > { %3036 = vmatprep.mubr.bf16.mxu0 %v2750_v13 }
 0x719   : > { %3037 = vmatmul.mubr.bf16.gmra.mrb[72].mxu0 %v2212_v40 }
 0x71a   : > { %3046 = vmatprep.mubr.bf16.mxu0 %v2751_v53 }
 0x721   : > { %3047 = vmatmul.mubr.bf16.gmra.mrb[76].mxu0 %v2213_v2  ;;  %v6062_v2 = vld [vmem:[%s7203_s1 + $0x40] sm:$0xff] }
 0x7bc   : > { %v2978_v1 = vpop.f32.mrb[48].mxu0 }
 0x7bd   : > { %v8335_v48 = vadd.f32 %v6054_v51, %v2978_v1  ;;  %v2980_v14 = vpop.f32.mrb[49].mxu0 }
 0x7be   : > { %v8338_v28 = vadd.f32 %v6055_v39, %v2980_v14  ;;  %v2982_v30 = vpop.f32.mrb[50].mxu0  ;;  %v6069_v14 = vld [vmem:[%s7203_s1 + $0x78] sm:$0xff] }
 0x7bf   : > { %3089 = vst [vmem:[#allocation2] sm:$0xff] %v8335_v48  ;;  %v3121_v31 = vmul.f32 %v8335_v48, %v8335_v48  ;;  %v8344_v56 = vadd.f32 %v6056_v10, %v2982_v30  ;;  %v2984_v63 = vpop.f32.mrb[51].mxu0 }
 0x7c0   : > { %3090 = vst [vmem:[#allocation2 + $0x8] sm:$0xff] %v8338_v28  ;;  %v3122_v19 = vmul.f32 %v8338_v28, %v8338_v28  ;;  %v8350_v55 = vadd.f32 %v6057_v26, %v2984_v63  ;;  %v6070_v26 = vld [vmem:[%s7203_s1 + $0x80] sm:$0xff] }
 0x7c1   : > { %3091 = vst [vmem:[#allocation2 + $0x10] sm:$0xff] %v8344_v56  ;;  %v3123_v44 = vmul.f32 %v8344_v56, %v8344_v56 }
 0x7c2   : > { %3092 = vst [vmem:[#allocation2 + $0x18] sm:$0xff] %v8350_v55  ;;  %v3124_v52 = vmul.f32 %v8350_v55, %v8350_v55  ;;  %v3153_v15 = vadd.f32 %v3122_v19, %v3121_v31 }
 0x7c4   : > { %3154 = vadd.xlane.f32.xlu0 %v3153_v15  ;;  %v2988_v54 = vpop.f32.mrb[52].mxu0  ;;  %v3156_v37 = vadd.f32 %v3124_v52, %v3123_v44  ;;  %v6071_v15 = vld [vmem:[%s7203_s1 + $0x88] sm:$0xff] }
 0x7c5   : > { %v8359_v0 = vadd.f32 %v6058_v3, %v2988_v54  ;;  %v2990_v62 = vpop.f32.mrb[53].mxu0 }
 0x7c6   : > { %v8362_v50 = vadd.f32 %v6059_v11, %v2990_v62  ;;  %3157 = vadd.xlane.f32.xlu1 %v3156_v37  ;;  %v2992_v9 = vpop.f32.mrb[54].mxu0  ;;  %v6072_v62 = vld [vmem:[%s7203_s1 + $0x90] sm:$0xff] }
 0x7c7   : > { %3093 = vst [vmem:[#allocation2 + $0x20] sm:$0xff] %v8359_v0  ;;  %v3125_v33 = vmul.f32 %v8359_v0, %v8359_v0  ;;  %v8368_v38 = vadd.f32 %v6060_v59, %v2992_v9  ;;  %v2994_v4 = vpop.f32.mrb[55].mxu0  ;;  %v6073_v59 = vld [vmem:[%s7203_s1 + $0x98] sm:$0xff] }
 0x7c8   : > { %3094 = vst [vmem:[#allocation2 + $0x28] sm:$0xff] %v8362_v50  ;;  %v3126_v5 = vmul.f32 %v8362_v50, %v8362_v50  ;;  %v8374_v61 = vadd.f32 %v6061_v21, %v2994_v4 }
 0x7c9   : > { %3095 = vst [vmem:[#allocation2 + $0x30] sm:$0xff] %v8368_v38  ;;  %v3127_v22 = vmul.f32 %v8368_v38, %v8368_v38 }
 0x7ca   : > { %3096 = vst [vmem:[#allocation2 + $0x38] sm:$0xff] %v8374_v61  ;;  %v3128_v60 = vmul.f32 %v8374_v61, %v8374_v61  ;;  %v3159_v27 = vadd.f32 %v3126_v5, %v3125_v33 }
 0x7cc   : > { %3160 = vadd.xlane.f32.xlu0 %v3159_v27  ;;  %v2998_v24 = vpop.f32.mrb[56].mxu0  ;;  %v3162_v57 = vadd.f32 %v3128_v60, %v3127_v22 }
 0x7cd   : > { %v8383_v42 = vadd.f32 %v6062_v2, %v2998_v24  ;;  %v3000_v40 = vpop.f32.mrb[57].mxu0  ;;  %v6074_v24 = vld [vmem:[%s7203_s1 + $0xa0] sm:$0xff] }
 0x7ce   : > { %v8386_v23 = vadd.f32 %v6063_v47, %v3000_v40  ;;  %3163 = vadd.xlane.f32.xlu1 %v3162_v57  ;;  %v3002_v45 = vpop.f32.mrb[58].mxu0  ;;  %v6075_v40 = vld [vmem:[%s7203_s1 + $0xa8] sm:$0xff] }
 0x7cf   : > { %3097 = vst [vmem:[#allocation2 + $0x40] sm:$0xff] %v8383_v42  ;;  %v3129_v12 = vmul.f32 %v8383_v42, %v8383_v42  ;;  %v8392_v34 = vadd.f32 %v6064_v17, %v3002_v45  ;;  %v3004_v43 = vpop.f32.mrb[59].mxu0  ;;  %v6076_v17 = vld [vmem:[%s7203_s1 + $0xb0] sm:$0xff] }
 0x7d0   : > { %3098 = vst [vmem:[#allocation2 + $0x48] sm:$0xff] %v8386_v23  ;;  %v3130_v6 = vmul.f32 %v8386_v23, %v8386_v23  ;;  %v8398_v20 = vadd.f32 %v6065_v58, %v3004_v43 }
 0x7d1   : > { %3099 = vst [vmem:[#allocation2 + $0x50] sm:$0xff] %v8392_v34  ;;  %v3131_v49 = vmul.f32 %v8392_v34, %v8392_v34 }
 0x7d2   : > { %3100 = vst [vmem:[#allocation2 + $0x58] sm:$0xff] %v8398_v20  ;;  %v3132_v25 = vmul.f32 %v8398_v20, %v8398_v20  ;;  %v3165_v18 = vadd.f32 %v3130_v6, %v3129_v12 }
 0x7d4   : > { %3166 = vadd.xlane.f32.xlu0 %v3165_v18  ;;  %v3008_v41 = vpop.f32.mrb[60].mxu0  ;;  %v3168_v7 = vadd.f32 %v3132_v25, %v3131_v49  ;;  %v6077_v49 = vld [vmem:[%s7203_s1 + $0xb8] sm:$0xff] }
 0x7d5   : > { %v8407_v16 = vadd.f32 %v6066_v29, %v3008_v41  ;;  %v3010_v36 = vpop.f32.mrb[61].mxu0 }
 0x7d6   : > { %v8410_v46 = vadd.f32 %v6067_v32, %v3010_v36  ;;  %3169 = vadd.xlane.f32.xlu1 %v3168_v7  ;;  %v3012_v35 = vpop.f32.mrb[62].mxu0  ;;  %v6078_v32 = vld [vmem:[%s7203_s1 + $0xc0] sm:$0xff] }
 0x7d7   : > { %3101 = vst [vmem:[#allocation2 + $0x60] sm:$0xff] %v8407_v16  ;;  %v3133_v53 = vmul.f32 %v8407_v16, %v8407_v16  ;;  %v8416_v13 = vadd.f32 %v6068_v8, %v3012_v35  ;;  %v3014_v1 = vpop.f32.mrb[63].mxu0  ;;  %v6079_v8 = vld [vmem:[%s7203_s1 + $0xc8] sm:$0xff] }
 0x7d8   : > { %3102 = vst [vmem:[#allocation2 + $0x68] sm:$0xff] %v8410_v46  ;;  %v3134_v51 = vmul.f32 %v8410_v46, %v8410_v46  ;;  %v8422_v39 = vadd.f32 %v6069_v14, %v3014_v1 }
 0x7d9   : > { %3103 = vst [vmem:[#allocation2 + $0x70] sm:$0xff] %v8416_v13  ;;  %v3135_v30 = vmul.f32 %v8416_v13, %v8416_v13 }
 0x7da   : > { %3104 = vst [vmem:[#allocation2 + $0x78] sm:$0xff] %v8422_v39  ;;  %v3136_v31 = vmul.f32 %v8422_v39, %v8422_v39  ;;  %v3171_v10 = vadd.f32 %v3134_v51, %v3133_v53 }
 0x7dc   : > { %3172 = vadd.xlane.f32.xlu0 %v3171_v10  ;;  %v3018_v63 = vpop.f32.mrb[64].mxu0  ;;  %v3174_v19 = vadd.f32 %v3136_v31, %v3135_v30  ;;  %v6080_v30 = vld [vmem:[%s7203_s1 + $0xd0] sm:$0xff] }
 0x7dd   : > { %v8431_v44 = vadd.f32 %v6070_v26, %v3018_v63  ;;  %v3020_v52 = vpop.f32.mrb[65].mxu0 }
 0x7de   : > { %v8434_v54 = vadd.f32 %v6071_v15, %v3020_v52  ;;  %3175 = vadd.xlane.f32.xlu1 %v3174_v19  ;;  %v3022_v37 = vpop.f32.mrb[66].mxu0  ;;  %v6081_v19 = vld [vmem:[%s7203_s1 + $0xd8] sm:$0xff] }
 0x7df   : > { %3105 = vst [vmem:[#allocation2 + $0x80] sm:$0xff] %v8431_v44  ;;  %v3137_v3 = vmul.f32 %v8431_v44, %v8431_v44  ;;  %v8440_v11 = vadd.f32 %v6072_v62, %v3022_v37  ;;  %v3024_v9 = vpop.f32.mrb[67].mxu0 }
 0x7e0   : > { %3106 = vst [vmem:[#allocation2 + $0x88] sm:$0xff] %v8434_v54  ;;  %v3138_v33 = vmul.f32 %v8434_v54, %v8434_v54  ;;  %v8446_v4 = vadd.f32 %v6073_v59, %v3024_v9  ;;  %v6082_v9 = vld [vmem:[%s7203_s1 + $0xe0] sm:$0xff] }
 0x7e1   : > { %3107 = vst [vmem:[#allocation2 + $0x90] sm:$0xff] %v8440_v11  ;;  %v3139_v5 = vmul.f32 %v8440_v11, %v8440_v11 }
 0x7e2   : > { %3108 = vst [vmem:[#allocation2 + $0x98] sm:$0xff] %v8446_v4  ;;  %v3140_v21 = vmul.f32 %v8446_v4, %v8446_v4  ;;  %v3177_v22 = vadd.f32 %v3138_v33, %v3137_v3 }
 0x7e4   : > { %3178 = vadd.xlane.f32.xlu0 %v3177_v22  ;;  %v3028_v60 = vpop.f32.mrb[68].mxu0  ;;  %v3180_v27 = vadd.f32 %v3140_v21, %v3139_v5  ;;  %v6083_v5 = vld [vmem:[%s7203_s1 + $0xe8] sm:$0xff] }
 0x7e5   : > { %v8455_v57 = vadd.f32 %v6074_v24, %v3028_v60  ;;  %v3030_v2 = vpop.f32.mrb[69].mxu0 }
 0x7e6   : > { %v8458_v47 = vadd.f32 %v6075_v40, %v3030_v2  ;;  %3181 = vadd.xlane.f32.xlu1 %v3180_v27  ;;  %v3032_v45 = vpop.f32.mrb[70].mxu0  ;;  %v6084_v27 = vld [vmem:[%s7203_s1 + $0xf0] sm:$0xff] }
 0x7e7   : > { %3109 = vst [vmem:[#allocation2 + $0xa0] sm:$0xff] %v8455_v57  ;;  %v3141_v12 = vmul.f32 %v8455_v57, %v8455_v57  ;;  %v8464_v43 = vadd.f32 %v6076_v17, %v3032_v45  ;;  %v3034_v6 = vpop.f32.mrb[71].mxu0  ;;  %v6085_v45 = vld [vmem:[%s7203_s1 + $0xf8] sm:$0xff] }
 0x7e8   : > { %3110 = vst [vmem:[#allocation2 + $0xa8] sm:$0xff] %v8458_v47  ;;  %v3142_v58 = vmul.f32 %v8458_v47, %v8458_v47  ;;  %v8470_v25 = vadd.f32 %v6077_v49, %v3034_v6 }
 0x7e9   : > { %3111 = vst [vmem:[#allocation2 + $0xb0] sm:$0xff] %v8464_v43  ;;  %v3143_v18 = vmul.f32 %v8464_v43, %v8464_v43 }
 0x7ea   : > { %3112 = vst [vmem:[#allocation2 + $0xb8] sm:$0xff] %v8470_v25  ;;  %v3144_v41 = vmul.f32 %v8470_v25, %v8470_v25  ;;  %v3183_v7 = vadd.f32 %v3142_v58, %v3141_v12 }
 0x7ec   : > { %3184 = vadd.xlane.f32.xlu0 %v3183_v7  ;;  %v3038_v29 = vpop.f32.mrb[72].mxu0  ;;  %v3186_v36 = vadd.f32 %v3144_v41, %v3143_v18  ;;  %v6749_v18 = vmov 0.0  }
 0x7ed   : > { %v8479_v35 = vadd.f32 %v6078_v32, %v3038_v29  ;;  %v3040_v53 = vpop.f32.mrb[73].mxu0  ;;  %3313 = vst [vmem:[#allocation4] sm:$0xff] %v6749_v18  ;;  %3314 = vst [vmem:[#allocation4 + $0x8] sm:$0xff] %v6749_v18 }
 0x7ee   : > { %v8482_v1 = vadd.f32 %v6079_v8, %v3040_v53  ;;  %3187 = vadd.xlane.f32.xlu1 %v3186_v36  ;;  %v3042_v51 = vpop.f32.mrb[74].mxu0  ;;  %3315 = vst [vmem:[#allocation4 + $0x10] sm:$0xff] %v6749_v18  ;;  %3316 = vst [vmem:[#allocation4 + $0x18] sm:$0xff] %v6749_v18 }
 0x7ef   : > { %3113 = vst [vmem:[#allocation2 + $0xc0] sm:$0xff] %v8479_v35  ;;  %v3145_v14 = vmul.f32 %v8479_v35, %v8479_v35  ;;  %v8488_v31 = vadd.f32 %v6080_v30, %v3042_v51  ;;  %v3044_v10 = vpop.f32.mrb[75].mxu0  ;;  %3317 = vst [vmem:[#allocation4 + $0x20] sm:$0xff] %v6749_v18 }
 0x7f0   : > { %3114 = vst [vmem:[#allocation2 + $0xc8] sm:$0xff] %v8482_v1  ;;  %v3146_v63 = vmul.f32 %v8482_v1, %v8482_v1  ;;  %v8494_v26 = vadd.f32 %v6081_v19, %v3044_v10  ;;  %3318 = vst [vmem:[#allocation4 + $0x28] sm:$0xff] %v6749_v18 }
 0x7f1   : > { %3115 = vst [vmem:[#allocation2 + $0xd0] sm:$0xff] %v8488_v31  ;;  %v3147_v52 = vmul.f32 %v8488_v31, %v8488_v31  ;;  %3319 = vst [vmem:[#allocation4 + $0x30] sm:$0xff] %v6749_v18 }
 0x7f2   : > { %3116 = vst [vmem:[#allocation2 + $0xd8] sm:$0xff] %v8494_v26  ;;  %v3148_v15 = vmul.f32 %v8494_v26, %v8494_v26  ;;  %v3189_v37 = vadd.f32 %v3146_v63, %v3145_v14  ;;  %3320 = vst [vmem:[#allocation4 + $0x38] sm:$0xff] %v6749_v18 }
 0x7f3   : > { %3321 = vst [vmem:[#allocation4 + $0x40] sm:$0xff] %v6749_v18  ;;  %3322 = vst [vmem:[#allocation4 + $0x48] sm:$0xff] %v6749_v18 }
 0x7f4   : > { %3190 = vadd.xlane.f32.xlu0 %v3189_v37  ;;  %v3048_v3 = vpop.f32.mrb[76].mxu0  ;;  %v3192_v62 = vadd.f32 %v3148_v15, %v3147_v52  ;;  %3323 = vst [vmem:[#allocation4 + $0x50] sm:$0xff] %v6749_v18  ;;  %3324 = vst [vmem:[#allocation4 + $0x58] sm:$0xff] %v6749_v18 }
 0x7f5   : > { %v8503_v33 = vadd.f32 %v6082_v9, %v3048_v3  ;;  %v3050_v59 = vpop.f32.mrb[77].mxu0  ;;  %3325 = vst [vmem:[#allocation4 + $0x60] sm:$0xff] %v6749_v18  ;;  %3326 = vst [vmem:[#allocation4 + $0x68] sm:$0xff] %v6749_v18 }
 0x7f6   : > { %v8506_v21 = vadd.f32 %v6083_v5, %v3050_v59  ;;  %3193 = vadd.xlane.f32.xlu1 %v3192_v62  ;;  %v3052_v22 = vpop.f32.mrb[78].mxu0  ;;  %3327 = vst [vmem:[#allocation4 + $0x70] sm:$0xff] %v6749_v18  ;;  %3328 = vst [vmem:[#allocation4 + $0x78] sm:$0xff] %v6749_v18 }
 0x7f7   : > { %3117 = vst [vmem:[#allocation2 + $0xe0] sm:$0xff] %v8503_v33  ;;  %v3149_v60 = vmul.f32 %v8503_v33, %v8503_v33  ;;  %v8512_v24 = vadd.f32 %v6084_v27, %v3052_v22  ;;  %v3054_v2 = vpop.f32.mrb[79].mxu0  ;;  %3329 = vst [vmem:[#allocation4 + $0x80] sm:$0xff] %v6749_v18 }
 0x7f8   : > { %3118 = vst [vmem:[#allocation2 + $0xe8] sm:$0xff] %v8506_v21  ;;  %v3150_v40 = vmul.f32 %v8506_v21, %v8506_v21  ;;  %v8518_v12 = vadd.f32 %v6085_v45, %v3054_v2  ;;  %3330 = vst [vmem:[#allocation4 + $0x88] sm:$0xff] %v6749_v18 }
 0x7f9   : > { %3119 = vst [vmem:[#allocation2 + $0xf0] sm:$0xff] %v8512_v24  ;;  %v3151_v17 = vmul.f32 %v8512_v24, %v8512_v24  ;;  %3331 = vst [vmem:[#allocation4 + $0x90] sm:$0xff] %v6749_v18 }
 0x7fa   : > { %3120 = vst [vmem:[#allocation2 + $0xf8] sm:$0xff] %v8518_v12  ;;  %v3152_v6 = vmul.f32 %v8518_v12, %v8518_v12  ;;  %v3195_v58 = vadd.f32 %v3150_v40, %v3149_v60  ;;  %3332 = vst [vmem:[#allocation4 + $0x98] sm:$0xff] %v6749_v18 }
 0x7fb   : > { %3333 = vst [vmem:[#allocation4 + $0xa0] sm:$0xff] %v6749_v18  ;;  %3334 = vst [vmem:[#allocation4 + $0xa8] sm:$0xff] %v6749_v18 }
 0x7fc   : > { %3196 = vadd.xlane.f32.xlu0 %v3195_v58  ;;  %v3198_v49 = vadd.f32 %v3152_v6, %v3151_v17  ;;  %3335 = vst [vmem:[#allocation4 + $0xb0] sm:$0xff] %v6749_v18  ;;  %3336 = vst [vmem:[#allocation4 + $0xb8] sm:$0xff] %v6749_v18 }
 0x7fd   : > { %3337 = vst [vmem:[#allocation4 + $0xc0] sm:$0xff] %v6749_v18  ;;  %3338 = vst [vmem:[#allocation4 + $0xc8] sm:$0xff] %v6749_v18 }
 0x7fe   : > { %3199 = vadd.xlane.f32.xlu1 %v3198_v49  ;;  %3339 = vst [vmem:[#allocation4 + $0xd0] sm:$0xff] %v6749_v18  ;;  %3340 = vst [vmem:[#allocation4 + $0xd8] sm:$0xff] %v6749_v18 }
 0x7ff   : > { %3341 = vst [vmem:[#allocation4 + $0xe0] sm:$0xff] %v6749_v18  ;;  %3342 = vst [vmem:[#allocation4 + $0xe8] sm:$0xff] %v6749_v18 }
 0x800   : > { %3343 = vst [vmem:[#allocation4 + $0xf0] sm:$0xff] %v6749_v18  ;;  %3344 = vst [vmem:[#allocation4 + $0xf8] sm:$0xff] %v6749_v18 }
 0x851   : > { %v3155_v41 = vpop.xlane.xlu0 %3154 }
 0x852   : > { %v3201_v7 = vmul.f32 0.00390625, %v3155_v41 }
 0x853   : > { %v3158_v29 = vpop.xlane.xlu1 %3157 }
 0x854   : > { %v3217_v36 = vadd.f32 1.1920929e-07, %v3201_v7  ;;  %v3202_v32 = vmul.f32 0.00390625, %v3158_v29 }
 0x856   : > { %6022 = vrsqrt.f32 %v3217_v36  ;;  %v3218_v53 = vadd.f32 1.1920929e-07, %v3202_v32 }
 0x858   : > { %6024 = vrsqrt.f32 %v3218_v53 }
 0x859   : > { %v3161_v8 = vpop.xlane.xlu0 %3160 }
 0x85a   : > { %v3203_v51 = vmul.f32 0.00390625, %v3161_v8 }
 0x85b   : > { %v3164_v14 = vpop.xlane.xlu1 %3163 }
 0x85c   : > { %v3219_v30 = vadd.f32 1.1920929e-07, %v3203_v51  ;;  %v3204_v10 = vmul.f32 0.00390625, %v3164_v14 }
 0x85e   : > { %6026 = vrsqrt.f32 %v3219_v30  ;;  %v3220_v63 = vadd.f32 1.1920929e-07, %v3204_v10 }
 0x860   : > { %v6023_v19 = vpop.eup %6022  ;;  %6028 = vrsqrt.f32 %v3220_v63 }
 0x861   : > { %v3167_v52 = vpop.xlane.xlu0 %3166  ;;  %v3249_v3 = vmul.f32 %v6023_v19, %v8335_v48  ;;  %v3250_v62 = vmul.f32 %v6023_v19, %v8338_v28 }
 0x862   : > { %v6025_v15 = vpop.eup %6024  ;;  %v3205_v37 = vmul.f32 0.00390625, %v3167_v52 }
 0x863   : > { %v3251_v9 = vmul.f32 %v6025_v15, %v8344_v56  ;;  %v3252_v59 = vmul.f32 %v6025_v15, %v8350_v55  ;;  %v3170_v5 = vpop.xlane.xlu1 %3169 }
 0x864   : > { %v3221_v22 = vadd.f32 1.1920929e-07, %v3205_v37  ;;  %v3206_v60 = vmul.f32 0.00390625, %v3170_v5 }
 0x865   : > { %v3281_v27 = vpack.c.bf16 %v3251_v9, %v3249_v3  ;;  %v3282_v2 = vpack.c.bf16 %v3252_v59, %v3250_v62 }
 0x866   : > { %6030 = vrsqrt.f32 %v3221_v22  ;;  %v3222_v40 = vadd.f32 1.1920929e-07, %v3206_v60 }
 0x867   : > { %3297 = vst [vmem:[#allocation3] sm:$0xff] %v3281_v27  ;;  %3298 = vst [vmem:[#allocation3 + $0x8] sm:$0xff] %v3282_v2 }
 0x868   : > { %v6027_v45 = vpop.eup %6026  ;;  %6032 = vrsqrt.f32 %v3222_v40 }
 0x869   : > { %v3173_v17 = vpop.xlane.xlu0 %3172  ;;  %v3253_v28 = vmul.f32 %v6027_v45, %v8359_v0  ;;  %v3254_v56 = vmul.f32 %v6027_v45, %v8362_v50 }
 0x86a   : > { %v6029_v6 = vpop.eup %6028  ;;  %v3207_v48 = vmul.f32 0.00390625, %v3173_v17 }
 0x86b   : > { %v3255_v55 = vmul.f32 %v6029_v6, %v8368_v38  ;;  %v3256_v58 = vmul.f32 %v6029_v6, %v8374_v61  ;;  %v3176_v49 = vpop.xlane.xlu1 %3175 }
 0x86c   : > { %v3223_v18 = vadd.f32 1.1920929e-07, %v3207_v48  ;;  %v3208_v41 = vmul.f32 0.00390625, %v3176_v49 }
 0x86d   : > { %v3283_v7 = vpack.c.bf16 %v3255_v55, %v3253_v28  ;;  %v3284_v29 = vpack.c.bf16 %v3256_v58, %v3254_v56 }
 0x86e   : > { %6034 = vrsqrt.f32 %v3223_v18  ;;  %v3224_v36 = vadd.f32 1.1920929e-07, %v3208_v41 }
 0x86f   : > { %3299 = vst [vmem:[#allocation3 + $0x10] sm:$0xff] %v3283_v7  ;;  %3300 = vst [vmem:[#allocation3 + $0x18] sm:$0xff] %v3284_v29 }
 0x870   : > { %v6031_v32 = vpop.eup %6030  ;;  %6036 = vrsqrt.f32 %v3224_v36 }
 0x871   : > { %v3179_v53 = vpop.xlane.xlu0 %3178  ;;  %v3257_v50 = vmul.f32 %v6031_v32, %v8383_v42  ;;  %v3258_v38 = vmul.f32 %v6031_v32, %v8386_v23 }
 0x872   : > { %v6033_v8 = vpop.eup %6032  ;;  %v3209_v0 = vmul.f32 0.00390625, %v3179_v53 }
 0x873   : > { %v3259_v61 = vmul.f32 %v6033_v8, %v8392_v34  ;;  %v3260_v51 = vmul.f32 %v6033_v8, %v8398_v20  ;;  %v3182_v14 = vpop.xlane.xlu1 %3181 }
 0x874   : > { %v3225_v30 = vadd.f32 1.1920929e-07, %v3209_v0  ;;  %v3210_v10 = vmul.f32 0.00390625, %v3182_v14 }
 0x875   : > { %v3285_v63 = vpack.c.bf16 %v3259_v61, %v3257_v50  ;;  %v3286_v19 = vpack.c.bf16 %v3260_v51, %v3258_v38 }
 0x876   : > { %6038 = vrsqrt.f32 %v3225_v30  ;;  %v3226_v52 = vadd.f32 1.1920929e-07, %v3210_v10 }
 0x877   : > { %3301 = vst [vmem:[#allocation3 + $0x20] sm:$0xff] %v3285_v63  ;;  %3302 = vst [vmem:[#allocation3 + $0x28] sm:$0xff] %v3286_v19 }
 0x878   : > { %v6035_v15 = vpop.eup %6034  ;;  %6040 = vrsqrt.f32 %v3226_v52 }
 0x879   : > { %v3185_v37 = vpop.xlane.xlu0 %3184  ;;  %v3261_v23 = vmul.f32 %v6035_v15, %v8407_v16  ;;  %v3262_v34 = vmul.f32 %v6035_v15, %v8410_v46 }
 0x87a   : > { %v6037_v3 = vpop.eup %6036  ;;  %v3211_v42 = vmul.f32 0.00390625, %v3185_v37 }
 0x87b   : > { %v3263_v20 = vmul.f32 %v6037_v3, %v8416_v13  ;;  %v3264_v62 = vmul.f32 %v6037_v3, %v8422_v39  ;;  %v3188_v9 = vpop.xlane.xlu1 %3187 }
 0x87c   : > { %v3227_v59 = vadd.f32 1.1920929e-07, %v3211_v42  ;;  %v3212_v5 = vmul.f32 0.00390625, %v3188_v9 }
 0x87d   : > { %v3287_v22 = vpack.c.bf16 %v3263_v20, %v3261_v23  ;;  %v3288_v60 = vpack.c.bf16 %v3264_v62, %v3262_v34 }
 0x87e   : > { %6042 = vrsqrt.f32 %v3227_v59  ;;  %v3228_v27 = vadd.f32 1.1920929e-07, %v3212_v5 }
 0x87f   : > { %3303 = vst [vmem:[#allocation3 + $0x30] sm:$0xff] %v3287_v22  ;;  %3304 = vst [vmem:[#allocation3 + $0x38] sm:$0xff] %v3288_v60 }
 0x880   : > { %v6039_v2 = vpop.eup %6038  ;;  %6044 = vrsqrt.f32 %v3228_v27 }
 0x881   : > { %v3191_v40 = vpop.xlane.xlu0 %3190  ;;  %v3265_v46 = vmul.f32 %v6039_v2, %v8431_v44  ;;  %v3266_v13 = vmul.f32 %v6039_v2, %v8434_v54 }
 0x882   : > { %v6041_v45 = vpop.eup %6040  ;;  %v3213_v16 = vmul.f32 0.00390625, %v3191_v40 }
 0x883   : > { %v3267_v39 = vmul.f32 %v6041_v45, %v8440_v11  ;;  %v3268_v17 = vmul.f32 %v6041_v45, %v8446_v4  ;;  %v3194_v6 = vpop.xlane.xlu1 %3193 }
 0x884   : > { %v3229_v48 = vadd.f32 1.1920929e-07, %v3213_v16  ;;  %v3214_v28 = vmul.f32 0.00390625, %v3194_v6 }
 0x885   : > { %v3289_v56 = vpack.c.bf16 %v3267_v39, %v3265_v46  ;;  %v3290_v55 = vpack.c.bf16 %v3268_v17, %v3266_v13 }
 0x886   : > { %6046 = vrsqrt.f32 %v3229_v48  ;;  %v3230_v58 = vadd.f32 1.1920929e-07, %v3214_v28 }
 0x887   : > { %3305 = vst [vmem:[#allocation3 + $0x40] sm:$0xff] %v3289_v56  ;;  %3306 = vst [vmem:[#allocation3 + $0x48] sm:$0xff] %v3290_v55 }
 0x888   : > { %v6043_v49 = vpop.eup %6042  ;;  %6048 = vrsqrt.f32 %v3230_v58 }
 0x889   : > { %v3197_v18 = vpop.xlane.xlu0 %3196  ;;  %v3269_v54 = vmul.f32 %v6043_v49, %v8455_v57  ;;  %v3270_v11 = vmul.f32 %v6043_v49, %v8458_v47 }
 0x88a   : > { %v6045_v41 = vpop.eup %6044  ;;  %v3215_v44 = vmul.f32 0.00390625, %v3197_v18 }
 0x88b   : > { %v3271_v4 = vmul.f32 %v6045_v41, %v8464_v43  ;;  %v3272_v7 = vmul.f32 %v6045_v41, %v8470_v25  ;;  %v3200_v29 = vpop.xlane.xlu1 %3199 }
 0x88c   : > { %v3231_v36 = vadd.f32 1.1920929e-07, %v3215_v44  ;;  %v3216_v32 = vmul.f32 0.00390625, %v3200_v29 }
 0x88d   : > { %v3291_v53 = vpack.c.bf16 %v3271_v4, %v3269_v54  ;;  %v3292_v8 = vpack.c.bf16 %v3272_v7, %v3270_v11 }
 0x88e   : > { %6050 = vrsqrt.f32 %v3231_v36  ;;  %v3232_v0 = vadd.f32 1.1920929e-07, %v3216_v32 }
 0x88f   : > { %3307 = vst [vmem:[#allocation3 + $0x50] sm:$0xff] %v3291_v53  ;;  %3308 = vst [vmem:[#allocation3 + $0x58] sm:$0xff] %v3292_v8 }
 0x890   : > { %v6047_v50 = vpop.eup %6046  ;;  %6052 = vrsqrt.f32 %v3232_v0 }
 0x891   : > { %v3273_v57 = vmul.f32 %v6047_v50, %v8479_v35  ;;  %v3274_v47 = vmul.f32 %v6047_v50, %v8482_v1 }
 0x892   : > { %v6049_v38 = vpop.eup %6048 }
 0x893   : > { %v3275_v43 = vmul.f32 %v6049_v38, %v8488_v31  ;;  %v3276_v25 = vmul.f32 %v6049_v38, %v8494_v26 }
 0x895   : > { %v3293_v61 = vpack.c.bf16 %v3275_v43, %v3273_v57  ;;  %v3294_v51 = vpack.c.bf16 %v3276_v25, %v3274_v47 }
 0x897   : > { %3309 = vst [vmem:[#allocation3 + $0x60] sm:$0xff] %v3293_v61  ;;  %3310 = vst [vmem:[#allocation3 + $0x68] sm:$0xff] %v3294_v51 }
 0x898   : > { %v6051_v14 = vpop.eup %6050 }
 0x899   : > { %v3277_v10 = vmul.f32 %v6051_v14, %v8503_v33  ;;  %v3278_v63 = vmul.f32 %v6051_v14, %v8506_v21 }
 0x89a   : > { %v6053_v30 = vpop.eup %6052 }
 0x89b   : > { %v3279_v19 = vmul.f32 %v6053_v30, %v8512_v24  ;;  %v3280_v35 = vmul.f32 %v6053_v30, %v8518_v12 }
 0x89d   : > { %v3295_v52 = vpack.c.bf16 %v3279_v19, %v3277_v10  ;;  %v3296_v1 = vpack.c.bf16 %v3280_v35, %v3278_v63 }
 0x89f   : > { %3311 = vst [vmem:[#allocation3 + $0x70] sm:$0xff] %v3295_v52  ;;  %3312 = vst [vmem:[#allocation3 + $0x78] sm:$0xff] %v3296_v1 }
 0x8a0 PF: > { %v6086_v31 = vld [vmem:[%s7215_s27 + $0x4] ss:$8 sps:$4 sm:$0xff]   ;;  %v6088_v26 = vld [vmem:[%s7215_s27] ss:$8 sps:$4 sm:$0xff]   ;;  %v6089_v33 = vld [vmem:[%s7215_s27 + $0x14] ss:$8 sps:$4 sm:$0xff]  }
 0x8a1   : > { %3553 = vmatprep.subr.bf16.mxu0 %v6086_v31  ;;  %v6091_v21 = vld [vmem:[%s7215_s27 + $0x10] ss:$8 sps:$4 sm:$0xff]   ;;  %v6092_v24 = vld [vmem:[%s7215_s27 + $0x24] ss:$8 sps:$4 sm:$0xff]   ;;  %v6094_v12 = vld [vmem:[%s7215_s27 + $0x20] ss:$8 sps:$4 sm:$0xff]  }
 0x8a2   : > { %3554 = vmatpush1.bf16.msra.mxu0 %v6088_v26  ;;  %v6095_v15 = vld [vmem:[%s7215_s27 + $0x34] ss:$8 sps:$4 sm:$0xff]   ;;  %v6107_v37 = vld [vmem:[%s7221_s11 + $0x4] ss:$8 sps:$4 sm:$0xff]   ;;  %v6109_v3 = vld [vmem:[%s7221_s11] ss:$8 sps:$4 sm:$0xff]  }
 0x8a3   : > { %3555 = vmatprep.subr.bf16.mxu0 %v6089_v33  ;;  %v6097_v42 = vld [vmem:[%s7215_s27 + $0x30] ss:$8 sps:$4 sm:$0xff]   ;;  %v6098_v23 = vld [vmem:[%s7215_s27 + $0x44] ss:$8 sps:$4 sm:$0xff]   ;;  %3858 = vmatprep.subr.bf16.mxu1 %v6107_v37  ;;  %v6113_v34 = vld [vmem:[%s7221_s11 + $0x14] ss:$8 sps:$4 sm:$0xff]  }
 0x8a4   : > { %3859 = vmatpush1.bf16.msra.mxu1 %v6109_v3  ;;  %v6115_v20 = vld [vmem:[%s7221_s11 + $0x10] ss:$8 sps:$4 sm:$0xff]   ;;  %v6100_v62 = vld [vmem:[%s7215_s27 + $0x40] ss:$8 sps:$4 sm:$0xff]   ;;  %v6119_v9 = vld [vmem:[%s7221_s11 + $0x24] ss:$8 sps:$4 sm:$0xff]  }
 0x8a5   : > { %3860 = vmatprep.subr.bf16.mxu1 %v6113_v34  ;;  %v6101_v59 = vld [vmem:[%s7215_s27 + $0x54] ss:$8 sps:$4 sm:$0xff]   ;;  %v6121_v5 = vld [vmem:[%s7221_s11 + $0x20] ss:$8 sps:$4 sm:$0xff]   ;;  %v6103_v60 = vld [vmem:[%s7215_s27 + $0x50] ss:$8 sps:$4 sm:$0xff]  }
 0x8a6   : > { %3556 = vmatpush1.bf16.msra.mxu0 %v6091_v21  ;;  %v6125_v22 = vld [vmem:[%s7221_s11 + $0x34] ss:$8 sps:$4 sm:$0xff]   ;;  %v6104_v27 = vld [vmem:[%s7215_s27 + $0x64] ss:$8 sps:$4 sm:$0xff]   ;;  %v6127_v2 = vld [vmem:[%s7221_s11 + $0x30] ss:$8 sps:$4 sm:$0xff]  }
 0x8a7   : > { %3557 = vmatprep.subr.bf16.mxu0 %v6092_v24  ;;  %v6131_v40 = vld [vmem:[%s7221_s11 + $0x44] ss:$8 sps:$4 sm:$0xff]   ;;  %v6106_v45 = vld [vmem:[%s7215_s27 + $0x60] ss:$8 sps:$4 sm:$0xff]   ;;  %v6110_v16 = vld [vmem:[%s7215_s27 + $0x74] ss:$8 sps:$4 sm:$0xff]  }
 0x8a8   : > { %3861 = vmatpush1.bf16.msra.mxu1 %v6115_v20  ;;  %v6133_v46 = vld [vmem:[%s7221_s11 + $0x40] ss:$8 sps:$4 sm:$0xff]   ;;  %v6137_v13 = vld [vmem:[%s7221_s11 + $0x54] ss:$8 sps:$4 sm:$0xff]   ;;  %v6112_v39 = vld [vmem:[%s7215_s27 + $0x70] ss:$8 sps:$4 sm:$0xff]  }
 0x8a9   : > { %3862 = vmatprep.subr.bf16.mxu1 %v6119_v9  ;;  %v6116_v17 = vld [vmem:[%s7215_s27 + $0x84] ss:$8 sps:$4 sm:$0xff]   ;;  %v6139_v6 = vld [vmem:[%s7221_s11 + $0x50] ss:$8 sps:$4 sm:$0xff]   ;;  %v6118_v28 = vld [vmem:[%s7215_s27 + $0x80] ss:$8 sps:$4 sm:$0xff]  }
 0x8aa   : > { %3558 = vmatpush1.bf16.msra.mxu0 %v6094_v12  ;;  %v6143_v48 = vld [vmem:[%s7221_s11 + $0x64] ss:$8 sps:$4 sm:$0xff]   ;;  %v6122_v56 = vld [vmem:[%s7215_s27 + $0x94] ss:$8 sps:$4 sm:$0xff]   ;;  %v6145_v55 = vld [vmem:[%s7221_s11 + $0x60] ss:$8 sps:$4 sm:$0xff]  }
 0x8ab   : > { %3559 = vmatprep.subr.bf16.mxu0 %v6095_v15  ;;  %v6149_v58 = vld [vmem:[%s7221_s11 + $0x74] ss:$8 sps:$4 sm:$0xff]   ;;  %v3346_v49 = vld [vmem:[#allocation3 + $0x8] sm:$0xff]  ;;  %v6124_v18 = vld [vmem:[%s7215_s27 + $0x90] ss:$8 sps:$4 sm:$0xff]   ;;  %s9212_s13 = sld [smem:[#allocation29_spill]] }
 0x8ac   : > { %3863 = vmatpush1.bf16.msra.mxu1 %v6121_v5  ;;  %3585 = vmatprep.mubr.bf16.mxu0 %v3346_v49  ;;  %v6128_v41 = vld [vmem:[%s7215_s27 + $0xa4] ss:$8 sps:$4 sm:$0xff]   ;;  %v6151_v44 = vld [vmem:[%s7221_s11 + $0x70] ss:$8 sps:$4 sm:$0xff]   ;;  %v6130_v11 = vld [vmem:[%s7215_s27 + $0xa0] ss:$8 sps:$4 sm:$0xff]  }
 0x8ad   : > { %3864 = vmatprep.subr.bf16.mxu1 %v6125_v22  ;;  %3890 = vmatprep.mubr.bf16.mxu1 %v3346_v49  ;;  %v6155_v54 = vld [vmem:[%s7221_s11 + $0x84] ss:$8 sps:$4 sm:$0xff]   ;;  %v6134_v4 = vld [vmem:[%s7215_s27 + $0xb4] ss:$8 sps:$4 sm:$0xff]   ;;  %v6157_v7 = vld [vmem:[%s7221_s11 + $0x80] ss:$8 sps:$4 sm:$0xff]  }
 0x8ae   : > { %3560 = vmatpush1.bf16.msra.mxu0 %v6097_v42  ;;  %v6161_v29 = vld [vmem:[%s7221_s11 + $0x94] ss:$8 sps:$4 sm:$0xff]   ;;  %v6136_v36 = vld [vmem:[%s7215_s27 + $0xb0] ss:$8 sps:$4 sm:$0xff]   ;;  %v6140_v32 = vld [vmem:[%s7215_s27 + $0xc4] ss:$8 sps:$4 sm:$0xff]  }
 0x8af   : > { %3561 = vmatprep.subr.bf16.mxu0 %v6098_v23  ;;  %v6163_v53 = vld [vmem:[%s7221_s11 + $0x90] ss:$8 sps:$4 sm:$0xff]   ;;  %v6164_v8 = vld [vmem:[%s7221_s11 + $0xa4] ss:$8 sps:$4 sm:$0xff]   ;;  %v6142_v0 = vld [vmem:[%s7215_s27 + $0xc0] ss:$8 sps:$4 sm:$0xff]  }
 0x8b0   : > { %3865 = vmatpush1.bf16.msra.mxu1 %v6127_v2  ;;  %v6146_v50 = vld [vmem:[%s7215_s27 + $0xd4] ss:$8 sps:$4 sm:$0xff]   ;;  %v6166_v38 = vld [vmem:[%s7221_s11 + $0xa0] ss:$8 sps:$4 sm:$0xff]   ;;  %v6148_v47 = vld [vmem:[%s7215_s27 + $0xd0] ss:$8 sps:$4 sm:$0xff]  }
 0x8b1   : > { %3866 = vmatprep.subr.bf16.mxu1 %v6131_v40  ;;  %v6167_v57 = vld [vmem:[%s7221_s11 + $0xb4] ss:$8 sps:$4 sm:$0xff]   ;;  %v6152_v43 = vld [vmem:[%s7215_s27 + $0xe4] ss:$8 sps:$4 sm:$0xff]   ;;  %v6169_v25 = vld [vmem:[%s7221_s11 + $0xb0] ss:$8 sps:$4 sm:$0xff]  }
 0x8b2   : > { %3562 = vmatpush1.bf16.msra.mxu0 %v6100_v62  ;;  %v6170_v61 = vld [vmem:[%s7221_s11 + $0xc4] ss:$8 sps:$4 sm:$0xff]   ;;  %v6154_v51 = vld [vmem:[%s7215_s27 + $0xe0] ss:$8 sps:$4 sm:$0xff]   ;;  %v6158_v14 = vld [vmem:[%s7215_s27 + $0xf4] ss:$8 sps:$4 sm:$0xff]  }
 0x8b3   : > { %3563 = vmatprep.subr.bf16.mxu0 %v6101_v59  ;;  %v6172_v30 = vld [vmem:[%s7221_s11 + $0xc0] ss:$8 sps:$4 sm:$0xff]   ;;  %v6160_v10 = vld [vmem:[%s7215_s27 + $0xf0] ss:$8 sps:$4 sm:$0xff]   ;;  %v6173_v63 = vld [vmem:[%s7221_s11 + $0xd4] ss:$8 sps:$4 sm:$0xff]  }
 0x8b4   : > { %3867 = vmatpush1.bf16.msra.mxu1 %v6133_v46  ;;  %v6184_v19 = vld [vmem:[%s7223_s23 + $0x4] ss:$8 sps:$4 sm:$0xff]   ;;  %v6175_v35 = vld [vmem:[%s7221_s11 + $0xd0] ss:$8 sps:$4 sm:$0xff]   ;;  %v6182_v31 = vld [vmem:[%s7223_s23] ss:$8 sps:$4 sm:$0xff]  }
 0x8b5   : > { %3868 = vmatprep.subr.bf16.mxu1 %v6137_v13  ;;  %v6176_v52 = vld [vmem:[%s7221_s11 + $0xe4] ss:$8 sps:$4 sm:$0xff]   ;;  %v3348_v26 = vld [vmem:[#allocation3 + $0x18] sm:$0xff]  ;;  %v6178_v21 = vld [vmem:[%s7221_s11 + $0xe0] ss:$8 sps:$4 sm:$0xff]   ;;  %p5266_p5 = scmp.ne.s32.totalorder %s9212_s13, 1 }
 0x8b6   : > { %3564 = vmatpush1.bf16.msra.mxu0 %v6103_v60  ;;  %v3345_v1 = vld [vmem:[#allocation3] sm:$0xff]  ;;  %v6187_v33 = vld [vmem:[%s7223_s23 + $0x14] ss:$8 sps:$4 sm:$0xff]   ;;  %v6185_v12 = vld [vmem:[%s7223_s23 + $0x10] ss:$8 sps:$4 sm:$0xff]  }
 0x8b7   : > { %3565 = vmatprep.subr.bf16.mxu0 %v6104_v27  ;;  %v6179_v24 = vld [vmem:[%s7221_s11 + $0xf4] ss:$8 sps:$4 sm:$0xff]   ;;  %v6190_v15 = vld [vmem:[%s7223_s23 + $0x24] ss:$8 sps:$4 sm:$0xff]   ;;  %v6181_v37 = vld [vmem:[%s7221_s11 + $0xf0] ss:$8 sps:$4 sm:$0xff]  }
 0x8b8   : > { %3869 = vmatpush1.bf16.msra.mxu1 %v6139_v6  ;;  %v3347_v3 = vld [vmem:[#allocation3 + $0x10] sm:$0xff]  ;;  %v6188_v42 = vld [vmem:[%s7223_s23 + $0x20] ss:$8 sps:$4 sm:$0xff]   ;;  %v6196_v62 = vld [vmem:[%s7223_s23 + $0x44] ss:$8 sps:$4 sm:$0xff]  }
 0x8b9   : > { %3870 = vmatprep.subr.bf16.mxu1 %v6143_v48  ;;  %v3350_v23 = vld [vmem:[#allocation3 + $0x28] sm:$0xff]  ;;  %v6193_v34 = vld [vmem:[%s7223_s23 + $0x34] ss:$8 sps:$4 sm:$0xff]   ;;  %v6191_v20 = vld [vmem:[%s7223_s23 + $0x30] ss:$8 sps:$4 sm:$0xff]  }
 0x8ba   : > { %3566 = vmatpush1.bf16.msra.mxu0 %v6106_v45  ;;  %v3349_v9 = vld [vmem:[#allocation3 + $0x20] sm:$0xff]  ;;  %v3352_v5 = vld [vmem:[#allocation3 + $0x38] sm:$0xff]  ;;  %v3351_v2 = vld [vmem:[#allocation3 + $0x30] sm:$0xff] }
 0x8bb   : > { %3567 = vmatprep.subr.bf16.mxu0 %v6110_v16  ;;  %v6194_v59 = vld [vmem:[%s7223_s23 + $0x40] ss:$8 sps:$4 sm:$0xff]   ;;  %v6199_v22 = vld [vmem:[%s7223_s23 + $0x54] ss:$8 sps:$4 sm:$0xff]   ;;  %v6197_v60 = vld [vmem:[%s7223_s23 + $0x50] ss:$8 sps:$4 sm:$0xff]  }
 0x8bc   : > { %3871 = vmatpush1.bf16.msra.mxu1 %v6145_v55  ;;  %v6202_v27 = vld [vmem:[%s7223_s23 + $0x64] ss:$8 sps:$4 sm:$0xff]   ;;  %v6200_v40 = vld [vmem:[%s7223_s23 + $0x60] ss:$8 sps:$4 sm:$0xff]   ;;  %v3356_v46 = vld [vmem:[#allocation3 + $0x58] sm:$0xff] }
 0x8bd   : > { %3872 = vmatprep.subr.bf16.mxu1 %v6149_v58  ;;  %v3354_v45 = vld [vmem:[#allocation3 + $0x48] sm:$0xff]  ;;  %v3353_v16 = vld [vmem:[#allocation3 + $0x40] sm:$0xff]  ;;  %v3355_v13 = vld [vmem:[#allocation3 + $0x50] sm:$0xff] }
 0x8be   : > { %3568 = vmatpush1.bf16.msra.mxu0 %v6112_v39  ;;  %v3358_v39 = vld [vmem:[#allocation3 + $0x68] sm:$0xff]  ;;  %v3360_v6 = vld [vmem:[#allocation3 + $0x78] sm:$0xff]  ;;  %v3359_v48 = vld [vmem:[#allocation3 + $0x70] sm:$0xff] }
 0x8bf   : > { %3569 = vmatprep.subr.bf16.mxu0 %v6116_v17  ;;  %v3357_v17 = vld [vmem:[#allocation3 + $0x60] sm:$0xff]  ;;  %v6211_v49 = vld [vmem:[%s7223_s23 + $0x94] ss:$8 sps:$4 sm:$0xff]  }
 0x8c0   : > { %3873 = vmatpush1.bf16.msra.mxu1 %v6151_v44  ;;  %v6208_v55 = vld [vmem:[%s7223_s23 + $0x84] ss:$8 sps:$4 sm:$0xff]   ;;  %v6206_v58 = vld [vmem:[%s7223_s23 + $0x80] ss:$8 sps:$4 sm:$0xff]  }
 0x8c1   : > { %3874 = vmatprep.subr.bf16.mxu1 %v6155_v54  ;;  %v6212_v44 = vld [vmem:[%s7223_s23 + $0xa0] ss:$8 sps:$4 sm:$0xff]   ;;  %v6217_v54 = vld [vmem:[%s7223_s23 + $0xb4] ss:$8 sps:$4 sm:$0xff]  }
 0x8c2   : > { %3570 = vmatpush1.bf16.msra.mxu0 %v6118_v28  ;;  %v6205_v28 = vld [vmem:[%s7223_s23 + $0x74] ss:$8 sps:$4 sm:$0xff]  }
 0x8c3   : > { %3571 = vmatprep.subr.bf16.mxu0 %v6122_v56  ;;  %v6203_v56 = vld [vmem:[%s7223_s23 + $0x70] ss:$8 sps:$4 sm:$0xff]  }
 0x8c4   : > { %3875 = vmatpush1.bf16.msra.mxu1 %v6157_v7  ;;  %v6218_v7 = vld [vmem:[%s7223_s23 + $0xc0] ss:$8 sps:$4 sm:$0xff]  }
 0x8c5   : > { %3876 = vmatprep.subr.bf16.mxu1 %v6161_v29  ;;  %v6223_v29 = vld [vmem:[%s7223_s23 + $0xd4] ss:$8 sps:$4 sm:$0xff]  }
 0x8c6   : > { %3572 = vmatpush1.bf16.msra.mxu0 %v6124_v18  ;;  %v6209_v18 = vld [vmem:[%s7223_s23 + $0x90] ss:$8 sps:$4 sm:$0xff]  }
 0x8c7   : > { %3573 = vmatprep.subr.bf16.mxu0 %v6128_v41  ;;  %v6214_v41 = vld [vmem:[%s7223_s23 + $0xa4] ss:$8 sps:$4 sm:$0xff]  }
 0x8c8   : > { %3877 = vmatpush1.bf16.msra.mxu1 %v6163_v53  ;;  %v6224_v53 = vld [vmem:[%s7223_s23 + $0xe0] ss:$8 sps:$4 sm:$0xff]  }
 0x8c9   : > { %3878 = vmatprep.subr.bf16.mxu1 %v6164_v8  ;;  %v6229_v8 = vld [vmem:[%s7223_s23 + $0xf4] ss:$8 sps:$4 sm:$0xff]  }
 0x8ca   : > { %3574 = vmatpush1.bf16.msra.mxu0 %v6130_v11  ;;  %v6215_v11 = vld [vmem:[%s7223_s23 + $0xb0] ss:$8 sps:$4 sm:$0xff]  }
 0x8cb   : > { %3575 = vmatprep.subr.bf16.mxu0 %v6134_v4  ;;  %v6220_v4 = vld [vmem:[%s7223_s23 + $0xc4] ss:$8 sps:$4 sm:$0xff]  }
 0x8cc   : > { %3879 = vmatpush1.bf16.msra.mxu1 %v6166_v38 }
 0x8cd   : > { %3880 = vmatprep.subr.bf16.mxu1 %v6167_v57 }
 0x8ce   : > { %3576 = vmatpush1.bf16.msra.mxu0 %v6136_v36  ;;  %v6221_v36 = vld [vmem:[%s7223_s23 + $0xd0] ss:$8 sps:$4 sm:$0xff]  }
 0x8cf   : > { %3577 = vmatprep.subr.bf16.mxu0 %v6140_v32  ;;  %v6226_v32 = vld [vmem:[%s7223_s23 + $0xe4] ss:$8 sps:$4 sm:$0xff]  }
 0x8d0   : > { %3881 = vmatpush1.bf16.msra.mxu1 %v6169_v25 }
 0x8d1   : > { %3882 = vmatprep.subr.bf16.mxu1 %v6170_v61 }
 0x8d2   : > { %3578 = vmatpush1.bf16.msra.mxu0 %v6142_v0  ;;  %v6227_v0 = vld [vmem:[%s7223_s23 + $0xf0] ss:$8 sps:$4 sm:$0xff]  }
 0x8d3   : > { %3579 = vmatprep.subr.bf16.mxu0 %v6146_v50 }
 0x8d4   : > { %3883 = vmatpush1.bf16.msra.mxu1 %v6172_v30 }
 0x8d5   : > { %3884 = vmatprep.subr.bf16.mxu1 %v6173_v63 }
 0x8d6   : > { %3580 = vmatpush1.bf16.msra.mxu0 %v6148_v47 }
 0x8d7   : > { %3581 = vmatprep.subr.bf16.mxu0 %v6152_v43 }
 0x8d8   : > { %3885 = vmatpush1.bf16.msra.mxu1 %v6175_v35 }
 0x8d9   : > { %3886 = vmatprep.subr.bf16.mxu1 %v6176_v52 }
 0x8da   : > { %3582 = vmatpush1.bf16.msra.mxu0 %v6154_v51 }
 0x8db   : > { %3583 = vmatprep.subr.bf16.mxu0 %v6158_v14 }
 0x8dc   : > { %3887 = vmatpush1.bf16.msra.mxu1 %v6178_v21 }
 0x8dd   : > { %3888 = vmatprep.subr.bf16.mxu1 %v6179_v24 }
 0x8de   : > { %3584 = vmatpush1.bf16.msra.mxu0 %v6160_v10 }
 0x8df   : > { %4467 = vmatprep.subr.bf16.mxu0 %v6184_v19 }
 0x8e0   : > { %3889 = vmatpush1.bf16.msra.mxu1 %v6181_v37 }
 0x8e1   : > { %3586 = vmatmul.mubr.bf16.vlgmr.msra.gmra.mrb[0].mxu0 %v3345_v1  ;;  %5470 = vmatprep.subr.bf16.mxu1 %v6184_v19 }
 0x8e2   : > { %3595 = vmatprep.mubr.bf16.mxu0 %v3348_v26  ;;  %4468 = vmatpush1.bf16.msra.mxu0 %v6182_v31 }
 0x8e3   : > { %4469 = vmatprep.subr.bf16.mxu0 %v6187_v33  ;;  %3891 = vmatmul.mubr.bf16.vlgmr.msra.gmra.mrb[0].mxu1 %v3345_v1 }
 0x8e4   : > { %3900 = vmatprep.mubr.bf16.mxu1 %v3348_v26  ;;  %5486 = vmatpush1.bf16.msra.mxu1 %v6182_v31 }
 0x8e5   : > { %5471 = vmatprep.subr.bf16.mxu1 %v6187_v33 }
 0x8e6   : > { %4470 = vmatpush1.bf16.msra.mxu0 %v6185_v12 }
 0x8e7   : > { %4471 = vmatprep.subr.bf16.mxu0 %v6190_v15 }
 0x8e8   : > { %5487 = vmatpush1.bf16.msra.mxu1 %v6185_v12 }
 0x8e9   : > { %3596 = vmatmul.mubr.bf16.gmra.mrb[4].mxu0 %v3347_v3  ;;  %5472 = vmatprep.subr.bf16.mxu1 %v6190_v15 }
 0x8ea   : > { %3605 = vmatprep.mubr.bf16.mxu0 %v3350_v23  ;;  %4472 = vmatpush1.bf16.msra.mxu0 %v6188_v42 }
 0x8eb   : > { %4473 = vmatprep.subr.bf16.mxu0 %v6193_v34  ;;  %3901 = vmatmul.mubr.bf16.gmra.mrb[4].mxu1 %v3347_v3 }
 0x8ec   : > { %3910 = vmatprep.mubr.bf16.mxu1 %v3350_v23  ;;  %5488 = vmatpush1.bf16.msra.mxu1 %v6188_v42 }
 0x8ed   : > { %5473 = vmatprep.subr.bf16.mxu1 %v6193_v34 }
 0x8ee   : > { %4474 = vmatpush1.bf16.msra.mxu0 %v6191_v20 }
 0x8ef   : > { %4475 = vmatprep.subr.bf16.mxu0 %v6196_v62 }
 0x8f0   : > { %5489 = vmatpush1.bf16.msra.mxu1 %v6191_v20 }
 0x8f1   : > { %3606 = vmatmul.mubr.bf16.gmra.mrb[8].mxu0 %v3349_v9  ;;  %5474 = vmatprep.subr.bf16.mxu1 %v6196_v62 }
 0x8f2   : > { %3615 = vmatprep.mubr.bf16.mxu0 %v3352_v5  ;;  %4476 = vmatpush1.bf16.msra.mxu0 %v6194_v59 }
 0x8f3   : > { %4477 = vmatprep.subr.bf16.mxu0 %v6199_v22  ;;  %3911 = vmatmul.mubr.bf16.gmra.mrb[8].mxu1 %v3349_v9 }
 0x8f4   : > { %3920 = vmatprep.mubr.bf16.mxu1 %v3352_v5  ;;  %5490 = vmatpush1.bf16.msra.mxu1 %v6194_v59 }
 0x8f5   : > { %5475 = vmatprep.subr.bf16.mxu1 %v6199_v22 }
 0x8f6   : > { %4478 = vmatpush1.bf16.msra.mxu0 %v6197_v60 }
 0x8f7   : > { %4479 = vmatprep.subr.bf16.mxu0 %v6202_v27 }
 0x8f8   : > { %5491 = vmatpush1.bf16.msra.mxu1 %v6197_v60 }
 0x8f9   : > { %3616 = vmatmul.mubr.bf16.gmra.mrb[12].mxu0 %v3351_v2  ;;  %5476 = vmatprep.subr.bf16.mxu1 %v6202_v27 }
 0x8fa   : > { %3625 = vmatprep.mubr.bf16.mxu0 %v3354_v45  ;;  %4480 = vmatpush1.bf16.msra.mxu0 %v6200_v40 }
 0x8fb   : > { %3921 = vmatmul.mubr.bf16.gmra.mrb[12].mxu1 %v3351_v2  ;;  %4481 = vmatprep.subr.bf16.mxu0 %v6205_v28 }
 0x8fc   : > { %3930 = vmatprep.mubr.bf16.mxu1 %v3354_v45  ;;  %5492 = vmatpush1.bf16.msra.mxu1 %v6200_v40 }
 0x8fd   : > { %5477 = vmatprep.subr.bf16.mxu1 %v6205_v28 }
 0x8fe   : > { %4482 = vmatpush1.bf16.msra.mxu0 %v6203_v56 }
 0x8ff   : > { %4483 = vmatprep.subr.bf16.mxu0 %v6208_v55 }
 0x900   : > { %5493 = vmatpush1.bf16.msra.mxu1 %v6203_v56 }
 0x901   : > { %3626 = vmatmul.mubr.bf16.gmra.mrb[16].mxu0 %v3353_v16  ;;  %5478 = vmatprep.subr.bf16.mxu1 %v6208_v55 }
 0x902   : > { %3635 = vmatprep.mubr.bf16.mxu0 %v3356_v46  ;;  %4484 = vmatpush1.bf16.msra.mxu0 %v6206_v58 }
 0x903   : > { %3931 = vmatmul.mubr.bf16.gmra.mrb[16].mxu1 %v3353_v16  ;;  %4485 = vmatprep.subr.bf16.mxu0 %v6211_v49 }
 0x904   : > { %3940 = vmatprep.mubr.bf16.mxu1 %v3356_v46  ;;  %5494 = vmatpush1.bf16.msra.mxu1 %v6206_v58 }
 0x905   : > { %5479 = vmatprep.subr.bf16.mxu1 %v6211_v49 }
 0x906   : > { %4486 = vmatpush1.bf16.msra.mxu0 %v6209_v18 }
 0x907   : > { %4487 = vmatprep.subr.bf16.mxu0 %v6214_v41 }
 0x908   : > { %5495 = vmatpush1.bf16.msra.mxu1 %v6209_v18 }
 0x909   : > { %3636 = vmatmul.mubr.bf16.gmra.mrb[20].mxu0 %v3355_v13  ;;  %5480 = vmatprep.subr.bf16.mxu1 %v6214_v41 }
 0x90a   : > { %3645 = vmatprep.mubr.bf16.mxu0 %v3358_v39  ;;  %4488 = vmatpush1.bf16.msra.mxu0 %v6212_v44 }
 0x90b   : > { %3941 = vmatmul.mubr.bf16.gmra.mrb[20].mxu1 %v3355_v13  ;;  %4489 = vmatprep.subr.bf16.mxu0 %v6217_v54 }
 0x90c   : > { %3950 = vmatprep.mubr.bf16.mxu1 %v3358_v39  ;;  %5496 = vmatpush1.bf16.msra.mxu1 %v6212_v44 }
 0x90d   : > { %5481 = vmatprep.subr.bf16.mxu1 %v6217_v54 }
 0x90e   : > { %4490 = vmatpush1.bf16.msra.mxu0 %v6215_v11 }
 0x90f   : > { %4491 = vmatprep.subr.bf16.mxu0 %v6220_v4 }
 0x910   : > { %5497 = vmatpush1.bf16.msra.mxu1 %v6215_v11 }
 0x911   : > { %3646 = vmatmul.mubr.bf16.gmra.mrb[24].mxu0 %v3357_v17  ;;  %5482 = vmatprep.subr.bf16.mxu1 %v6220_v4 }
 0x912   : > { %3655 = vmatprep.mubr.bf16.mxu0 %v3360_v6  ;;  %4492 = vmatpush1.bf16.msra.mxu0 %v6218_v7 }
 0x913   : > { %3951 = vmatmul.mubr.bf16.gmra.mrb[24].mxu1 %v3357_v17  ;;  %4493 = vmatprep.subr.bf16.mxu0 %v6223_v29 }
 0x914   : > { %3960 = vmatprep.mubr.bf16.mxu1 %v3360_v6  ;;  %5498 = vmatpush1.bf16.msra.mxu1 %v6218_v7 }
 0x915   : > { %5483 = vmatprep.subr.bf16.mxu1 %v6223_v29 }
 0x916   : > { %4494 = vmatpush1.bf16.msra.mxu0 %v6221_v36 }
 0x917   : > { %4495 = vmatprep.subr.bf16.mxu0 %v6226_v32 }
 0x918   : > { %5499 = vmatpush1.bf16.msra.mxu1 %v6221_v36 }
 0x919   : > { %3656 = vmatmul.mubr.bf16.gmra.mrb[28].mxu0 %v3359_v48  ;;  %5484 = vmatprep.subr.bf16.mxu1 %v6226_v32 }
 0x91a   : > { %4496 = vmatpush1.bf16.msra.mxu0 %v6224_v53 }
 0x91b   : > { %3961 = vmatmul.mubr.bf16.gmra.mrb[28].mxu1 %v3359_v48  ;;  %4497 = vmatprep.subr.bf16.mxu0 %v6229_v8 }
 0x91c   : > { %5500 = vmatpush1.bf16.msra.mxu1 %v6224_v53 }
 0x91d   : > { %5485 = vmatprep.subr.bf16.mxu1 %v6229_v8 }
 0x91e   : > { %4498 = vmatpush1.bf16.msra.mxu0 %v6227_v0 }
 0x920   : > { %5501 = vmatpush1.bf16.msra.mxu1 %v6227_v0 }
 0x9b4   : > { %v8654_v50 = vpop.f32.mrb[0].mxu0 }
 0x9b5   : > { %v5202_v38 = vmul.f32 -1.442695, %v8654_v50  ;;  %v8657_v57 = vpop.f32.mrb[1].mxu0 }
 0x9b6   : > { %v5203_v47 = vmul.f32 -1.442695, %v8657_v57  ;;  %v8660_v43 = vpop.f32.mrb[2].mxu0  ;;  %v8674_v35 = vpop.f32.mrb[0].mxu1 }
 0x9b7   : > { %6230 = vpow2.f32 %v5202_v38  ;;  %v5204_v25 = vmul.f32 -1.442695, %v8660_v43  ;;  %v8663_v61 = vpop.f32.mrb[3].mxu0  ;;  %v8679_v31 = vpop.f32.mrb[1].mxu1 }
 0x9b8   : > { %6232 = vpow2.f32 %v5203_v47  ;;  %v5205_v51 = vmul.f32 -1.442695, %v8663_v61  ;;  %v8682_v33 = vpop.f32.mrb[2].mxu1 }
 0x9b9   : > { %6234 = vpow2.f32 %v5204_v25  ;;  %v8684_v24 = vpop.f32.mrb[3].mxu1 }
 0x9ba   : > { %6236 = vpow2.f32 %v5205_v51 }
 0x9bc   : > { %v8666_v14 = vpop.f32.mrb[4].mxu0 }
 0x9bd   : > { %v5206_v30 = vmul.f32 -1.442695, %v8666_v14  ;;  %v8669_v10 = vpop.f32.mrb[5].mxu0 }
 0x9be   : > { %v5207_v63 = vmul.f32 -1.442695, %v8669_v10  ;;  %v8672_v19 = vpop.f32.mrb[6].mxu0  ;;  %v8694_v22 = vpop.f32.mrb[4].mxu1 }
 0x9bf   : > { %6238 = vpow2.f32 %v5206_v30  ;;  %v5208_v52 = vmul.f32 -1.442695, %v8672_v19  ;;  %v8677_v1 = vpop.f32.mrb[7].mxu0  ;;  %v8699_v2 = vpop.f32.mrb[5].mxu1 }
 0x9c0   : > { %6240 = vpow2.f32 %v5207_v63  ;;  %v5209_v26 = vmul.f32 -1.442695, %v8677_v1  ;;  %v8702_v45 = vpop.f32.mrb[6].mxu1 }
 0x9c1   : > { %v6231_v21 = vpop.eup %6230  ;;  %6242 = vpow2.f32 %v5208_v52  ;;  %v8704_v46 = vpop.f32.mrb[7].mxu1 }
 0x9c2   : > { %v6233_v12 = vpop.eup %6232  ;;  %v4067_v15 = vadd.f32 1.0, %v6231_v21  ;;  %6244 = vpow2.f32 %v5209_v26 }
 0x9c3   : > { %v6235_v37 = vpop.eup %6234  ;;  %v4068_v3 = vadd.f32 1.0, %v6233_v12 }
 0x9c4   : > { %v6237_v42 = vpop.eup %6236  ;;  %6246 = vrcp.f32 %v4067_v15  ;;  %v4069_v23 = vadd.f32 1.0, %v6235_v37  ;;  %v8686_v34 = vpop.f32.mrb[8].mxu0 }
 0x9c5   : > { %6248 = vrcp.f32 %v4068_v3  ;;  %v4070_v20 = vadd.f32 1.0, %v6237_v42  ;;  %v5210_v62 = vmul.f32 -1.442695, %v8686_v34  ;;  %v8689_v9 = vpop.f32.mrb[9].mxu0 }
 0x9c6   : > { %6250 = vrcp.f32 %v4069_v23  ;;  %v5211_v59 = vmul.f32 -1.442695, %v8689_v9  ;;  %v8692_v5 = vpop.f32.mrb[10].mxu0  ;;  %v8714_v54 = vpop.f32.mrb[8].mxu1 }
 0x9c7   : > { %6252 = vrcp.f32 %v4070_v20  ;;  %v5212_v60 = vmul.f32 -1.442695, %v8692_v5  ;;  %v8697_v27 = vpop.f32.mrb[11].mxu0  ;;  %v8720_v36 = vpop.f32.mrb[9].mxu1 }
 0x9c8   : > { %6254 = vpow2.f32 %v5210_v62  ;;  %v5213_v40 = vmul.f32 -1.442695, %v8697_v27  ;;  %v8724_v0 = vpop.f32.mrb[10].mxu1 }
 0x9c9   : > { %v6239_v16 = vpop.eup %6238  ;;  %6256 = vpow2.f32 %v5211_v59  ;;  %v8728_v25 = vpop.f32.mrb[11].mxu1 }
 0x9ca   : > { %v6241_v13 = vpop.eup %6240  ;;  %v4071_v39 = vadd.f32 1.0, %v6239_v16  ;;  %6258 = vpow2.f32 %v5212_v60 }
 0x9cb   : > { %v6243_v17 = vpop.eup %6242  ;;  %v4072_v6 = vadd.f32 1.0, %v6241_v13  ;;  %6260 = vpow2.f32 %v5213_v40 }
 0x9cc   : > { %v6245_v48 = vpop.eup %6244  ;;  %6262 = vrcp.f32 %v4071_v39  ;;  %v4073_v28 = vadd.f32 1.0, %v6243_v17  ;;  %v8706_v56 = vpop.f32.mrb[12].mxu0 }
 0x9cd   : > { %6264 = vrcp.f32 %v4072_v6  ;;  %v4074_v55 = vadd.f32 1.0, %v6245_v48  ;;  %v5214_v58 = vmul.f32 -1.442695, %v8706_v56  ;;  %v8709_v49 = vpop.f32.mrb[13].mxu0 }
 0x9ce   : > { %v6247_v18 = vpop.eup %6246  ;;  %6266 = vrcp.f32 %v4073_v28  ;;  %v5215_v41 = vmul.f32 -1.442695, %v8709_v49  ;;  %v8712_v44 = vpop.f32.mrb[14].mxu0 }
 0x9cf   : > { %v6249_v11 = vpop.eup %6248  ;;  %v4163_v4 = vmul.f32 %v6247_v18, %v8654_v50  ;;  %6268 = vrcp.f32 %v4074_v55  ;;  %v5216_v7 = vmul.f32 -1.442695, %v8712_v44  ;;  %v8718_v29 = vpop.f32.mrb[15].mxu0 }
 0x9d0   : > { %v6251_v32 = vpop.eup %6250  ;;  %v4164_v53 = vmul.f32 %v6249_v11, %v8657_v57  ;;  %6270 = vpow2.f32 %v5214_v58  ;;  %v5217_v8 = vmul.f32 -1.442695, %v8718_v29  ;;  %v8742_v59 = vpop.f32.mrb[12].mxu1 }
 0x9d1   : > { %v6253_v38 = vpop.eup %6252  ;;  %v4165_v47 = vmul.f32 %v6251_v32, %v8660_v43  ;;  %6272 = vpow2.f32 %v5215_v41  ;;  %v4195_v50 = vmul.f32 %v4163_v4, %v8674_v35  ;;  %v8748_v13 = vpop.f32.mrb[13].mxu1 }
 0x9d2   : > { %v6255_v51 = vpop.eup %6254  ;;  %v4166_v30 = vmul.f32 %v6253_v38, %v8663_v61  ;;  %6274 = vpow2.f32 %v5216_v7  ;;  %v4196_v63 = vmul.f32 %v4164_v53, %v8679_v31  ;;  %v8752_v48 = vpop.f32.mrb[14].mxu1 }
 0x9d3   : > { %v6257_v57 = vpop.eup %6256  ;;  %v4075_v52 = vadd.f32 1.0, %v6255_v51  ;;  %6276 = vpow2.f32 %v5217_v8  ;;  %v4197_v26 = vmul.f32 %v4165_v47, %v8682_v33  ;;  %v8756_v58 = vpop.f32.mrb[15].mxu1 }
 0x9d4   : > { %v6259_v21 = vpop.eup %6258  ;;  %v4076_v12 = vadd.f32 1.0, %v6257_v57  ;;  %v4198_v43 = vmul.f32 %v4166_v30, %v8684_v24  ;;  %v8734_v15 = vpop.f32.mrb[16].mxu0 }
 0x9d5   : > { %v6261_v35 = vpop.eup %6260  ;;  %6278 = vrcp.f32 %v4075_v52  ;;  %v4077_v37 = vadd.f32 1.0, %v6259_v21  ;;  %v4227_v3 = vpack.c.bf16 %v4197_v26, %v4195_v50  ;;  %v5218_v61 = vmul.f32 -1.442695, %v8734_v15  ;;  %v8737_v42 = vpop.f32.mrb[17].mxu0 }
 0x9d6   : > { %v6263_v31 = vpop.eup %6262  ;;  %6280 = vrcp.f32 %v4076_v12  ;;  %v4078_v23 = vadd.f32 1.0, %v6261_v35  ;;  %v4228_v20 = vpack.c.bf16 %v4198_v43, %v4196_v63  ;;  %v5219_v33 = vmul.f32 -1.442695, %v8737_v42  ;;  %v8740_v62 = vpop.f32.mrb[18].mxu0 }
 0x9d7   : > { %v6265_v24 = vpop.eup %6264  ;;  %v4167_v60 = vmul.f32 %v6263_v31, %v8666_v14  ;;  %6282 = vrcp.f32 %v4077_v37  ;;  %v5220_v40 = vmul.f32 -1.442695, %v8740_v62  ;;  %v8746_v16 = vpop.f32.mrb[19].mxu0 }
 0x9d8   : > { %v6267_v39 = vpop.eup %6266  ;;  %v4168_v17 = vmul.f32 %v6265_v24, %v8669_v10  ;;  %6284 = vrcp.f32 %v4078_v23  ;;  %v5221_v6 = vmul.f32 -1.442695, %v8746_v16  ;;  %4499 = vmatprep.mubr.bf16.mxu0 %v4228_v20  ;;  %v8770_v63 = vpop.f32.mrb[16].mxu1 }
 0x9d9   : > { %v6269_v28 = vpop.eup %6268  ;;  %v4169_v55 = vmul.f32 %v6267_v39, %v8672_v19  ;;  %6286 = vpow2.f32 %v5218_v61  ;;  %v4199_v14 = vmul.f32 %v4167_v60, %v8694_v22  ;;  %4500 = vmatmul.mubr.bf16.vlgmr.msra.gmra.mrb[32].mxu0 %v4227_v3  ;;  %v8775_v26 = vpop.f32.mrb[17].mxu1 }
 0x9da   : > { %v6271_v18 = vpop.eup %6270  ;;  %v4170_v41 = vmul.f32 %v6269_v28, %v8677_v1  ;;  %6288 = vpow2.f32 %v5219_v33  ;;  %v4200_v10 = vmul.f32 %v4168_v17, %v8699_v2  ;;  %v8779_v35 = vpop.f32.mrb[18].mxu1 }
 0x9db   : > { %v6273_v11 = vpop.eup %6272  ;;  %v4079_v4 = vadd.f32 1.0, %v6271_v18  ;;  %6290 = vpow2.f32 %v5220_v40  ;;  %v4201_v7 = vmul.f32 %v4169_v55, %v8702_v45  ;;  %v8782_v61 = vpop.f32.mrb[19].mxu1 }
 0x9dc   : > { %v6275_v32 = vpop.eup %6274  ;;  %v4080_v53 = vadd.f32 1.0, %v6273_v11  ;;  %6292 = vpow2.f32 %v5221_v6  ;;  %v4202_v19 = vmul.f32 %v4170_v41, %v8704_v46  ;;  %v8762_v22 = vpop.f32.mrb[20].mxu0 }
 0x9dd   : > { %v6277_v8 = vpop.eup %6276  ;;  %6294 = vrcp.f32 %v4079_v4  ;;  %v4081_v38 = vadd.f32 1.0, %v6275_v32  ;;  %v4229_v47 = vpack.c.bf16 %v4201_v7, %v4199_v14  ;;  %v5222_v1 = vmul.f32 -1.442695, %v8762_v22  ;;  %v8765_v50 = vpop.f32.mrb[21].mxu0 }
 0x9de   : > { %6296 = vrcp.f32 %v4080_v53  ;;  %v4082_v2 = vadd.f32 1.0, %v6277_v8  ;;  %v4230_v51 = vpack.c.bf16 %v4202_v19, %v4200_v10  ;;  %v5223_v45 = vmul.f32 -1.442695, %v8765_v50  ;;  %v8768_v30 = vpop.f32.mrb[22].mxu0  ;;  %v8797_v18 = vpop.f32.mrb[20].mxu1 }
 0x9df   : > { %v6279_v46 = vpop.eup %6278  ;;  %6298 = vrcp.f32 %v4081_v38  ;;  %v5224_v57 = vmul.f32 -1.442695, %v8768_v30  ;;  %v8773_v52 = vpop.f32.mrb[23].mxu0 }
 0x9e0   : > { %v6281_v21 = vpop.eup %6280  ;;  %v4171_v12 = vmul.f32 %v6279_v46, %v8686_v34  ;;  %6300 = vrcp.f32 %v4082_v2  ;;  %v5225_v43 = vmul.f32 -1.442695, %v8773_v52  ;;  %4509 = vmatprep.mubr.bf16.mxu0 %v4230_v51 }
 0x9e1   : > { %v6283_v37 = vpop.eup %6282  ;;  %v4172_v3 = vmul.f32 %v6281_v21, %v8689_v9  ;;  %6302 = vpow2.f32 %v5222_v1  ;;  %4510 = vmatmul.mubr.bf16.gmra.mrb[36].mxu0 %v4229_v47 }
 0x9e2   : > { %v6285_v31 = vpop.eup %6284  ;;  %v4173_v23 = vmul.f32 %v6283_v37, %v8692_v5  ;;  %6304 = vpow2.f32 %v5223_v45  ;;  %v4203_v20 = vmul.f32 %v4171_v12, %v8714_v54 }
 0x9e3   : > { %v6287_v34 = vpop.eup %6286  ;;  %v4174_v33 = vmul.f32 %v6285_v31, %v8697_v27  ;;  %6306 = vpow2.f32 %v5224_v57  ;;  %v4204_v24 = vmul.f32 %v4172_v3, %v8720_v36 }
 0x9e4   : > { %v6289_v60 = vpop.eup %6288  ;;  %v4083_v40 = vadd.f32 1.0, %v6287_v34  ;;  %6308 = vpow2.f32 %v5225_v43  ;;  %v4205_v9 = vmul.f32 %v4173_v23, %v8724_v0  ;;  %v8789_v39 = vpop.f32.mrb[24].mxu0 }
 0x9e5   : > { %v6291_v17 = vpop.eup %6290  ;;  %v4084_v6 = vadd.f32 1.0, %v6289_v60  ;;  %v4206_v5 = vmul.f32 %v4174_v33, %v8728_v25  ;;  %v8792_v28 = vpop.f32.mrb[25].mxu0  ;;  %v5226_v14 = vmul.f32 -1.442695, %v8789_v39 }
 0x9e6   : > { %v6293_v54 = vpop.eup %6292  ;;  %6310 = vrcp.f32 %v4083_v40  ;;  %v4085_v55 = vadd.f32 1.0, %v6291_v17  ;;  %v4231_v27 = vpack.c.bf16 %v4205_v9, %v4203_v20  ;;  %v8795_v36 = vpop.f32.mrb[26].mxu0  ;;  %v5227_v11 = vmul.f32 -1.442695, %v8792_v28 }
 0x9e7   : > { %v6295_v41 = vpop.eup %6294  ;;  %6312 = vrcp.f32 %v4084_v6  ;;  %v4086_v0 = vadd.f32 1.0, %v6293_v54  ;;  %v4232_v10 = vpack.c.bf16 %v4206_v5, %v4204_v24  ;;  %v8800_v4 = vpop.f32.mrb[27].mxu0  ;;  %v5228_v53 = vmul.f32 -1.442695, %v8795_v36 }
 0x9e8   : > { %v8802_v25 = vpop.f32.mrb[21].mxu1  ;;  %v6297_v7 = vpop.eup %6296  ;;  %v4175_v32 = vmul.f32 %v6295_v41, %v8706_v56  ;;  %6314 = vrcp.f32 %v4085_v55  ;;  %v5229_v47 = vmul.f32 -1.442695, %v8800_v4 }
 0x9e9   : > { %v8806_v19 = vpop.f32.mrb[22].mxu1  ;;  %v6299_v8 = vpop.eup %6298  ;;  %v4176_v38 = vmul.f32 %v6297_v7, %v8709_v49  ;;  %6316 = vrcp.f32 %v4086_v0  ;;  %4519 = vmatprep.mubr.bf16.mxu0 %v4232_v10 }
 0x9ea   : > { %v8810_v1 = vpop.f32.mrb[23].mxu1  ;;  %v6301_v2 = vpop.eup %6300  ;;  %v4177_v51 = vmul.f32 %v6299_v8, %v8712_v44  ;;  %6318 = vpow2.f32 %v5226_v14  ;;  %v4207_v56 = vmul.f32 %v4175_v32, %v8742_v59  ;;  %4520 = vmatmul.mubr.bf16.gmra.mrb[40].mxu0 %v4231_v27 }
 0x9eb   : > { %v6303_v45 = vpop.eup %6302  ;;  %v4178_v46 = vmul.f32 %v6301_v2, %v8718_v29  ;;  %6320 = vpow2.f32 %v5227_v11  ;;  %v4208_v57 = vmul.f32 %v4176_v38, %v8748_v13  ;;  %v8825_v34 = vpop.f32.mrb[24].mxu1 }
 0x9ec   : > { %v6305_v49 = vpop.eup %6304  ;;  %v4087_v21 = vadd.f32 1.0, %v6303_v45  ;;  %6322 = vpow2.f32 %v5228_v53  ;;  %v4209_v12 = vmul.f32 %v4177_v51, %v8752_v48  ;;  %v8817_v43 = vpop.f32.mrb[28].mxu0 }
 0x9ed   : > { %v6307_v37 = vpop.eup %6306  ;;  %v4088_v3 = vadd.f32 1.0, %v6305_v49  ;;  %6324 = vpow2.f32 %v5229_v47  ;;  %v4210_v44 = vmul.f32 %v4178_v46, %v8756_v58  ;;  %v8820_v59 = vpop.f32.mrb[29].mxu0  ;;  %v5230_v13 = vmul.f32 -1.442695, %v8817_v43 }
 0x9ee   : > { %v6309_v31 = vpop.eup %6308  ;;  %6326 = vrcp.f32 %v4087_v21  ;;  %v4089_v29 = vadd.f32 1.0, %v6307_v37  ;;  %v4233_v23 = vpack.c.bf16 %v4209_v12, %v4207_v56  ;;  %v8823_v20 = vpop.f32.mrb[30].mxu0  ;;  %v5231_v24 = vmul.f32 -1.442695, %v8820_v59 }
 0x9ef   : > { %6328 = vrcp.f32 %v4088_v3  ;;  %v4090_v48 = vadd.f32 1.0, %v6309_v31  ;;  %v4234_v33 = vpack.c.bf16 %v4210_v44, %v4208_v57  ;;  %v8828_v60 = vpop.f32.mrb[31].mxu0  ;;  %v8830_v58 = vpop.f32.mrb[25].mxu1  ;;  %v5232_v9 = vmul.f32 -1.442695, %v8823_v20 }
 0x9f0   : > { %v6311_v40 = vpop.eup %6310  ;;  %6330 = vrcp.f32 %v4089_v29  ;;  %v8833_v17 = vpop.f32.mrb[26].mxu1  ;;  %v5233_v54 = vmul.f32 -1.442695, %v8828_v60 }
 0x9f1   : > { %v6313_v6 = vpop.eup %6312  ;;  %v4179_v5 = vmul.f32 %v6311_v40, %v8734_v15  ;;  %6332 = vrcp.f32 %v4090_v48  ;;  %4529 = vmatprep.mubr.bf16.mxu0 %v4234_v33  ;;  %v8837_v55 = vpop.f32.mrb[27].mxu1 }
 0x9f2   : > { %v6315_v27 = vpop.eup %6314  ;;  %v4180_v14 = vmul.f32 %v6313_v6, %v8737_v42  ;;  %6334 = vpow2.f32 %v5230_v13  ;;  %4530 = vmatmul.mubr.bf16.gmra.mrb[44].mxu0 %v4233_v23  ;;  %v8846_v2 = vpop.f32.mrb[28].mxu1 }
 0x9f3   : > { %v6317_v41 = vpop.eup %6316  ;;  %v4181_v0 = vmul.f32 %v6315_v27, %v8740_v62  ;;  %6336 = vpow2.f32 %v5231_v24  ;;  %v4211_v10 = vmul.f32 %v4179_v5, %v8770_v63  ;;  %v8848_v56 = vpop.f32.mrb[29].mxu1 }
 0x9f4   : > { %v6319_v11 = vpop.eup %6318  ;;  %v4182_v15 = vmul.f32 %v6317_v41, %v8746_v16  ;;  %6338 = vpow2.f32 %v5232_v9  ;;  %v4212_v7 = vmul.f32 %v4180_v14, %v8775_v26  ;;  %v3966_v46 = vpop.f32.mrb[30].mxu1 }
 0x9f5   : > { %v6321_v32 = vpop.eup %6320  ;;  %v4091_v53 = vadd.f32 1.0, %v6319_v11  ;;  %6340 = vpow2.f32 %v5233_v54  ;;  %v4213_v8 = vmul.f32 %v4181_v0, %v8779_v35  ;;  %v3968_v49 = vpop.f32.mrb[31].mxu1 }
 0x9f6   : > { %v6323_v42 = vpop.eup %6322  ;;  %v4092_v38 = vadd.f32 1.0, %v6321_v32  ;;  %v4214_v47 = vmul.f32 %v4182_v15, %v8782_v61 }
 0x9f7   : > { %v6325_v62 = vpop.eup %6324  ;;  %6342 = vrcp.f32 %v4091_v53  ;;  %v4093_v63 = vadd.f32 1.0, %v6323_v42  ;;  %v4235_v51 = vpack.c.bf16 %v4213_v8, %v4211_v10 }
 0x9f8   : > { %v6327_v16 = vpop.eup %6326  ;;  %6344 = vrcp.f32 %v4092_v38  ;;  %v4094_v26 = vadd.f32 1.0, %v6325_v62  ;;  %v4236_v45 = vpack.c.bf16 %v4214_v47, %v4212_v7  ;;  %v4244_v47 = vld [vmem:[#allocation4 + $0x8] sm:$0xff]  ;;  %v4245_v62 = vld [vmem:[#allocation4 + $0x10] sm:$0xff] }
 0x9f9   : > { %v6329_v57 = vpop.eup %6328  ;;  %v4183_v35 = vmul.f32 %v6327_v16, %v8762_v22  ;;  %6346 = vrcp.f32 %v4093_v63 }
 0x9fa   : > { %v6331_v21 = vpop.eup %6330  ;;  %v4184_v61 = vmul.f32 %v6329_v57, %v8765_v50  ;;  %6348 = vrcp.f32 %v4094_v26  ;;  %4539 = vmatprep.mubr.bf16.mxu1 %v4236_v45  ;;  %v4247_v45 = vld [vmem:[#allocation4 + $0x20] sm:$0xff] }
 0x9fb   : > { %v6333_v12 = vpop.eup %6332  ;;  %v4185_v37 = vmul.f32 %v6331_v21, %v8768_v30  ;;  %v4215_v3 = vmul.f32 %v4183_v35, %v8797_v18  ;;  %4540 = vmatmul.mubr.bf16.vlgmr.msra.gmra.mrb[32].mxu1 %v4235_v51  ;;  %v4249_v35 = vld [vmem:[#allocation4 + $0x30] sm:$0xff] }
 0x9fc   : > { %v6335_v44 = vpop.eup %6334  ;;  %v4186_v31 = vmul.f32 %v6333_v12, %v8773_v52  ;;  %v4216_v29 = vmul.f32 %v4184_v61, %v8802_v25  ;;  %v4250_v61 = vld [vmem:[#allocation4 + $0x38] sm:$0xff] }
 0x9fd   : > { %v6337_v23 = vpop.eup %6336  ;;  %v4095_v22 = vadd.f32 1.0, %v6335_v44  ;;  %v4217_v13 = vmul.f32 %v4185_v37, %v8806_v19 }
 0x9fe   : > { %v6339_v48 = vpop.eup %6338  ;;  %v4096_v33 = vadd.f32 1.0, %v6337_v23  ;;  %v4218_v50 = vmul.f32 %v4186_v31, %v8810_v1  ;;  %v4252_v23 = vld [vmem:[#allocation4 + $0x48] sm:$0xff] }
 0x9ff   : > { %v6341_v24 = vpop.eup %6340  ;;  %6350 = vrcp.f32 %v4095_v22  ;;  %v4097_v40 = vadd.f32 1.0, %v6339_v48  ;;  %v4237_v30 = vpack.c.bf16 %v4217_v13, %v4215_v3  ;;  %v4253_v13 = vld [vmem:[#allocation4 + $0x50] sm:$0xff] }
 0xa00   : > { %6352 = vrcp.f32 %v4096_v33  ;;  %v4098_v18 = vadd.f32 1.0, %v6341_v24  ;;  %v4238_v9 = vpack.c.bf16 %v4218_v50, %v4216_v29  ;;  %v4251_v29 = vld [vmem:[#allocation4 + $0x40] sm:$0xff]  ;;  %v4254_v50 = vld [vmem:[#allocation4 + $0x58] sm:$0xff] }
 0xa01   : > { %v6343_v6 = vpop.eup %6342  ;;  %6354 = vrcp.f32 %v4097_v40 }
 0xa02   : > { %v6345_v52 = vpop.eup %6344  ;;  %v4187_v25 = vmul.f32 %v6343_v6, %v8789_v39  ;;  %6356 = vrcp.f32 %v4098_v18  ;;  %4549 = vmatprep.mubr.bf16.mxu1 %v4238_v9  ;;  %v4255_v6 = vld [vmem:[#allocation4 + $0x60] sm:$0xff] }
 0xa03   : > { %v6347_v5 = vpop.eup %6346  ;;  %v4188_v19 = vmul.f32 %v6345_v52, %v8792_v28  ;;  %4550 = vmatmul.mubr.bf16.gmra.mrb[36].mxu1 %v4237_v30  ;;  %v4256_v52 = vld [vmem:[#allocation4 + $0x68] sm:$0xff] }
 0xa04   : > { %v6349_v54 = vpop.eup %6348  ;;  %v4189_v1 = vmul.f32 %v6347_v5, %v8795_v36  ;;  %v4219_v27 = vmul.f32 %v4187_v25, %v8825_v34  ;;  %v4257_v5 = vld [vmem:[#allocation4 + $0x70] sm:$0xff] }
 0xa05   : > { %v4190_v14 = vmul.f32 %v6349_v54, %v8800_v4  ;;  %v4220_v41 = vmul.f32 %v4188_v19, %v8830_v58 }
 0xa06   : > { %v4221_v0 = vmul.f32 %v4189_v1, %v8833_v17  ;;  %v4258_v1 = vld [vmem:[#allocation4 + $0x78] sm:$0xff] }
 0xa07   : > { %v4222_v10 = vmul.f32 %v4190_v14, %v8837_v55 }
 0xa08   : > { %v4239_v39 = vpack.c.bf16 %v4221_v0, %v4219_v27 }
 0xa09   : > { %v6351_v11 = vpop.eup %6350  ;;  %v4240_v15 = vpack.c.bf16 %v4222_v10, %v4220_v41 }
 0xa0a   : > { %v6353_v7 = vpop.eup %6352  ;;  %v4191_v28 = vmul.f32 %v6351_v11, %v8817_v43  ;;  %v4243_v43 = vld [vmem:[#allocation4] sm:$0xff]  ;;  %v4260_v11 = vld [vmem:[#allocation4 + $0x88] sm:$0xff] }
 0xa0b   : > { %v6355_v32 = vpop.eup %6354  ;;  %v4192_v53 = vmul.f32 %v6353_v7, %v8820_v59  ;;  %4559 = vmatprep.mubr.bf16.mxu1 %v4240_v15  ;;  %v4261_v7 = vld [vmem:[#allocation4 + $0x90] sm:$0xff] }
 0xa0c   : > { %v6357_v36 = vpop.eup %6356  ;;  %v4193_v34 = vmul.f32 %v6355_v32, %v8823_v20  ;;  %v4223_v4 = vmul.f32 %v4191_v28, %v8846_v2  ;;  %4560 = vmatmul.mubr.bf16.gmra.mrb[40].mxu1 %v4239_v39  ;;  %v4246_v20 = vld [vmem:[#allocation4 + $0x18] sm:$0xff]  ;;  %v4259_v39 = vld [vmem:[#allocation4 + $0x80] sm:$0xff] }
 0xa0d   : > { %v4194_v58 = vmul.f32 %v6357_v36, %v8828_v60  ;;  %v4224_v17 = vmul.f32 %v4192_v53, %v8848_v56  ;;  %v4262_v53 = vld [vmem:[#allocation4 + $0x98] sm:$0xff] }
 0xa0e   : > { %v4225_v55 = vmul.f32 %v4193_v34, %v3966_v46  ;;  %v4248_v46 = vld [vmem:[#allocation4 + $0x28] sm:$0xff] }
 0xa0f   : > { %v4226_v8 = vmul.f32 %v4194_v58, %v3968_v49 }
 0xa10   : > { %v4241_v42 = vpack.c.bf16 %v4225_v55, %v4223_v4  ;;  %v4263_v55 = vld [vmem:[#allocation4 + $0xa0] sm:$0xff] }
 0xa11   : > { %v4242_v38 = vpack.c.bf16 %v4226_v8, %v4224_v17  ;;  %v4264_v8 = vld [vmem:[#allocation4 + $0xa8] sm:$0xff] }
 0xa13   : > { %4569 = vmatprep.mubr.bf16.mxu1 %v4242_v38  ;;  %v4265_v38 = vld [vmem:[#allocation4 + $0xb0] sm:$0xff] }
 0xa14   : > { %4570 = vmatmul.mubr.bf16.gmra.mrb[44].mxu1 %v4241_v42 }
 0xaac   : > { %v4501_v59 = vpop.f32.mrb[32].mxu0 }
 0xaad   : > { %v4580_v63 = vadd.f32 %v4501_v59, %v4243_v43  ;;  %v4503_v51 = vpop.f32.mrb[33].mxu0  ;;  %v4266_v59 = vld [vmem:[#allocation4 + $0xb8] sm:$0xff] }
 0xaae   : > { %v4581_v16 = vadd.f32 %v4503_v51, %v4244_v47  ;;  %v4505_v2 = vpop.f32.mrb[34].mxu0 }
 0xaaf   : > { %4612 = vst [vmem:[#allocation4] sm:$0xff] %v4580_v63  ;;  %v4582_v26 = vadd.f32 %v4505_v2, %v4245_v62  ;;  %v4507_v60 = vpop.f32.mrb[35].mxu0  ;;  %v4267_v2 = vld [vmem:[#allocation4 + $0xc0] sm:$0xff] }
 0xab0   : > { %4613 = vst [vmem:[#allocation4 + $0x8] sm:$0xff] %v4581_v16  ;;  %v4583_v56 = vadd.f32 %v4507_v60, %v4246_v20 }
 0xab1   : > { %4614 = vst [vmem:[#allocation4 + $0x10] sm:$0xff] %v4582_v26  ;;  %v4268_v26 = vld [vmem:[#allocation4 + $0xc8] sm:$0xff] }
 0xab2   : > { %4615 = vst [vmem:[#allocation4 + $0x18] sm:$0xff] %v4583_v56  ;;  %v4269_v56 = vld [vmem:[#allocation4 + $0xd0] sm:$0xff] }
 0xab4   : > { %v4511_v57 = vpop.f32.mrb[36].mxu0 }
 0xab5   : > { %v4584_v49 = vadd.f32 %v4511_v57, %v4247_v45  ;;  %v4513_v21 = vpop.f32.mrb[37].mxu0  ;;  %v4270_v57 = vld [vmem:[#allocation4 + $0xd8] sm:$0xff] }
 0xab6   : > { %v4585_v12 = vadd.f32 %v4513_v21, %v4248_v46  ;;  %v4515_v37 = vpop.f32.mrb[38].mxu0 }
 0xab7   : > { %4616 = vst [vmem:[#allocation4 + $0x20] sm:$0xff] %v4584_v49  ;;  %v4586_v3 = vadd.f32 %v4515_v37, %v4249_v35  ;;  %v4517_v44 = vpop.f32.mrb[39].mxu0  ;;  %v4271_v37 = vld [vmem:[#allocation4 + $0xe0] sm:$0xff] }
 0xab8   : > { %4617 = vst [vmem:[#allocation4 + $0x28] sm:$0xff] %v4585_v12  ;;  %v4587_v31 = vadd.f32 %v4517_v44, %v4250_v61 }
 0xab9   : > { %4618 = vst [vmem:[#allocation4 + $0x30] sm:$0xff] %v4586_v3  ;;  %v4272_v3 = vld [vmem:[#allocation4 + $0xe8] sm:$0xff] }
 0xaba   : > { %4619 = vst [vmem:[#allocation4 + $0x38] sm:$0xff] %v4587_v31  ;;  %v4273_v31 = vld [vmem:[#allocation4 + $0xf0] sm:$0xff] }
 0xabd   : > { %v4521_v22 = vpop.f32.mrb[40].mxu0 }
 0xabe   : > { %v4588_v48 = vadd.f32 %v4521_v22, %v4251_v29  ;;  %v4523_v33 = vpop.f32.mrb[41].mxu0  ;;  %v4274_v22 = vld [vmem:[#allocation4 + $0xf8] sm:$0xff] }
 0xabf   : > { %v4589_v24 = vadd.f32 %v4523_v33, %v4252_v23  ;;  %v4525_v40 = vpop.f32.mrb[42].mxu0 }
 0xac0   : > { %4620 = vst [vmem:[#allocation4 + $0x40] sm:$0xff] %v4588_v48  ;;  %v4590_v30 = vadd.f32 %v4525_v40, %v4253_v13  ;;  %v4527_v18 = vpop.f32.mrb[43].mxu0  ;;  %v4648_v40 = vld [vmem:[#allocation2] sm:$0xff] (!%p5266_p5) }
 0xac1   : > { %4621 = vst [vmem:[#allocation4 + $0x48] sm:$0xff] %v4589_v24  ;;  %v4591_v9 = vadd.f32 %v4527_v18, %v4254_v50  ;;  %v4649_v18 = vld [vmem:[#allocation2 + $0x8] sm:$0xff] (!%p5266_p5) }
 0xac2   : > { %4622 = vst [vmem:[#allocation4 + $0x50] sm:$0xff] %v4590_v30  ;;  %v4680_v30 = vld [vmem:[#allocation4] sm:$0xff] (!%p5266_p5) }
 0xac3   : > { %4623 = vst [vmem:[#allocation4 + $0x58] sm:$0xff] %v4591_v9  ;;  %v4712_v9 = vadd.f32 (!%p5266_p5), %v4680_v30, %v4648_v40  ;;  %v4670_v30 = vld [vmem:[#allocation2 + $0xb0] sm:$0xff] (!%p5266_p5) }
 0xac5   : > { %v4531_v25 = vpop.f32.mrb[44].mxu0  ;;  %4744 = vst [vmem:[%s7237_s17] sm:$0xff] (!%p5266_p5), %v4712_v9 }
 0xac6   : > { %v4592_v19 = vadd.f32 %v4531_v25, %v4255_v6  ;;  %v4533_v54 = vpop.f32.mrb[45].mxu0  ;;  %v4681_v6 = vld [vmem:[#allocation4 + $0x8] sm:$0xff] (!%p5266_p5)  ;;  %v4682_v25 = vld [vmem:[#allocation4 + $0x10] sm:$0xff] (!%p5266_p5) }
 0xac7   : > { %v4593_v27 = vadd.f32 %v4533_v54, %v4256_v52  ;;  %v4535_v14 = vpop.f32.mrb[46].mxu0  ;;  %v4650_v52 = vld [vmem:[#allocation2 + $0x10] sm:$0xff] (!%p5266_p5)  ;;  %v4651_v54 = vld [vmem:[#allocation2 + $0x18] sm:$0xff] (!%p5266_p5) }
 0xac8   : > { %4624 = vst [vmem:[#allocation4 + $0x60] sm:$0xff] %v4592_v19  ;;  %v4594_v41 = vadd.f32 %v4535_v14, %v4257_v5  ;;  %v4537_v0 = vpop.f32.mrb[47].mxu0  ;;  %v4713_v5 = vadd.f32 (!%p5266_p5), %v4681_v6, %v4649_v18  ;;  %v4714_v19 = vadd.f32 (!%p5266_p5), %v4682_v25, %v4650_v52  ;;  %v4671_v6 = vld [vmem:[#allocation2 + $0xb8] sm:$0xff] (!%p5266_p5) }
 0xac9   : > { %4625 = vst [vmem:[#allocation4 + $0x68] sm:$0xff] %v4593_v27  ;;  %v4595_v10 = vadd.f32 %v4537_v0, %v4258_v1  ;;  %v4683_v1 = vld [vmem:[#allocation4 + $0x18] sm:$0xff] (!%p5266_p5)  ;;  %v4652_v27 = vld [vmem:[#allocation2 + $0x20] sm:$0xff] (!%p5266_p5)  ;;  %v4653_v0 = vld [vmem:[#allocation2 + $0x28] sm:$0xff] (!%p5266_p5) }
 0xaca   : > { %4626 = vst [vmem:[#allocation4 + $0x70] sm:$0xff] %v4594_v41  ;;  %v4715_v14 = vadd.f32 (!%p5266_p5), %v4683_v1, %v4651_v54  ;;  %v4684_v41 = vld [vmem:[#allocation4 + $0x20] sm:$0xff] (!%p5266_p5)  ;;  %4745 = vst [vmem:[%s7237_s17 + $0x8] sm:$0xff] (!%p5266_p5), %v4713_v5  ;;  %v4673_v1 = vld [vmem:[#allocation2 + $0xc8] sm:$0xff] (!%p5266_p5) }
 0xacb   : > { %4627 = vst [vmem:[#allocation4 + $0x78] sm:$0xff] %v4595_v10  ;;  %v4685_v10 = vld [vmem:[#allocation4 + $0x28] sm:$0xff] (!%p5266_p5)  ;;  %4746 = vst [vmem:[%s7237_s17 + $0x10] sm:$0xff] (!%p5266_p5), %v4714_v19  ;;  %v4672_v19 = vld [vmem:[#allocation2 + $0xc0] sm:$0xff] (!%p5266_p5) }
 0xacc   : > { %4747 = vst [vmem:[%s7237_s17 + $0x18] sm:$0xff] (!%p5266_p5), %v4715_v14 }
 0xace   : > { %v4541_v15 = vpop.f32.mrb[32].mxu1 }
 0xacf   : > { %v4596_v28 = vadd.f32 %v4541_v15, %v4259_v39  ;;  %v4543_v32 = vpop.f32.mrb[33].mxu1  ;;  %v4716_v39 = vadd.f32 (!%p5266_p5), %v4684_v41, %v4652_v27  ;;  %v4654_v15 = vld [vmem:[#allocation2 + $0x30] sm:$0xff] (!%p5266_p5) }
 0xad0   : > { %v4597_v36 = vadd.f32 %v4543_v32, %v4260_v11  ;;  %v4545_v34 = vpop.f32.mrb[34].mxu1  ;;  %v4717_v11 = vadd.f32 (!%p5266_p5), %v4685_v10, %v4653_v0  ;;  %v4674_v41 = vld [vmem:[#allocation2 + $0xd0] sm:$0xff] (!%p5266_p5) }
 0xad1   : > { %4628 = vst [vmem:[#allocation4 + $0x80] sm:$0xff] %v4596_v28  ;;  %v4598_v4 = vadd.f32 %v4545_v34, %v4261_v7  ;;  %v4547_v58 = vpop.f32.mrb[35].mxu1  ;;  %v4686_v7 = vld [vmem:[#allocation4 + $0x30] sm:$0xff] (!%p5266_p5)  ;;  %v4655_v28 = vld [vmem:[#allocation2 + $0x38] sm:$0xff] (!%p5266_p5)  ;;  %v4688_v34 = vld [vmem:[#allocation4 + $0x40] sm:$0xff] (!%p5266_p5) }
 0xad2   : > { %4629 = vst [vmem:[#allocation4 + $0x88] sm:$0xff] %v4597_v36  ;;  %v4599_v17 = vadd.f32 %v4547_v58, %v4262_v53  ;;  %v4718_v32 = vadd.f32 (!%p5266_p5), %v4686_v7, %v4654_v15  ;;  %v4687_v53 = vld [vmem:[#allocation4 + $0x38] sm:$0xff] (!%p5266_p5)  ;;  %v4656_v36 = vld [vmem:[#allocation2 + $0x40] sm:$0xff] (!%p5266_p5)  ;;  %4748 = vst [vmem:[%s7237_s17 + $0x20] sm:$0xff] (!%p5266_p5), %v4716_v39 }
 0xad3   : > { %4630 = vst [vmem:[#allocation4 + $0x90] sm:$0xff] %v4598_v4  ;;  %4749 = vst [vmem:[%s7237_s17 + $0x28] sm:$0xff] (!%p5266_p5), %v4717_v11  ;;  %v4719_v4 = vadd.f32 (!%p5266_p5), %v4687_v53, %v4655_v28  ;;  %v4720_v58 = vadd.f32 (!%p5266_p5), %v4688_v34, %v4656_v36  ;;  %v4675_v11 = vld [vmem:[#allocation2 + $0xd8] sm:$0xff] (!%p5266_p5)  ;;  %v4676_v7 = vld [vmem:[#allocation2 + $0xe0] sm:$0xff] (!%p5266_p5) }
 0xad4   : > { %4631 = vst [vmem:[#allocation4 + $0x98] sm:$0xff] %v4599_v17  ;;  %v4657_v17 = vld [vmem:[#allocation2 + $0x48] sm:$0xff] (!%p5266_p5)  ;;  %4750 = vst [vmem:[%s7237_s17 + $0x30] sm:$0xff] (!%p5266_p5), %v4718_v32 }
 0xad5   : > { %4751 = vst [vmem:[%s7237_s17 + $0x38] sm:$0xff] (!%p5266_p5), %v4719_v4  ;;  %4752 = vst [vmem:[%s7237_s17 + $0x40] sm:$0xff] (!%p5266_p5), %v4720_v58  ;;  %v4677_v53 = vld [vmem:[#allocation2 + $0xe8] sm:$0xff] (!%p5266_p5)  ;;  %v4678_v58 = vld [vmem:[#allocation2 + $0xf0] sm:$0xff] (!%p5266_p5) }
 0xad6   : > { %v4551_v42 = vpop.f32.mrb[36].mxu1 }
 0xad7   : > { %v4600_v43 = vadd.f32 %v4551_v42, %v4263_v55  ;;  %v4553_v47 = vpop.f32.mrb[37].mxu1  ;;  %v4689_v55 = vld [vmem:[#allocation4 + $0x48] sm:$0xff] (!%p5266_p5) }
 0xad8   : > { %v4601_v62 = vadd.f32 %v4553_v47, %v4264_v8  ;;  %v4555_v63 = vpop.f32.mrb[38].mxu1  ;;  %v4658_v8 = vld [vmem:[#allocation2 + $0x50] sm:$0xff] (!%p5266_p5)  ;;  %v4721_v42 = vadd.f32 (!%p5266_p5), %v4689_v55, %v4657_v17  ;;  %v4691_v47 = vld [vmem:[#allocation4 + $0x58] sm:$0xff] (!%p5266_p5) }
 0xad9   : > { %4632 = vst [vmem:[#allocation4 + $0xa0] sm:$0xff] %v4600_v43  ;;  %v4602_v51 = vadd.f32 %v4555_v63, %v4265_v38  ;;  %v4557_v20 = vpop.f32.mrb[39].mxu1  ;;  %v4690_v38 = vld [vmem:[#allocation4 + $0x50] sm:$0xff] (!%p5266_p5)  ;;  %v4659_v43 = vld [vmem:[#allocation2 + $0x58] sm:$0xff] (!%p5266_p5)  ;;  %v4660_v63 = vld [vmem:[#allocation2 + $0x60] sm:$0xff] (!%p5266_p5) }
 0xada   : > { %4633 = vst [vmem:[#allocation4 + $0xa8] sm:$0xff] %v4601_v62  ;;  %v4603_v16 = vadd.f32 %v4557_v20, %v4266_v59  ;;  %v4722_v59 = vadd.f32 (!%p5266_p5), %v4690_v38, %v4658_v8  ;;  %v4723_v62 = vadd.f32 (!%p5266_p5), %v4691_v47, %v4659_v43  ;;  %v4661_v20 = vld [vmem:[#allocation2 + $0x68] sm:$0xff] (!%p5266_p5)  ;;  %4753 = vst [vmem:[%s7237_s17 + $0x48] sm:$0xff] (!%p5266_p5), %v4721_v42  ;;  %v4679_v55 = vld [vmem:[#allocation2 + $0xf8] sm:$0xff] (!%p5266_p5) }
 0xadb   : > { %4634 = vst [vmem:[#allocation4 + $0xb0] sm:$0xff] %v4602_v51  ;;  %v4692_v51 = vld [vmem:[#allocation4 + $0x60] sm:$0xff] (!%p5266_p5) }
 0xadc   : > { %4635 = vst [vmem:[#allocation4 + $0xb8] sm:$0xff] %v4603_v16  ;;  %v4724_v16 = vadd.f32 (!%p5266_p5), %v4692_v51, %v4660_v63  ;;  %4754 = vst [vmem:[%s7237_s17 + $0x50] sm:$0xff] (!%p5266_p5), %v4722_v59 }
 0xadd   : > { %4755 = vst [vmem:[%s7237_s17 + $0x58] sm:$0xff] (!%p5266_p5), %v4723_v62 }
 0xade   : > { %4756 = vst [vmem:[%s7237_s17 + $0x60] sm:$0xff] (!%p5266_p5), %v4724_v16 }
 0xadf   : > { %v4561_v60 = vpop.f32.mrb[40].mxu1 }
 0xae0   : > { %v4604_v45 = vadd.f32 %v4561_v60, %v4267_v2  ;;  %v4563_v46 = vpop.f32.mrb[41].mxu1  ;;  %v4693_v2 = vld [vmem:[#allocation4 + $0x68] sm:$0xff] (!%p5266_p5)  ;;  %v4694_v60 = vld [vmem:[#allocation4 + $0x70] sm:$0xff] (!%p5266_p5) }
 0xae1   : > { %v4605_v35 = vadd.f32 %v4563_v46, %v4268_v26  ;;  %v4565_v49 = vpop.f32.mrb[42].mxu1  ;;  %v4662_v26 = vld [vmem:[#allocation2 + $0x70] sm:$0xff] (!%p5266_p5)  ;;  %v4663_v46 = vld [vmem:[#allocation2 + $0x78] sm:$0xff] (!%p5266_p5)  ;;  %v4701_v40 = vld [vmem:[#allocation4 + $0xa8] sm:$0xff] (!%p5266_p5) }
 0xae2   : > { %4636 = vst [vmem:[#allocation4 + $0xc0] sm:$0xff] %v4604_v45  ;;  %v4606_v21 = vadd.f32 %v4565_v49, %v4269_v56  ;;  %v4567_v61 = vpop.f32.mrb[43].mxu1  ;;  %v4725_v56 = vadd.f32 (!%p5266_p5), %v4693_v2, %v4661_v20  ;;  %v4726_v45 = vadd.f32 (!%p5266_p5), %v4694_v60, %v4662_v26  ;;  %v4702_v9 = vld [vmem:[#allocation4 + $0xb0] sm:$0xff] (!%p5266_p5) }
 0xae3   : > { %4637 = vst [vmem:[#allocation4 + $0xc8] sm:$0xff] %v4605_v35  ;;  %v4607_v12 = vadd.f32 %v4567_v61, %v4270_v57  ;;  %v4695_v57 = vld [vmem:[#allocation4 + $0x78] sm:$0xff] (!%p5266_p5)  ;;  %v4664_v35 = vld [vmem:[#allocation2 + $0x80] sm:$0xff] (!%p5266_p5)  ;;  %v4665_v61 = vld [vmem:[#allocation2 + $0x88] sm:$0xff] (!%p5266_p5)  ;;  %v4734_v25 = vadd.f32 (!%p5266_p5), %v4702_v9, %v4670_v30 }
 0xae4   : > { %4638 = vst [vmem:[#allocation4 + $0xd0] sm:$0xff] %v4606_v21  ;;  %v4727_v49 = vadd.f32 (!%p5266_p5), %v4695_v57, %v4663_v46  ;;  %v4696_v21 = vld [vmem:[#allocation4 + $0x80] sm:$0xff] (!%p5266_p5)  ;;  %4757 = vst [vmem:[%s7237_s17 + $0x68] sm:$0xff] (!%p5266_p5), %v4725_v56  ;;  %v4703_v52 = vld [vmem:[#allocation4 + $0xb8] sm:$0xff] (!%p5266_p5) }
 0xae5   : > { %4639 = vst [vmem:[#allocation4 + $0xd8] sm:$0xff] %v4607_v12  ;;  %v4697_v12 = vld [vmem:[#allocation4 + $0x88] sm:$0xff] (!%p5266_p5)  ;;  %4758 = vst [vmem:[%s7237_s17 + $0x70] sm:$0xff] (!%p5266_p5), %v4726_v45  ;;  %v4735_v5 = vadd.f32 (!%p5266_p5), %v4703_v52, %v4671_v6 }
 0xae6   : > { %4759 = vst [vmem:[%s7237_s17 + $0x78] sm:$0xff] (!%p5266_p5), %v4727_v49  ;;  %4766 = vst [vmem:[%s7237_s17 + $0xb0] sm:$0xff] (!%p5266_p5), %v4734_v25 }
 0xae7   : > { %v4571_v44 = vpop.f32.mrb[44].mxu1  ;;  %4647 = sbr.rel (%p5266_p5) target bundleno = 2808 (0xaf8), region = 92  ;;  %4767 = vst [vmem:[%s7237_s17 + $0xb8] sm:$0xff] (!%p5266_p5), %v4735_v5 }
 0xae8   : > { %v4608_v29 = vadd.f32 %v4571_v44, %v4271_v37  ;;  %v4573_v23 = vpop.f32.mrb[45].mxu1  ;;  %v4728_v37 = vadd.f32 (!%p5266_p5), %v4696_v21, %v4664_v35  ;;  %v4666_v44 = vld [vmem:[#allocation2 + $0x90] sm:$0xff] (!%p5266_p5) }
 0xae9   : > { %v4609_v13 = vadd.f32 %v4573_v23, %v4272_v3  ;;  %v4575_v48 = vpop.f32.mrb[46].mxu1  ;;  %v4729_v3 = vadd.f32 (!%p5266_p5), %v4697_v12, %v4665_v61  ;;  %v4704_v54 = vld [vmem:[#allocation4 + $0xc0] sm:$0xff] (!%p5266_p5) }
 0xaea   : > { %4640 = vst [vmem:[#allocation4 + $0xe0] sm:$0xff] %v4608_v29  ;;  %v4610_v33 = vadd.f32 %v4575_v48, %v4273_v31  ;;  %v4577_v50 = vpop.f32.mrb[47].mxu1  ;;  %v4698_v31 = vld [vmem:[#allocation4 + $0x90] sm:$0xff] (!%p5266_p5)  ;;  %v4667_v29 = vld [vmem:[#allocation2 + $0x98] sm:$0xff] (!%p5266_p5)  ;;  %v4700_v48 = vld [vmem:[#allocation4 + $0xa0] sm:$0xff] (!%p5266_p5)  ;;  %v4736_v27 = vadd.f32 (!%p5266_p5), %v4704_v54, %v4672_v19 }
 0xaeb   : > { %4641 = vst [vmem:[#allocation4 + $0xe8] sm:$0xff] %v4609_v13  ;;  %v4611_v24 = vadd.f32 %v4577_v50, %v4274_v22  ;;  %v4730_v23 = vadd.f32 (!%p5266_p5), %v4698_v31, %v4666_v44  ;;  %v4699_v22 = vld [vmem:[#allocation4 + $0x98] sm:$0xff] (!%p5266_p5)  ;;  %v4668_v13 = vld [vmem:[#allocation2 + $0xa0] sm:$0xff] (!%p5266_p5)  ;;  %4760 = vst [vmem:[%s7237_s17 + $0x80] sm:$0xff] (!%p5266_p5), %v4728_v37 }
 0xaec   : > { %4642 = vst [vmem:[#allocation4 + $0xf0] sm:$0xff] %v4610_v33  ;;  %4761 = vst [vmem:[%s7237_s17 + $0x88] sm:$0xff] (!%p5266_p5), %v4729_v3  ;;  %v4731_v33 = vadd.f32 (!%p5266_p5), %v4699_v22, %v4667_v29  ;;  %v4732_v50 = vadd.f32 (!%p5266_p5), %v4700_v48, %v4668_v13  ;;  %v4705_v14 = vld [vmem:[#allocation4 + $0xc8] sm:$0xff] (!%p5266_p5)  ;;  %v4706_v0 = vld [vmem:[#allocation4 + $0xd0] sm:$0xff] (!%p5266_p5) }
 0xaed   : > { %4643 = vst [vmem:[#allocation4 + $0xf8] sm:$0xff] %v4611_v24  ;;  %v4669_v24 = vld [vmem:[#allocation2 + $0xa8] sm:$0xff] (!%p5266_p5)  ;;  %4762 = vst [vmem:[%s7237_s17 + $0x90] sm:$0xff] (!%p5266_p5), %v4730_v23  ;;  %v4737_v10 = vadd.f32 (!%p5266_p5), %v4705_v14, %v4673_v1  ;;  %v4738_v39 = vadd.f32 (!%p5266_p5), %v4706_v0, %v4674_v41  ;;  %v4707_v15 = vld [vmem:[#allocation4 + $0xd8] sm:$0xff] (!%p5266_p5) }
 0xaee   : > { %v4733_v18 = vadd.f32 %v4701_v40, %v4669_v24  ;;  %4763 = vst [vmem:[%s7237_s17 + $0x98] sm:$0xff] %v4731_v33  ;;  %4764 = vst [vmem:[%s7237_s17 + $0xa0] sm:$0xff] %v4732_v50  ;;  %v4739_v28 = vadd.f32 %v4707_v15, %v4675_v11 }
 0xaef   : > { %4768 = vst [vmem:[%s7237_s17 + $0xc0] sm:$0xff] %v4736_v27  ;;  %4769 = vst [vmem:[%s7237_s17 + $0xc8] sm:$0xff] %v4737_v10 }
 0xaf0   : > { %4765 = vst [vmem:[%s7237_s17 + $0xa8] sm:$0xff] %v4733_v18  ;;  %4770 = vst [vmem:[%s7237_s17 + $0xd0] sm:$0xff] %v4738_v39 }
 0xaf1   : > { %v4708_v32 = vld [vmem:[#allocation4 + $0xe0] sm:$0xff]  ;;  %4771 = vst [vmem:[%s7237_s17 + $0xd8] sm:$0xff] %v4739_v28 }
 0xaf2   : > { %v4709_v36 = vld [vmem:[#allocation4 + $0xe8] sm:$0xff]  ;;  %v4740_v34 = vadd.f32 %v4708_v32, %v4676_v7 }
 0xaf3   : > { %v4741_v4 = vadd.f32 %v4709_v36, %v4677_v53  ;;  %v4710_v17 = vld [vmem:[#allocation4 + $0xf0] sm:$0xff] }
 0xaf4   : > { %v4742_v8 = vadd.f32 %v4710_v17, %v4678_v58  ;;  %v4711_v42 = vld [vmem:[#allocation4 + $0xf8] sm:$0xff]  ;;  %4772 = vst [vmem:[%s7237_s17 + $0xe0] sm:$0xff] %v4740_v34 }
 0xaf5   : > { %4773 = vst [vmem:[%s7237_s17 + $0xe8] sm:$0xff] %v4741_v4  ;;  %v4743_v38 = vadd.f32 %v4711_v42, %v4679_v55 }
 0xaf6   : > { %4774 = vst [vmem:[%s7237_s17 + $0xf0] sm:$0xff] %v4742_v8 }
 0xaf7   : > { %4775 = vst [vmem:[%s7237_s17 + $0xf8] sm:$0xff] %v4743_v38 }
 0xaf8 PF: > { %s9213_s22 = sld [smem:[#allocation30_spill]]  ;;  %s9214_s2 = sld [smem:[#allocation86_spill]] }
 0xaf9   : > { %s4790_s24 = sshll.u32 %s7237_s17, 4  ;;  %s4777_s26 = scalar_lea.sflag [#allocation7], %s7199_s28  ;;  %s8912_s24 = int_to_ptr.vmem [resolvable:$true] %s4790_s24 }
 0xafa   : > { %s6590_s0 = scalar_lea.vmem %s8912_s24, 4096  ;;  %p9215_p12 = scmp.ne.s32.totalorder %s9104_s12, 0 }
 0xafb   : > { %p6591_p0 = scmp.ne.s32.totalorder %s8912_s24, %s6590_s0  ;;  %s6750_s3 = smov [#allocation19]  }
 0xafc   : > { %s6594_s8 = sshll.u32 %s6750_s3, 4  ;;  %s6595_s8 = int_to_ptr.vmem [resolvable:$false] %s6594_s8 }
 0xafd   : > { %p6592_p6 = pnand %p6591_p0, %p9215_p12  ;;  %s6596_s4 = scalar_lea.vmem %s6595_s8, 8192 }
 0xafe   : > { %s5277_s6 = sshll.u32 %s9213_s22, 12  ;;  %p6597_p8 = scmp.lt.s32.totalorder %s8912_s24, %s6595_s8 }
 0xaff   : > { %s8909_s1 = scalar_lea.hbm %s9214_s2, %s5277_s6  ;;  %p6593_p3 = pneg %p6592_p6 }
 0xb00   : > { %p6598_p2 = scmp.lt.s32.totalorder %s6596_s4, %s6590_s0 }
 0xb02   : > { %p6599_p10 = por %p6598_p2, %p6597_p8 }
 0xb04   : > { %p6600_p4 = pnand %p6599_p10, %p6593_p3 }
 0xb06   : > { %6603 = shalt.err (!%p6600_p4)
}
 0xb07   : > { %s6604_s27 = scalar_lea.hbm %s8909_s1, 4096  ;;  %s6608_s23 = scalar_lea.hbm %s9214_s2, 8192 }
 0xb08   : > { %p6605_p9 = scmp.ne.s32.totalorder %s8909_s1, %s6604_s27  ;;  %p6609_p11 = scmp.lt.u32.totalorder %s8909_s1, %s9214_s2 }
 0xb09   : > { %p6610_p7 = scmp.lt.u32.totalorder %s6608_s23, %s6604_s27  ;;  %p6612_p0 = scmp.lt.u32.totalorder %s6604_s27, %s8909_s1 }
 0xb0a   : > { %p6606_p13 = pnand %p6605_p9, %p9215_p12 }
 0xb0b   : > { %p6611_p5 = por %p6610_p7, %p6609_p11 }
 0xb0c   : > { %p6607_p1 = pneg %p6606_p13 }
 0xb0d   : > { %p6613_p6 = por %p6612_p0, %p6611_p5 }
 0xb0f   : > { %p6614_p3 = pnand %p6613_p6, %p6607_p1 }
 0xb11   : > { %6617 = shalt.err (!%p6614_p3)
}
 0xb12   : > { %s6751_s16 = smov 256   ;;  %s6752_s13 = smov 16  }
 0xb13   : > { %5526 = dma.vmem_to_hbm [thread:$0]  (%p9215_p12), %s8912_s24, 4096, %s8909_s1, %s4777_s26, %s6751_s16, %s6751_s16, %s6752_s13  }
 0xb14 PF: > { %p5567_p8 = scmp.ge.s32.totalorder %s6732_s15, 2  ;;  %s4805_s22 = sand.u32 1, %s6704_s30  }
 0xb15   : > { %p9216_p2 = scmp.ne.s32.totalorder %s9105_s29, 0  ;;  %s4806_s6 = scalar_lea.sflag [#allocation7], %s4805_s22 }
 0xb17   : > { %p5555_p10 = pnand %p5567_p8, %p9216_p2 }
 0xb19   : > { %6687 = dma.done.wait (!%p5555_p10), %s4806_s6, 4096  }
 0xb1a   : > { %6689 = vsyncadd (!%p5555_p10), %s4806_s6, 4294963200  ;;  %s32_s15 = sadd.s32 1, %s6732_s15   ;;  %s9217_s27 = sld [smem:[#allocation27_spill]] }
 0xb1b   : > { %p29_p4 = scmp.ge.s32.totalorder %s32_s15, 6   ;;  %s9218_s28 = sld [smem:[#allocation28_spill]] }
 0xb1c   : > { %s9219_s29 = sld [smem:[#allocation35_spill]]  ;;  %s9220_s11 = sld [smem:[#allocation31_spill]] }
 0xb1d   : > { %s9221_s13 = sld [smem:[#allocation34_spill]]  ;;  %s9222_s30 = smov %s6708_s9 }
 0xb1e   : > { %s9223_s9 = smov %s6712_s10  ;;  %s9224_s10 = smov %s7083_s5 }
 0xb1f   : > { %s9225_s12 = smov %s6728_s14  ;;  %s9226_s14 = smov %s9232_s19 }
 0xb20   :  { %31 = sbr.rel (!%p29_p4) target bundleno = 25 (0x19), region = 158 }
 0xb27   :  { %4811 = vsyncpa [#allocation6], 1 }
 0xb28   :  { %4813 = vsyncpa [#allocation6 + $0x1], 1 }
 0xb29   :  { %4814 = vsyncpa [#allocation9], 1 }
 0xb2a   :  { %4815 = vsyncpa [#allocation12], 1 }
 0xb2b   :  { %4817 = vsyncpa [#allocation12 + $0x1], 1 }
 0xb2c   :  { %4818 = vsyncpa [#allocation15], 1 }
 0xb2d   :  { %4820 = vsyncpa [#allocation15 + $0x1], 1 }
 0xb2e   :  { %4821 = vsyncpa [#allocation18], 1 }
 0xb2f   :  { %4822 = vsyncpa [#allocation7], 1 }
 0xb30   :  { %4824 = vsyncpa [#allocation7 + $0x1], 1 }

</bundles_post_ra>
